<compile_context>
chip_gen: v5e
topology: v5e:2x2
jax: 0.10.0
libtpu: 0.0.40
codegen_flags: <defaults>
</compile_context>

<pallas_src>
import functools

import jax
import jax.numpy as jnp
from jax.experimental import pallas as pl
from jax.experimental.pallas import tpu as pltpu


def _bottleneck_kernel(x_ref, w1_ref, w2_ref, s1_ref, b1_ref, s2_ref, b2_ref,
                       o_ref, hp_ref, col_ref, *, add):
    # Per grid step (one batch element, channels-last):
    #   x_ref : (1, H, W, C1)
    #   w1_ref: (C1, Cm)            1x1 conv weight
    #   w2_ref: (9*Cm, C2)          3x3 conv weight, rows ordered (dy, dx, cin)
    #   s*/b* : (1, C)              folded BatchNorm scale / bias (f32)
    #   o_ref : (1, H, W, C2)
    #   hp_ref: (H+2, W+2, Cm)      VMEM scratch: zero-padded cv1 activations
    #   col_ref: (H*W, 9*Cm)        VMEM scratch: im2col slab for cv2
    _, H, W, C1 = x_ref.shape
    Cm = w1_ref.shape[1]
    C2 = w2_ref.shape[1]

    x = x_ref[...]                               # native dtype, read once
    x2d = x.reshape(H * W, C1)

    # ---- cv1: 1x1 conv (single matmul) + folded BN + SiLU ------------------
    h = jnp.dot(x2d, w1_ref[...], preferred_element_type=jnp.float32)
    h = h * s1_ref[...] + b1_ref[...]
    h = h * jax.nn.sigmoid(h)                    # SiLU; sigmoid -> EUP slot

    # ---- zero-pad cv1 output into VMEM scratch (padding=1 for 3x3 conv) ----
    # Re-zeroed every step: safe under megacore sharding of the batch axis,
    # and trivially cheap next to the matmuls below.
    hp_ref[...] = jnp.zeros(hp_ref.shape, hp_ref.dtype)
    hp_ref[1:H + 1, 1:W + 1, :] = h.reshape(H, W, Cm)

    # ---- cv2: 3x3 conv as im2col slab + ONE fat MXU matmul -----------------
    # Pack the 9 shifted windows along the contraction axis so the MXU sees
    # K = 9*Cm instead of nine thin K = Cm matmuls.
    for tap in range(9):                          # static unroll (9 taps)
        dy, dx = tap // 3, tap % 3
        win = hp_ref[dy:dy + H, dx:dx + W, :].reshape(H * W, Cm)
        col_ref[:, tap * Cm:(tap + 1) * Cm] = win

    y = jnp.dot(col_ref[...], w2_ref[...], preferred_element_type=jnp.float32)
    y = y * s2_ref[...] + b2_ref[...]
    y = y * jax.nn.sigmoid(y)

    # ---- optional residual (shortcut and c1 == c2) --------------------------
    if add:
        y = y + x2d                               # promotes if x is bf16

    o_ref[...] = y.reshape(1, H, W, C2).astype(o_ref.dtype)


def _fold_bn(gamma, beta, mean, var, eps):
    s = gamma.astype(jnp.float32) / jnp.sqrt(var.astype(jnp.float32) + eps)
    b = beta.astype(jnp.float32) - mean.astype(jnp.float32) * s
    return s, b


def bottleneck(x, w1, w2, bn1, bn2, *, shortcut=True, groups=1, eps=1e-5):
    """Bottleneck forward (inference).

    x   : (B, C1, H, W)  NCHW, torch layout
    w1  : (Cm, C1, 1, 1) cv1 conv weight (torch OIHW)
    w2  : (C2, Cm, 3, 3) cv2 conv weight (torch OIHW)
    bn1, bn2 : (gamma, beta, running_mean, running_var) tuples
    """
    if groups != 1:
        # TODO(synk): grouped 3x3 conv (g>1) path not implemented.
        raise NotImplementedError("grouped conv (g>1) not supported")

    B, C1, H, W = x.shape
    Cm = w1.shape[0]
    C2 = w2.shape[0]
    add = bool(shortcut) and (C1 == C2)

    # One-time preprocessing (in a real model: do at setup, not per call).
    x_nhwc = jnp.transpose(x, (0, 2, 3, 1))                              # (B,H,W,C1)
    w1_mat = jnp.transpose(w1.reshape(Cm, C1), (1, 0)).astype(jnp.float32)   # (C1,Cm)
    # (C2,Cm,3,3) -> (3,3,Cm,C2) -> (9*Cm, C2); row index = (dy*3+dx)*Cm + cin,
    # matching the column order of the in-kernel im2col slab.
    w2_mat = jnp.transpose(w2, (2, 3, 1, 0)).reshape(9 * Cm, C2).astype(jnp.float32)
    s1, b1 = _fold_bn(*bn1, eps)
    s2, b2 = _fold_bn(*bn2, eps)
    s1 = s1.reshape(1, Cm)
    b1 = b1.reshape(1, Cm)
    s2 = s2.reshape(1, C2)
    b2 = b2.reshape(1, C2)

    itemsize = jnp.dtype(x.dtype).itemsize
    flops = 2 * B * H * W * (C1 * Cm + 9 * Cm * C2)
    transcendentals = B * H * W * (Cm + C2)
    bytes_accessed = (B * H * W * (C1 + C2) * itemsize
                      + (w1_mat.size + w2_mat.size) * 4
                      + 2 * (Cm + C2) * 4)

    out = pl.pallas_call(
        functools.partial(_bottleneck_kernel, add=add),
        out_shape=jax.ShapeDtypeStruct((B, H, W, C2), x.dtype),
        grid_spec=pltpu.PrefetchScalarGridSpec(
            num_scalar_prefetch=0,
            grid=(B,),
            in_specs=[
                pl.BlockSpec((1, H, W, C1), lambda b: (b, 0, 0, 0)),
                pl.BlockSpec((C1, Cm), lambda b: (0, 0)),
                pl.BlockSpec((9 * Cm, C2), lambda b: (0, 0)),
                pl.BlockSpec((1, Cm), lambda b: (0, 0)),
                pl.BlockSpec((1, Cm), lambda b: (0, 0)),
                pl.BlockSpec((1, C2), lambda b: (0, 0)),
                pl.BlockSpec((1, C2), lambda b: (0, 0)),
            ],
            out_specs=pl.BlockSpec((1, H, W, C2), lambda b: (b, 0, 0, 0)),
            scratch_shapes=[
                pltpu.VMEM((H + 2, W + 2, Cm), jnp.float32),   # padded cv1 act
                pltpu.VMEM((H * W, 9 * Cm), jnp.float32),      # im2col slab
            ],
        ),
        compiler_params=pltpu.CompilerParams(
            dimension_semantics=("parallel",),
        ),
        cost_estimate=pl.CostEstimate(
            flops=flops,
            transcendentals=transcendentals,
            bytes_accessed=bytes_accessed,
        ),
    )(x_nhwc, w1_mat, w2_mat, s1, b1, s2, b2)

    return jnp.transpose(out, (0, 3, 1, 2))                              # back to NCHW


def _ref(x, w1, w2, bn1, bn2, *, shortcut=True, eps=1e-5):
    """Pure-JAX reference mirroring the PyTorch Bottleneck (eval mode)."""
    def conv_bn_silu(inp, w, bn, pad):
        y = jax.lax.conv_general_dilated(
            inp, w, window_strides=(1, 1),
            padding=[(pad, pad), (pad, pad)],
            dimension_numbers=("NCHW", "OIHW", "NCHW"))
        gamma, beta, mean, var = bn
        s = gamma / jnp.sqrt(var + eps)
        b = beta - mean * s
        y = y * s[None, :, None, None] + b[None, :, None, None]
        return y * jax.nn.sigmoid(y)

    h = conv_bn_silu(x, w1, bn1, 0)
    y = conv_bn_silu(h, w2, bn2, 1)
    return x + y if (shortcut and x.shape[1] == w2.shape[0]) else y


if __name__ == "__main__":
    B, C1, C2, H, W = 2, 64, 64, 16, 16
    e = 0.5
    Cm = int(C2 * e)

    key = jax.random.PRNGKey(0)
    ks = jax.random.split(key, 5)

    x = jax.random.normal(ks[0], (B, C1, H, W), dtype=jnp.float32)
    w1 = jax.random.normal(ks[1], (Cm, C1, 1, 1), dtype=jnp.float32) * (1.0 / jnp.sqrt(C1))
    w2 = jax.random.normal(ks[2], (C2, Cm, 3, 3), dtype=jnp.float32) * (1.0 / jnp.sqrt(9.0 * Cm))

    def bn_params(k, c):
        k1, k2, k3, k4 = jax.random.split(k, 4)
        gamma = 1.0 + 0.1 * jax.random.normal(k1, (c,), jnp.float32)
        beta = 0.05 * jax.random.normal(k2, (c,), jnp.float32)
        mean = 0.1 * jax.random.normal(k3, (c,), jnp.float32)
        var = 0.5 + 0.5 * jnp.abs(jax.random.normal(k4, (c,), jnp.float32))
        return gamma, beta, mean, var

    bn1 = bn_params(ks[3], Cm)
    bn2 = bn_params(ks[4], C2)

    out = jax.block_until_ready(bottleneck(x, w1, w2, bn1, bn2, shortcut=True, groups=1))
    ref = _ref(x, w1, w2, bn1, bn2, shortcut=True)

    assert out.shape == (B, C2, H, W)
    assert jnp.allclose(out, ref, atol=2e-3, rtol=2e-3), "mismatch vs reference"
    print("KERNEL_OK")
</pallas_src>

<mosaic_0001>
module attributes {stable_mosaic.version = 11 : i64} {
  func.func @_bottleneck_kernel(%arg0: i32, %arg1: memref<1x16x16x64xf32, #tpu.memory_space<vmem>>, %arg2: memref<64x32xf32, #tpu.memory_space<vmem>>, %arg3: memref<288x64xf32, #tpu.memory_space<vmem>>, %arg4: memref<1x32xf32, #tpu.memory_space<vmem>>, %arg5: memref<1x32xf32, #tpu.memory_space<vmem>>, %arg6: memref<1x64xf32, #tpu.memory_space<vmem>>, %arg7: memref<1x64xf32, #tpu.memory_space<vmem>>, %arg8: memref<1x16x16x64xf32, #tpu.memory_space<vmem>>, %arg9: memref<18x18x32xf32, #tpu.memory_space<vmem>>, %arg10: memref<256x288xf32, #tpu.memory_space<vmem>>) attributes {dimension_semantics = [#tpu.dimension_semantics<parallel>], iteration_bounds = array<i64: 2>, scalar_prefetch = 0 : i64, scratch_operands = 2 : i64, tpu.core_type = #tpu.core_type<tc>, window_params = [{transform_indices = @transform_0, window_bounds = array<i64: 1, 16, 16, 64>}, {pipeline_mode = #tpu.pipeline_mode<synchronous>, transform_indices = @transform_1, window_bounds = array<i64: 64, 32>}, {pipeline_mode = #tpu.pipeline_mode<synchronous>, transform_indices = @transform_2, window_bounds = array<i64: 288, 64>}, {pipeline_mode = #tpu.pipeline_mode<synchronous>, transform_indices = @transform_3, window_bounds = array<i64: 1, 32>}, {pipeline_mode = #tpu.pipeline_mode<synchronous>, transform_indices = @transform_4, window_bounds = array<i64: 1, 32>}, {pipeline_mode = #tpu.pipeline_mode<synchronous>, transform_indices = @transform_5, window_bounds = array<i64: 1, 64>}, {pipeline_mode = #tpu.pipeline_mode<synchronous>, transform_indices = @transform_6, window_bounds = array<i64: 1, 64>}, {transform_indices = @transform_7, window_bounds = array<i64: 1, 16, 16, 64>}]} {
    %c0 = arith.constant 0 : index
    %c0_0 = arith.constant 0 : index
    %c0_1 = arith.constant 0 : index
    %c0_2 = arith.constant 0 : index
    %0 = vector.load %arg1[%c0, %c0_0, %c0_1, %c0_2] : memref<1x16x16x64xf32, #tpu.memory_space<vmem>>, vector<1x16x16x64xf32>
    %1 = vector.shape_cast %0 : vector<1x16x16x64xf32> to vector<256x64xf32>
    %c0_3 = arith.constant 0 : index
    %c0_4 = arith.constant 0 : index
    %2 = vector.load %arg2[%c0_3, %c0_4] : memref<64x32xf32, #tpu.memory_space<vmem>>, vector<64x32xf32>
    %cst = arith.constant dense<0.000000e+00> : vector<256x32xf32>
    %3 = tpu.matmul %1, %2, %cst {dimension_numbers = #tpu.dot_dimension_numbers<[1], [0], [0], [1], [0, 0, 1, 1], [], []>} : vector<256x64xf32>, vector<64x32xf32>, vector<256x32xf32> -> vector<256x32xf32>
    %c0_5 = arith.constant 0 : index
    %c0_6 = arith.constant 0 : index
    %4 = vector.load %arg4[%c0_5, %c0_6] : memref<1x32xf32, #tpu.memory_space<vmem>>, vector<1x32xf32>
    %5 = vector.broadcast %4 : vector<1x32xf32> to vector<256x32xf32>
    %6 = arith.mulf %3, %5 : vector<256x32xf32>
    %c0_7 = arith.constant 0 : index
    %c0_8 = arith.constant 0 : index
    %7 = vector.load %arg5[%c0_7, %c0_8] : memref<1x32xf32, #tpu.memory_space<vmem>>, vector<1x32xf32>
    %8 = vector.broadcast %7 : vector<1x32xf32> to vector<256x32xf32>
    %9 = arith.addf %6, %8 : vector<256x32xf32>
    %10 = arith.negf %9 : vector<256x32xf32>
    %11 = math.exp %10 : vector<256x32xf32>
    %cst_9 = arith.constant 1.000000e+00 : f32
    %12 = vector.broadcast %cst_9 : f32 to vector<256x32xf32>
    %13 = arith.addf %12, %11 : vector<256x32xf32>
    %14 = arith.divf %12, %13 : vector<256x32xf32>
    %15 = arith.mulf %9, %14 : vector<256x32xf32>
    %cst_10 = arith.constant 0.000000e+00 : f32
    %16 = vector.broadcast %cst_10 : f32 to vector<18x18x32xf32>
    %c0_11 = arith.constant 0 : index
    %c0_12 = arith.constant 0 : index
    %c0_13 = arith.constant 0 : index
    %17 = vector.load %arg9[%c0_11, %c0_12, %c0_13] : memref<18x18x32xf32, #tpu.memory_space<vmem>>, vector<18x18x32xf32>
    tpu.vector_store %arg9[%c0_11, %c0_12, %c0_13], %16 {strides = array<i32>} : memref<18x18x32xf32, #tpu.memory_space<vmem>>, vector<18x18x32xf32>,
    %18 = vector.shape_cast %15 : vector<256x32xf32> to vector<16x16x32xf32>
    %c1 = arith.constant 1 : index
    %c1_14 = arith.constant 1 : index
    %c0_15 = arith.constant 0 : index
    %19 = vector.load %arg9[%c1, %c1_14, %c0_15] : memref<18x18x32xf32, #tpu.memory_space<vmem>>, vector<16x16x32xf32>
    tpu.vector_store %arg9[%c1, %c1_14, %c0_15], %18 {strides = array<i32>} : memref<18x18x32xf32, #tpu.memory_space<vmem>>, vector<16x16x32xf32>,
    %c0_16 = arith.constant 0 : index
    %c0_17 = arith.constant 0 : index
    %c0_18 = arith.constant 0 : index
    %20 = vector.load %arg9[%c0_16, %c0_17, %c0_18] : memref<18x18x32xf32, #tpu.memory_space<vmem>>, vector<16x16x32xf32>
    %21 = vector.shape_cast %20 : vector<16x16x32xf32> to vector<256x32xf32>
    %c0_19 = arith.constant 0 : index
    %c0_20 = arith.constant 0 : index
    %22 = vector.load %arg10[%c0_19, %c0_20] : memref<256x288xf32, #tpu.memory_space<vmem>>, vector<256x32xf32>
    tpu.vector_store %arg10[%c0_19, %c0_20], %21 {strides = array<i32>} : memref<256x288xf32, #tpu.memory_space<vmem>>, vector<256x32xf32>,
    %c0_21 = arith.constant 0 : index
    %c1_22 = arith.constant 1 : index
    %c0_23 = arith.constant 0 : index
    %23 = vector.load %arg9[%c0_21, %c1_22, %c0_23] : memref<18x18x32xf32, #tpu.memory_space<vmem>>, vector<16x16x32xf32>
    %24 = vector.shape_cast %23 : vector<16x16x32xf32> to vector<256x32xf32>
    %c0_24 = arith.constant 0 : index
    %c32 = arith.constant 32 : index
    %25 = vector.load %arg10[%c0_24, %c32] : memref<256x288xf32, #tpu.memory_space<vmem>>, vector<256x32xf32>
    tpu.vector_store %arg10[%c0_24, %c32], %24 {strides = array<i32>} : memref<256x288xf32, #tpu.memory_space<vmem>>, vector<256x32xf32>,
    %c0_25 = arith.constant 0 : index
    %c2 = arith.constant 2 : index
    %c0_26 = arith.constant 0 : index
    %26 = vector.load %arg9[%c0_25, %c2, %c0_26] : memref<18x18x32xf32, #tpu.memory_space<vmem>>, vector<16x16x32xf32>
    %27 = vector.shape_cast %26 : vector<16x16x32xf32> to vector<256x32xf32>
    %c0_27 = arith.constant 0 : index
    %c64 = arith.constant 64 : index
    %28 = vector.load %arg10[%c0_27, %c64] : memref<256x288xf32, #tpu.memory_space<vmem>>, vector<256x32xf32>
    tpu.vector_store %arg10[%c0_27, %c64], %27 {strides = array<i32>} : memref<256x288xf32, #tpu.memory_space<vmem>>, vector<256x32xf32>,
    %c1_28 = arith.constant 1 : index
    %c0_29 = arith.constant 0 : index
    %c0_30 = arith.constant 0 : index
    %29 = vector.load %arg9[%c1_28, %c0_29, %c0_30] : memref<18x18x32xf32, #tpu.memory_space<vmem>>, vector<16x16x32xf32>
    %30 = vector.shape_cast %29 : vector<16x16x32xf32> to vector<256x32xf32>
    %c0_31 = arith.constant 0 : index
    %c96 = arith.constant 96 : index
    %31 = vector.load %arg10[%c0_31, %c96] : memref<256x288xf32, #tpu.memory_space<vmem>>, vector<256x32xf32>
    tpu.vector_store %arg10[%c0_31, %c96], %30 {strides = array<i32>} : memref<256x288xf32, #tpu.memory_space<vmem>>, vector<256x32xf32>,
    %c1_32 = arith.constant 1 : index
    %c1_33 = arith.constant 1 : index
    %c0_34 = arith.constant 0 : index
    %32 = vector.load %arg9[%c1_32, %c1_33, %c0_34] : memref<18x18x32xf32, #tpu.memory_space<vmem>>, vector<16x16x32xf32>
    %33 = vector.shape_cast %32 : vector<16x16x32xf32> to vector<256x32xf32>
    %c0_35 = arith.constant 0 : index
    %c128 = arith.constant 128 : index
    %34 = vector.load %arg10[%c0_35, %c128] : memref<256x288xf32, #tpu.memory_space<vmem>>, vector<256x32xf32>
    tpu.vector_store %arg10[%c0_35, %c128], %33 {strides = array<i32>} : memref<256x288xf32, #tpu.memory_space<vmem>>, vector<256x32xf32>,
    %c1_36 = arith.constant 1 : index
    %c2_37 = arith.constant 2 : index
    %c0_38 = arith.constant 0 : index
    %35 = vector.load %arg9[%c1_36, %c2_37, %c0_38] : memref<18x18x32xf32, #tpu.memory_space<vmem>>, vector<16x16x32xf32>
    %36 = vector.shape_cast %35 : vector<16x16x32xf32> to vector<256x32xf32>
    %c0_39 = arith.constant 0 : index
    %c160 = arith.constant 160 : index
    %37 = vector.load %arg10[%c0_39, %c160] : memref<256x288xf32, #tpu.memory_space<vmem>>, vector<256x32xf32>
    tpu.vector_store %arg10[%c0_39, %c160], %36 {strides = array<i32>} : memref<256x288xf32, #tpu.memory_space<vmem>>, vector<256x32xf32>,
    %c2_40 = arith.constant 2 : index
    %c0_41 = arith.constant 0 : index
    %c0_42 = arith.constant 0 : index
    %38 = vector.load %arg9[%c2_40, %c0_41, %c0_42] : memref<18x18x32xf32, #tpu.memory_space<vmem>>, vector<16x16x32xf32>
    %39 = vector.shape_cast %38 : vector<16x16x32xf32> to vector<256x32xf32>
    %c0_43 = arith.constant 0 : index
    %c192 = arith.constant 192 : index
    %40 = vector.load %arg10[%c0_43, %c192] : memref<256x288xf32, #tpu.memory_space<vmem>>, vector<256x32xf32>
    tpu.vector_store %arg10[%c0_43, %c192], %39 {strides = array<i32>} : memref<256x288xf32, #tpu.memory_space<vmem>>, vector<256x32xf32>,
    %c2_44 = arith.constant 2 : index
    %c1_45 = arith.constant 1 : index
    %c0_46 = arith.constant 0 : index
    %41 = vector.load %arg9[%c2_44, %c1_45, %c0_46] : memref<18x18x32xf32, #tpu.memory_space<vmem>>, vector<16x16x32xf32>
    %42 = vector.shape_cast %41 : vector<16x16x32xf32> to vector<256x32xf32>
    %c0_47 = arith.constant 0 : index
    %c224 = arith.constant 224 : index
    %43 = vector.load %arg10[%c0_47, %c224] : memref<256x288xf32, #tpu.memory_space<vmem>>, vector<256x32xf32>
    tpu.vector_store %arg10[%c0_47, %c224], %42 {strides = array<i32>} : memref<256x288xf32, #tpu.memory_space<vmem>>, vector<256x32xf32>,
    %c2_48 = arith.constant 2 : index
    %c2_49 = arith.constant 2 : index
    %c0_50 = arith.constant 0 : index
    %44 = vector.load %arg9[%c2_48, %c2_49, %c0_50] : memref<18x18x32xf32, #tpu.memory_space<vmem>>, vector<16x16x32xf32>
    %45 = vector.shape_cast %44 : vector<16x16x32xf32> to vector<256x32xf32>
    %c0_51 = arith.constant 0 : index
    %c256 = arith.constant 256 : index
    %46 = vector.load %arg10[%c0_51, %c256] : memref<256x288xf32, #tpu.memory_space<vmem>>, vector<256x32xf32>
    tpu.vector_store %arg10[%c0_51, %c256], %45 {strides = array<i32>} : memref<256x288xf32, #tpu.memory_space<vmem>>, vector<256x32xf32>,
    %c0_52 = arith.constant 0 : index
    %c0_53 = arith.constant 0 : index
    %47 = vector.load %arg10[%c0_52, %c0_53] : memref<256x288xf32, #tpu.memory_space<vmem>>, vector<256x288xf32>
    %c0_54 = arith.constant 0 : index
    %c0_55 = arith.constant 0 : index
    %48 = vector.load %arg3[%c0_54, %c0_55] : memref<288x64xf32, #tpu.memory_space<vmem>>, vector<288x64xf32>
    %cst_56 = arith.constant dense<0.000000e+00> : vector<256x64xf32>
    %49 = tpu.matmul %47, %48, %cst_56 {dimension_numbers = #tpu.dot_dimension_numbers<[1], [0], [0], [1], [0, 0, 1, 1], [], []>} : vector<256x288xf32>, vector<288x64xf32>, vector<256x64xf32> -> vector<256x64xf32>
    %c0_57 = arith.constant 0 : index
    %c0_58 = arith.constant 0 : index
    %50 = vector.load %arg6[%c0_57, %c0_58] : memref<1x64xf32, #tpu.memory_space<vmem>>, vector<1x64xf32>
    %51 = vector.broadcast %50 : vector<1x64xf32> to vector<256x64xf32>
    %52 = arith.mulf %49, %51 : vector<256x64xf32>
    %c0_59 = arith.constant 0 : index
    %c0_60 = arith.constant 0 : index
    %53 = vector.load %arg7[%c0_59, %c0_60] : memref<1x64xf32, #tpu.memory_space<vmem>>, vector<1x64xf32>
    %54 = vector.broadcast %53 : vector<1x64xf32> to vector<256x64xf32>
    %55 = arith.addf %52, %54 : vector<256x64xf32>
    %56 = arith.negf %55 : vector<256x64xf32>
    %57 = math.exp %56 : vector<256x64xf32>
    %cst_61 = arith.constant 1.000000e+00 : f32
    %58 = vector.broadcast %cst_61 : f32 to vector<256x64xf32>
    %59 = arith.addf %58, %57 : vector<256x64xf32>
    %60 = arith.divf %58, %59 : vector<256x64xf32>
    %61 = arith.mulf %55, %60 : vector<256x64xf32>
    %62 = arith.addf %61, %1 : vector<256x64xf32>
    %63 = vector.shape_cast %62 : vector<256x64xf32> to vector<1x16x16x64xf32>
    %c0_62 = arith.constant 0 : index
    %c0_63 = arith.constant 0 : index
    %c0_64 = arith.constant 0 : index
    %c0_65 = arith.constant 0 : index
    %64 = vector.load %arg8[%c0_62, %c0_63, %c0_64, %c0_65] : memref<1x16x16x64xf32, #tpu.memory_space<vmem>>, vector<1x16x16x64xf32>
    tpu.vector_store %arg8[%c0_62, %c0_63, %c0_64, %c0_65], %63 {strides = array<i32>} : memref<1x16x16x64xf32, #tpu.memory_space<vmem>>, vector<1x16x16x64xf32>,
    return
  }
  func.func @transform_0(%arg0: i32) -> (i32, i32, i32, i32) {
    %c0_i32 = arith.constant 0 : i32
    %c0_i32_0 = arith.constant 0 : i32
    %c0_i32_1 = arith.constant 0 : i32
    %c0_i32_2 = arith.constant 0 : i32
    return %arg0, %c0_i32, %c0_i32_0, %c0_i32_1 : i32, i32, i32, i32
  }
  func.func @transform_1(%arg0: i32) -> (i32, i32) {
    %c0_i32 = arith.constant 0 : i32
    %c0_i32_0 = arith.constant 0 : i32
    %c0_i32_1 = arith.constant 0 : i32
    return %c0_i32, %c0_i32_0 : i32, i32
  }
  func.func @transform_2(%arg0: i32) -> (i32, i32) {
    %c0_i32 = arith.constant 0 : i32
    %c0_i32_0 = arith.constant 0 : i32
    %c0_i32_1 = arith.constant 0 : i32
    return %c0_i32, %c0_i32_0 : i32, i32
  }
  func.func @transform_3(%arg0: i32) -> (i32, i32) {
    %c0_i32 = arith.constant 0 : i32
    %c0_i32_0 = arith.constant 0 : i32
    %c0_i32_1 = arith.constant 0 : i32
    return %c0_i32, %c0_i32_0 : i32, i32
  }
  func.func @transform_4(%arg0: i32) -> (i32, i32) {
    %c0_i32 = arith.constant 0 : i32
    %c0_i32_0 = arith.constant 0 : i32
    %c0_i32_1 = arith.constant 0 : i32
    return %c0_i32, %c0_i32_0 : i32, i32
  }
  func.func @transform_5(%arg0: i32) -> (i32, i32) {
    %c0_i32 = arith.constant 0 : i32
    %c0_i32_0 = arith.constant 0 : i32
    %c0_i32_1 = arith.constant 0 : i32
    return %c0_i32, %c0_i32_0 : i32, i32
  }
  func.func @transform_6(%arg0: i32) -> (i32, i32) {
    %c0_i32 = arith.constant 0 : i32
    %c0_i32_0 = arith.constant 0 : i32
    %c0_i32_1 = arith.constant 0 : i32
    return %c0_i32, %c0_i32_0 : i32, i32
  }
  func.func @transform_7(%arg0: i32) -> (i32, i32, i32, i32) {
    %c0_i32 = arith.constant 0 : i32
    %c0_i32_0 = arith.constant 0 : i32
    %c0_i32_1 = arith.constant 0 : i32
    %c0_i32_2 = arith.constant 0 : i32
    return %arg0, %c0_i32, %c0_i32_0, %c0_i32_1 : i32, i32, i32, i32
  }
}

</mosaic_0001>

<bundles_post_ra>
// kernel: tpu_custom_call.1
= control target key start
LH: loop header
LB: loop body
LE: loop exit
PB: predicated region body
PF: predicated region fallthrough
CT: control target
= control target key end

     0   :  { %12 = vsyncpa [#allocation5], 0  ;;  %s7088_s0 = inlined_call_operand.vmem [shape: f32[2,16,16,64], index: 0, kind: input, shape index: {}]   ;;  %s7089_s1 = inlined_call_operand.vmem [shape: f32[64,32], index: 1, kind: input, shape index: {}]   ;;  %s7090_s2 = inlined_call_operand.vmem [shape: f32[288,64], index: 2, kind: input, shape index: {}]   ;;  %s7091_s3 = inlined_call_operand.vmem [shape: f32[1,32], index: 3, kind: input, shape index: {}]   ;;  %s7092_s4 = inlined_call_operand.vmem [shape: f32[1,32], index: 4, kind: input, shape index: {}]   ;;  %s7093_s5 = inlined_call_operand.vmem [shape: f32[1,64], index: 5, kind: input, shape index: {}]   ;;  %s7094_s6 = inlined_call_operand.vmem [shape: f32[1,64], index: 6, kind: input, shape index: {}]   ;;  %s7095_s7 = inlined_call_operand.hbm [shape: f32[2,16,16,64], index: 7, kind: output, shape index: {}]  }
   0x1   :  { %14 = vsyncpa [#allocation5 + $0x1], 0  ;;  %s4696_s24 = smov 0   ;;  %s4698_s25 = smov 0  }
   0x2   :  { %s4700_s26 = smov 0   ;;  %s4702_s27 = smov 0  }
   0x3 LB: > { %s4717_s28 = sadd.s32 4294967295, %s4648_s27   ;;  %s4097_s29 = sadd.s32 4294967294, %s4648_s27   ;;  %s4648_s27 = sphi %s4702_s27, %s7165_s27   ;;  %s4644_s26 = sphi %s4700_s26, %s7164_s26   ;;  %s4640_s25 = sphi %s4698_s25, %s7163_s25   ;;  %s4636_s24 = sphi %s4696_s24, %s7162_s24  }
   0x4   : > { %s4721_s30 = sadd.s32 1, %s4648_s27   ;;  %s179_s8 = sadd.s32 1, %s4644_s26 }
   0x5   : > { %s176_s9 = ssub.s32 %s4648_s27, %s4721_s30  ;;  %p189_p0 = scmp.ne.s32.totalorder %s4644_s26, %s4640_s25 }
   0x6   : > { %p177_p1 = scmp.eq.s32.totalorder %s176_s9, 0  ;;  %p190_p2 = scmp.eq.s32.totalorder %s4717_s28, 1 }
   0x7   : > { %p195_p3 = scmp.ne.s32.totalorder %s4640_s25, %s4636_s24  ;;  %p196_p4 = scmp.eq.s32.totalorder %s4097_s29, 1 }
   0x8   : > { %s4732_s10 = scalar_select %p177_p1, %s4644_s26, %s179_s8  }
   0x9   : > { %p4734_p5 = por %p190_p2, %p189_p0  ;;  %p4738_p6 = por %p196_p4, %p195_p3 }
   0xa   : > { %p4100_p7 = scmp.ge.s32.totalorder %s4648_s27, 1  ;;  %p240_p8 = scmp.lt.s32.totalorder %s4648_s27, 3 }
   0xc   : > { %p241_p9 = pnand %p4100_p7, %p240_p8 }
   0xd   : > { %p272_p10 = scmp.lt.s32.totalorder (!%p241_p9), %s4717_s28, 1  ;;  %s4651_s20 = smov (!%p241_p9), 32  }
   0xe   : > { %244 = sbr.rel (%p241_p9) target bundleno = 1002 (0x3ea), region = 48  ;;  %s4652_s8 = smov (!%p241_p9), 64  }
   0xf   : > { %s4653_s22 = smov (!%p241_p9), 96   ;;  %s269_s16 = sand.u32 (!%p241_p9), 1, %s4640_s25  }
  0x10   : > { %s6268_s18 = sshll.u32 (!%p241_p9), %s269_s16, 8  ;;  %s4238_s23 = sshll.u32 (!%p241_p9), %s4717_s28, 8 }
  0x11   : > { %s4031_s13 = scalar_lea.hbm (!%p241_p9), %s7095_s7, %s4238_s23  ;;  %s4020_s15 = scalar_lea.sflag (!%p241_p9), [#allocation5], %s269_s16 }
  0x12   : > { %s4034_s14 = sshll.u32 (!%p241_p9), %s4031_s13, 4  ;;  %s4606_s21 = scalar_lea.hbm (!%p241_p9), %s7095_s7, 512  ;;  %s4035_s14 = int_to_ptr.hbm [resolvable:$true] %s4034_s14 }
  0x13   : > { %v316_v0 = vld [vmem:[%s7089_s1 + $0x38] sm:$0xff]  ;;  %v315_v1 = vld [vmem:[%s7089_s1 + $0x30] sm:$0xff]  ;;  %v314_v2 = vld [vmem:[%s7089_s1 + $0x28] sm:$0xff]  ;;  %s273_s19 = scalar_select %p272_p10, %s4717_s28, 1  ;;  %vm317_vm0 = vcmask 523264   ;;  %vm1239_vm1 = vcmask 261120  }
  0x14   : > { %422 = vmatpush.msra.mxu0 %v316_v0  ;;  %v313_v3 = vld [vmem:[%s7089_s1 + $0x20] sm:$0xff]  ;;  %v312_v4 = vld [vmem:[%s7089_s1 + $0x18] sm:$0xff]  ;;  %v311_v5 = vld [vmem:[%s7089_s1 + $0x10] sm:$0xff]  ;;  %v4650_v20 = vmov 0.0   ;;  %vm1242_vm2 = vcmask 254976  }
  0x15   : > { %s4237_s29 = sshll.u32 %s273_s19, 8  ;;  %v310_v6 = vld [vmem:[%s7089_s1 + $0x8] sm:$0xff]  ;;  %v309_v7 = vld [vmem:[%s7089_s1] sm:$0xff]  ;;  %1244 = vst.msk [vmem:[#allocation2 + $0x18] sm:$0xff] %vm1239_vm1, %v4650_v20  ;;  %s6330_s19 = scalar_lea.vmem [#allocation4], %s6268_s18 }
  0x16   : > { %423 = vmatpush.msra.mxu0 %v315_v1  ;;  %s4770_s17 = scalar_lea.vmem %s7088_s0, %s4237_s29  ;;  %1245 = vst.msk [vmem:[#allocation2 + $0x20] sm:$0xff] %vm1239_vm1, %v4650_v20  ;;  %v4841_v23 = vld [vmem:[%s7091_s3] ss:$0 sm:$0xff]  ;;  %s4032_s28 = sshll.u32 %s6330_s19, 4  ;;  %s4033_s28 = int_to_ptr.vmem [resolvable:$true] %s4032_s28 }
  0x17   : > { %v277_v8 = vld [vmem:[%s4770_s17] sm:$0xff]  ;;  %v278_v9 = vld [vmem:[%s4770_s17 + $0x8] sm:$0xff]  ;;  %v279_v10 = vld [vmem:[%s4770_s17 + $0x10] sm:$0xff]  ;;  %1240 = vst.msk [vmem:[#allocation2] sm:$0xff] %vm1239_vm1, %v4650_v20  ;;  %s4600_s18 = sshra.s32 %s4035_s14, 4  ;;  %s4601_s18 = int_to_ptr.hbm [resolvable:$true] %s4600_s18 }
  0x18   : > { %424 = vmatpush.msra.mxu0 %v314_v2  ;;  %v280_v11 = vld [vmem:[%s4770_s17 + $0x18] sm:$0xff]  ;;  %v281_v12 = vld [vmem:[%s4770_s17 + $0x20] sm:$0xff]  ;;  %v282_v13 = vld [vmem:[%s4770_s17 + $0x28] sm:$0xff]  ;;  %1241 = vst.msk [vmem:[#allocation2 + $0x8] sm:$0xff] %vm1239_vm1, %v4650_v20  ;;  %p4607_p0 = scmp.lt.s32.totalorder %s4601_s18, %s7095_s7 }
  0x19   : > { %v283_v14 = vld [vmem:[%s4770_s17 + $0x30] sm:$0xff]  ;;  %v284_v15 = vld [vmem:[%s4770_s17 + $0x38] sm:$0xff]  ;;  %v285_v16 = vld [vmem:[%s4770_s17 + $0x40] sm:$0xff]  ;;  %1247 = vst.msk [vmem:[#allocation2 + $0x30] sm:$0xff] %vm1239_vm1, %v4650_v20 }
  0x1a   : > { %425 = vmatpush.msra.mxu0 %v313_v3  ;;  %v286_v17 = vld [vmem:[%s4770_s17 + $0x48] sm:$0xff]  ;;  %v287_v18 = vld [vmem:[%s4770_s17 + $0x50] sm:$0xff]  ;;  %v288_v19 = vld [vmem:[%s4770_s17 + $0x58] sm:$0xff]  ;;  %1248 = vst.msk [vmem:[#allocation2 + $0x38] sm:$0xff] %vm1239_vm1, %v4650_v20 }
  0x1b   : > { %1250 = vst.msk [vmem:[#allocation2 + $0x48] sm:$0xff] %vm1239_vm1, %v4650_v20  ;;  %v289_v22 = vld [vmem:[%s4770_s17 + $0x60] sm:$0xff]  ;;  %v290_v27 = vld [vmem:[%s4770_s17 + $0x68] sm:$0xff]  ;;  %v291_v46 = vld [vmem:[%s4770_s17 + $0x70] sm:$0xff] }
  0x1c   : > { %426 = vmatpush.msra.mxu0 %v312_v4  ;;  %1251 = vst.msk [vmem:[#allocation2 + $0x50] sm:$0xff] %vm1239_vm1, %v4650_v20  ;;  %v4850_v24 = vld [vmem:[%s7092_s4] ss:$0 sm:$0xff]  ;;  %v292_v63 = vld [vmem:[%s4770_s17 + $0x78] sm:$0xff] }
  0x1d   : > { %1253 = vst.msk [vmem:[#allocation2 + $0x60] sm:$0xff] %vm1239_vm1, %v4650_v20 }
  0x1e   : > { %427 = vmatpush.msra.mxu0 %v311_v5  ;;  %1254 = vst.msk [vmem:[#allocation2 + $0x68] sm:$0xff] %vm1239_vm1, %v4650_v20 }
  0x1f   : > { %1256 = vst.msk [vmem:[#allocation2 + $0x78] sm:$0xff] %vm1239_vm1, %v4650_v20  ;;  %v1392_v21 = vld [vmem:[#allocation2 + $0x1] sm:$0xff] }
  0x20   : > { %428 = vmatpush.msra.mxu0 %v310_v6  ;;  %1257 = vst.msk [vmem:[#allocation2 + $0x80] sm:$0xff] %vm1239_vm1, %v4650_v20  ;;  %1456 = vrot.lane.b32.xlu0 %v1392_v21, %s4651_s20  ;;  %v1585_v32 = vld [vmem:[#allocation2 + $0x2] sm:$0xff] }
  0x21   : > { %1259 = vst.msk [vmem:[#allocation2 + $0x90] sm:$0xff] %vm1239_vm1, %v4650_v20  ;;  %1649 = vrot.lane.b32.xlu2 %v1585_v32, %s4652_s8 }
  0x22   : > { %429 = vmatpush.msra.mxu0 %v309_v7  ;;  %1260 = vst.msk [vmem:[#allocation2 + $0x98] sm:$0xff] %vm1239_vm1, %v4650_v20 }
  0x23   : > { %4104 = vmatmul.msk.f32.vlgmr.msra.gmra.mxu0 %vm317_vm0, %v277_v8  ;;  %1262 = vst.msk [vmem:[#allocation2 + $0xa8] sm:$0xff] %vm1239_vm1, %v4650_v20 }
  0x24   : > { %1263 = vst.msk [vmem:[#allocation2 + $0xb0] sm:$0xff] %vm1239_vm1, %v4650_v20 }
  0x25   : > { %1265 = vst.msk [vmem:[#allocation2 + $0xc0] sm:$0xff] %vm1239_vm1, %v4650_v20 }
  0x26   : > { %1266 = vst.msk [vmem:[#allocation2 + $0xc8] sm:$0xff] %vm1239_vm1, %v4650_v20 }
  0x27   : > { %1268 = vst.msk [vmem:[#allocation2 + $0xd8] sm:$0xff] %vm1239_vm1, %v4650_v20 }
  0x28   : > { %1269 = vst.msk [vmem:[#allocation2 + $0xe0] sm:$0xff] %vm1239_vm1, %v4650_v20 }
  0x29   : > { %1271 = vst.msk [vmem:[#allocation2 + $0xf0] sm:$0xff] %vm1239_vm1, %v4650_v20 }
  0x2a   : > { %1272 = vst.msk [vmem:[#allocation2 + $0xf8] sm:$0xff] %vm1239_vm1, %v4650_v20 }
  0x2b   : > { %4105 = vmatmul.msk.f32.gmra.mxu0 %vm317_vm0, %v278_v9  ;;  %1274 = vst.msk [vmem:[#allocation2 + $0x108] sm:$0xff] %vm1239_vm1, %v4650_v20  ;;  %v2807_v9 = vld [vmem:[%s7090_s2 + $0x118] sm:$0xff] }
  0x2c   : > { %1275 = vst.msk [vmem:[#allocation2 + $0x110] sm:$0xff] %vm1239_vm1, %v4650_v20  ;;  %3142 = vmatpush.msra.mxu3 %v2807_v9 }
  0x2d   : > { %1277 = vst.msk [vmem:[#allocation2 + $0x120] sm:$0xff] %vm1239_vm1, %v4650_v20 }
  0x2e   : > { %1278 = vst.msk [vmem:[#allocation2 + $0x128] sm:$0xff] %vm1239_vm1, %v4650_v20 }
  0x2f   : > { %1280 = vst.msk [vmem:[#allocation2 + $0x138] sm:$0xff] %vm1239_vm1, %v4650_v20 }
  0x30   : > { %1281 = vst.msk [vmem:[#allocation2 + $0x140] sm:$0xff] %vm1239_vm1, %v4650_v20 }
  0x31   : > { %1283 = vst.msk [vmem:[#allocation2 + $0x150] sm:$0xff] %vm1239_vm1, %v4650_v20 }
  0x32   : > { %1284 = vst.msk [vmem:[#allocation2 + $0x158] sm:$0xff] %vm1239_vm1, %v4650_v20 }
  0x33   : > { %4106 = vmatmul.msk.f32.gmra.mxu0 %vm317_vm0, %v279_v10  ;;  %1286 = vst.msk [vmem:[#allocation2 + $0x168] sm:$0xff] %vm1239_vm1, %v4650_v20 }
  0x34   : > { %1287 = vst.msk [vmem:[#allocation2 + $0x170] sm:$0xff] %vm1239_vm1, %v4650_v20 }
  0x35   : > { %1289 = vst.msk [vmem:[#allocation2 + $0x180] sm:$0xff] %vm1239_vm1, %v4650_v20 }
  0x36   : > { %1290 = vst.msk [vmem:[#allocation2 + $0x188] sm:$0xff] %vm1239_vm1, %v4650_v20 }
  0x37   : > { %1292 = vst.msk [vmem:[#allocation2 + $0x198] sm:$0xff] %vm1239_vm1, %v4650_v20 }
  0x38   : > { %1293 = vst.msk [vmem:[#allocation2 + $0x1a0] sm:$0xff] %vm1239_vm1, %v4650_v20 }
  0x39   : > { %1246 = vst.msk [vmem:[#allocation2 + $0x28] sm:$0x3] %vm1242_vm2, %v4650_v20 }
  0x3a   : > { %1243 = vst.msk [vmem:[#allocation2 + $0x10] sm:$0x3] %vm1242_vm2, %v4650_v20 }
  0x3b   : > { %4107 = vmatmul.msk.f32.gmra.mxu0 %vm317_vm0, %v280_v11  ;;  %1249 = vst.msk [vmem:[#allocation2 + $0x40] sm:$0x3] %vm1242_vm2, %v4650_v20 }
  0x3c   : > { %1252 = vst.msk [vmem:[#allocation2 + $0x58] sm:$0x3] %vm1242_vm2, %v4650_v20 }
  0x3d   : > { %1255 = vst.msk [vmem:[#allocation2 + $0x70] sm:$0x3] %vm1242_vm2, %v4650_v20 }
  0x3e   : > { %1258 = vst.msk [vmem:[#allocation2 + $0x88] sm:$0x3] %vm1242_vm2, %v4650_v20 }
  0x3f   : > { %1261 = vst.msk [vmem:[#allocation2 + $0xa0] sm:$0x3] %vm1242_vm2, %v4650_v20 }
  0x40   : > { %1264 = vst.msk [vmem:[#allocation2 + $0xb8] sm:$0x3] %vm1242_vm2, %v4650_v20 }
  0x41   : > { %1267 = vst.msk [vmem:[#allocation2 + $0xd0] sm:$0x3] %vm1242_vm2, %v4650_v20  ;;  %v1393_v45 = vld [vmem:[#allocation2 + $0x9] sm:$0xff] }
  0x42   : > { %1270 = vst.msk [vmem:[#allocation2 + $0xe8] sm:$0x3] %vm1242_vm2, %v4650_v20  ;;  %1458 = vrot.lane.b32.xlu0 %v1393_v45, %s4651_s20  ;;  %v1586_v57 = vld [vmem:[#allocation2 + $0xa] sm:$0xff] }
  0x43   : > { %4108 = vmatmul.msk.f32.gmra.mxu0 %vm317_vm0, %v281_v12  ;;  %1273 = vst.msk [vmem:[#allocation2 + $0x100] sm:$0x3] %vm1242_vm2, %v4650_v20 }
  0x44   : > { %1276 = vst.msk [vmem:[#allocation2 + $0x118] sm:$0x3] %vm1242_vm2, %v4650_v20 }
  0x45   : > { %1279 = vst.msk [vmem:[#allocation2 + $0x130] sm:$0x3] %vm1242_vm2, %v4650_v20 }
  0x46   : > { %1282 = vst.msk [vmem:[#allocation2 + $0x148] sm:$0x3] %vm1242_vm2, %v4650_v20 }
  0x47   : > { %1285 = vst.msk [vmem:[#allocation2 + $0x160] sm:$0x3] %vm1242_vm2, %v4650_v20 }
  0x48   : > { %1288 = vst.msk [vmem:[#allocation2 + $0x178] sm:$0x3] %vm1242_vm2, %v4650_v20 }
  0x49   : > { %1291 = vst.msk [vmem:[#allocation2 + $0x190] sm:$0x3] %vm1242_vm2, %v4650_v20 }
  0x4a   : > { %1294 = vst.msk [vmem:[#allocation2 + $0x1a8] sm:$0x3] %vm1242_vm2, %v4650_v20  ;;  %1651 = vrot.lane.b32.xlu0 %v1586_v57, %s4652_s8 }
  0x4b   : > { %4109 = vmatmul.msk.f32.gmra.mxu0 %vm317_vm0, %v282_v13 }
  0x53   : > { %4110 = vmatmul.msk.f32.gmra.mxu0 %vm317_vm0, %v283_v14 }
  0x5b   : > { %4111 = vmatmul.msk.f32.gmra.mxu0 %vm317_vm0, %v284_v15 }
  0x63   : > { %4112 = vmatmul.msk.f32.gmra.mxu0 %vm317_vm0, %v285_v16  ;;  %v2806_v16 = vld [vmem:[%s7090_s2 + $0x110] sm:$0xff] }
  0x64   : > { %3143 = vmatpush.msra.mxu3 %v2806_v16 }
  0x6b   : > { %4113 = vmatmul.msk.f32.gmra.mxu0 %vm317_vm0, %v286_v17 }
  0x73   : > { %4114 = vmatmul.msk.f32.gmra.mxu0 %vm317_vm0, %v287_v18 }
  0x7b   : > { %4115 = vmatmul.msk.f32.gmra.mxu0 %vm317_vm0, %v288_v19 }
  0x83   : > { %4116 = vmatmul.msk.f32.gmra.mxu0 %vm317_vm0, %v289_v22  ;;  %v2805_v22 = vld [vmem:[%s7090_s2 + $0x108] sm:$0xff] }
  0x84   : > { %3144 = vmatpush.msra.mxu3 %v2805_v22 }
  0x8b   : > { %4117 = vmatmul.msk.f32.gmra.mxu0 %vm317_vm0, %v290_v27 }
  0x93   : > { %4118 = vmatmul.msk.f32.gmra.mxu0 %vm317_vm0, %v291_v46 }
  0x9b   : > { %4119 = vmatmul.msk.f32.gmra.mxu0 %vm317_vm0, %v292_v63 }
  0xa0   : > { %v431_v25 = vpop.f32.mrf.mxu0 }
  0xa1   : > { %v531_v26 = vmul.f32 %v4841_v23, %v431_v25 }
  0xa3   : > { %v4864_v28 = vadd.f32 %v4850_v24, %v531_v26 }
  0xa5   : > { %v4136_v29 = vmul.f32 -1.442695, %v4864_v28 }
  0xa7   : > { %4288 = vpow2.f32 %v4136_v29 }
  0xa8   : > { %v434_v30 = vpop.f32.mrf.mxu0 }
  0xa9   : > { %v532_v31 = vmul.f32 %v4841_v23, %v434_v30  ;;  %v2804_v30 = vld [vmem:[%s7090_s2 + $0x100] sm:$0xff] }
  0xaa   : > { %3145 = vmatpush.msra.mxu3 %v2804_v30 }
  0xab   : > { %v4887_v33 = vadd.f32 %v4850_v24, %v532_v31 }
  0xad   : > { %v4289_v34 = vpop.eup %4288  ;;  %v4137_v35 = vmul.f32 -1.442695, %v4887_v33 }
  0xae   : > { %v695_v36 = vadd.f32 1.0, %v4289_v34 }
  0xaf   : > { %4290 = vpow2.f32 %v4137_v35 }
  0xb0   : > { %4292 = vrcp.f32 %v695_v36  ;;  %v437_v37 = vpop.f32.mrf.mxu0  ;;  %v738_v50 = vand.u32 2147483648, %v695_v36  ;;  %v736_v52 = vand.u32 2147483647, %v695_v36  ;;  %vm732_vm4 = vweird.f32 %v695_v36 }
  0xb1   : > { %v533_v38 = vmul.f32 %v4841_v23, %v437_v37 }
  0xb2   : > { %v739_v59 = vor.u32 1.1754944e-38, %v738_v50  ;;  %vm737_vm6 = vcmp.eq.f32.partialorder %v736_v52, 8.507059e+37 }
  0xb3   : > { %v4909_v39 = vadd.f32 %v4850_v24, %v533_v38 }
  0xb5   : > { %v4291_v40 = vpop.eup %4290  ;;  %v4138_v41 = vmul.f32 -1.442695, %v4909_v39 }
  0xb6   : > { %v4293_v42 = vpop.eup %4292  ;;  %v4916_v43 = vadd.f32 1.0, %v4291_v40 }
  0xb7   : > { %v728_v44 = vmul.f32 %v4293_v42, %v695_v36  ;;  %4294 = vpow2.f32 %v4138_v41  ;;  %vm733_vm3 = vweird.f32 %v4293_v42 }
  0xb8   : > { %4296 = vrcp.f32 %v4916_v43  ;;  %v440_v47 = vpop.f32.mrf.mxu0  ;;  %vm734_vm5 = vmor %vm732_vm4, %vm733_vm3  ;;  %v753_v5 = vand.u32 2147483648, %v4916_v43  ;;  %v751_v7 = vand.u32 2147483647, %v4916_v43  ;;  %vm747_vm8 = vweird.f32 %v4916_v43 }
  0xb9   : > { %v729_v48 = vsub.f32 1.0, %v728_v44  ;;  %v534_v49 = vmul.f32 %v4841_v23, %v440_v47 }
  0xba   : > { %v754_v14 = vor.u32 1.1754944e-38, %v753_v5  ;;  %vm752_vm10 = vcmp.eq.f32.partialorder %v751_v7, 8.507059e+37 }
  0xbb   : > { %v730_v51 = vmul.f32 %v4293_v42, %v729_v48  ;;  %v4936_v53 = vadd.f32 %v4850_v24, %v534_v49 }
  0xbd   : > { %v4295_v54 = vpop.eup %4294  ;;  %v731_v55 = vadd.f32 %v4293_v42, %v730_v51  ;;  %v4139_v56 = vmul.f32 -1.442695, %v4936_v53 }
  0xbe   : > { %v4297_v58 = vpop.eup %4296  ;;  %v4945_v60 = vadd.f32 1.0, %v4295_v54 }
  0xbf   : > { %v735_v61 = vsel %vm734_vm5, %v4293_v42, %v731_v55  ;;  %v743_v62 = vmul.f32 %v4297_v58, %v4916_v43  ;;  %4298 = vpow2.f32 %v4139_v56  ;;  %vm748_vm7 = vweird.f32 %v4297_v58 }
  0xc0   : > { %v740_v0 = vsel %vm737_vm6, %v739_v59, %v735_v61  ;;  %4300 = vrcp.f32 %v4945_v60  ;;  %v443_v1 = vpop.f32.mrf.mxu0  ;;  %vm749_vm9 = vmor %vm747_vm8, %vm748_vm7  ;;  %v768_v20 = vand.u32 2147483648, %v4945_v60  ;;  %vm762_vm11 = vweird.f32 %v4945_v60 }
  0xc1   : > { %v1207_v2 = vmul.f32 %v740_v0, %v4864_v28  ;;  %v744_v3 = vsub.f32 1.0, %v743_v62  ;;  %v535_v4 = vmul.f32 %v4841_v23, %v443_v1  ;;  %v766_v32 = vand.u32 2147483647, %v4945_v60 }
  0xc2   : > { %v769_v34 = vor.u32 1.1754944e-38, %v768_v20 }
  0xc3   : > { %1296 = vst.msk [vmem:[#allocation2 + $0x19] sm:$0xff] %vm1239_vm1, %v1207_v2  ;;  %v745_v6 = vmul.f32 %v4297_v58, %v744_v3  ;;  %v4962_v8 = vadd.f32 %v4850_v24, %v535_v4  ;;  %vm767_vm14 = vcmp.eq.f32.partialorder %v766_v32, 8.507059e+37  ;;  %v293_v4 = vld [vmem:[%s4770_s17 + $0x80] sm:$0xff] }
  0xc4   : > { %4120 = vmatmul.msk.f32.gmra.mxu0 %vm317_vm0, %v293_v4 }
  0xc5   : > { %v4299_v10 = vpop.eup %4298  ;;  %v746_v11 = vadd.f32 %v4297_v58, %v745_v6  ;;  %v4140_v12 = vmul.f32 -1.442695, %v4962_v8 }
  0xc6   : > { %v4301_v13 = vpop.eup %4300  ;;  %v4969_v15 = vadd.f32 1.0, %v4299_v10 }
  0xc7   : > { %v750_v17 = vsel %vm749_vm9, %v4297_v58, %v746_v11  ;;  %v758_v18 = vmul.f32 %v4301_v13, %v4945_v60  ;;  %4302 = vpow2.f32 %v4140_v12  ;;  %vm763_vm12 = vweird.f32 %v4301_v13 }
  0xc8   : > { %v755_v19 = vsel %vm752_vm10, %v754_v14, %v750_v17  ;;  %4304 = vrcp.f32 %v4969_v15  ;;  %v446_v21 = vpop.f32.mrf.mxu0  ;;  %vm764_vm13 = vmor %vm762_vm11, %vm763_vm12  ;;  %v783_v44 = vand.u32 2147483648, %v4969_v15  ;;  %v781_v49 = vand.u32 2147483647, %v4969_v15 }
  0xc9   : > { %v1208_v25 = vmul.f32 %v755_v19, %v4887_v33  ;;  %v759_v26 = vsub.f32 1.0, %v758_v18  ;;  %v536_v27 = vmul.f32 %v4841_v23, %v446_v21  ;;  %vm777_vm15 = vweird.f32 %v4969_v15 }
  0xca   : > { %v1778_v28 = vld [vmem:[#allocation2 + $0x18] sm:$0xff]  ;;  %v784_v56 = vor.u32 1.1754944e-38, %v783_v44  ;;  %vm782_vm4 = vcmp.eq.f32.partialorder %v781_v49, 8.507059e+37 }
  0xcb   : > { %v1394_v29 = vld [vmem:[#allocation2 + $0x19] sm:$0xff]  ;;  %1297 = vst.msk [vmem:[#allocation2 + $0x21] sm:$0xff] %vm1239_vm1, %v1208_v25  ;;  %v760_v31 = vmul.f32 %v4301_v13, %v759_v26  ;;  %v4989_v33 = vadd.f32 %v4850_v24, %v536_v27  ;;  %1842 = vrot.lane.b32.xlu0 %v1778_v28, %s4653_s22  ;;  %v294_v27 = vld [vmem:[%s4770_s17 + $0x88] sm:$0xff] }
  0xcc   : > { %1460 = vrot.lane.b32.xlu1 %v1394_v29, %s4651_s20  ;;  %1362 = vst.msk [vmem:[#allocation3 + $0x30] sm:$0xff] %vm1239_vm1, %v1778_v28  ;;  %4121 = vmatmul.msk.f32.gmra.mxu0 %vm317_vm0, %v294_v27 }
  0xcd   : > { %v4303_v35 = vpop.eup %4302  ;;  %v761_v36 = vadd.f32 %v4301_v13, %v760_v31  ;;  %v4141_v37 = vmul.f32 -1.442695, %v4989_v33  ;;  %2003 = vst.msk [vmem:[#allocation3 + $0x8] sm:$0xff] %vm1239_vm1, %v1394_v29 }
  0xce   : > { %v4305_v38 = vpop.eup %4304  ;;  %v699_v40 = vadd.f32 1.0, %v4303_v35 }
  0xcf   : > { %v765_v41 = vsel %vm764_vm13, %v4301_v13, %v761_v36  ;;  %v773_v42 = vmul.f32 %v4305_v38, %v4969_v15  ;;  %4306 = vpow2.f32 %v4141_v37  ;;  %vm778_vm2 = vweird.f32 %v4305_v38 }
  0xd0   : > { %v770_v43 = vsel %vm767_vm14, %v769_v34, %v765_v41  ;;  %4308 = vrcp.f32 %v699_v40  ;;  %v449_v45 = vpop.f32.mrf.mxu0  ;;  %vm779_vm3 = vmor %vm777_vm15, %vm778_vm2  ;;  %vm792_vm5 = vweird.f32 %v699_v40  ;;  %v796_v1 = vand.u32 2147483647, %v699_v40 }
  0xd1   : > { %v1209_v46 = vmul.f32 %v770_v43, %v4909_v39  ;;  %v774_v47 = vsub.f32 1.0, %v773_v42  ;;  %v537_v48 = vmul.f32 %v4841_v23, %v449_v45  ;;  %v798_v2 = vand.u32 2147483648, %v699_v40 }
  0xd2   : > { %v2035_v50 = vld [vmem:[#allocation2 + $0x1a] sm:$0xff]  ;;  %v5003_v51 = vld [vmem:[#allocation2 + $0x22] sm:$0xff]  ;;  %vm797_vm8 = vcmp.eq.f32.partialorder %v796_v1, 8.507059e+37 }
  0xd3   : > { %v1395_v52 = vld [vmem:[#allocation2 + $0x21] sm:$0xff]  ;;  %1298 = vst.msk [vmem:[#allocation2 + $0x31] sm:$0xff] %vm1239_vm1, %v1209_v46  ;;  %v775_v54 = vmul.f32 %v4305_v38, %v774_v47  ;;  %2099 = vrot.lane.b32.xlu0 %v2035_v50, %s4651_s20  ;;  %1655 = vrot.lane.b32.xlu2 %v5003_v51, %s4652_s8  ;;  %v5011_v39 = vadd.f32 %v4850_v24, %v537_v48  ;;  %v799_v13 = vor.u32 1.1754944e-38, %v798_v2 }
  0xd4   : > { %v5013_v55 = vld [vmem:[#allocation2 + $0x20] sm:$0xff]  ;;  %1462 = vrot.lane.b32.xlu1 %v1395_v52, %s4651_s20  ;;  %2004 = vst.msk [vmem:[#allocation3 + $0x20] sm:$0xff] %vm1239_vm1, %v1395_v52 }
  0xd5   : > { %1363 = vst.msk [vmem:[#allocation3 + $0x48] sm:$0xff] %vm1239_vm1, %v5013_v55  ;;  %v4307_v57 = vpop.eup %4306  ;;  %v776_v58 = vadd.f32 %v4305_v38, %v775_v54  ;;  %v4142_v59 = vmul.f32 -1.442695, %v5011_v39 }
  0xd6   : > { %v4309_v60 = vpop.eup %4308  ;;  %v5020_v61 = vadd.f32 1.0, %v4307_v57 }
  0xd7   : > { %v780_v62 = vsel %vm779_vm3, %v4305_v38, %v776_v58  ;;  %v788_v63 = vmul.f32 %v4309_v60, %v699_v40  ;;  %4310 = vpow2.f32 %v4142_v59  ;;  %vm793_vm6 = vweird.f32 %v4309_v60 }
  0xd8   : > { %v785_v0 = vsel %vm782_vm4, %v784_v56, %v780_v62  ;;  %4312 = vrcp.f32 %v5020_v61  ;;  %v452_v3 = vpop.f32.mrf.mxu0  ;;  %vm5035_vm7 = vmor %vm792_vm5, %vm793_vm6  ;;  %vm807_vm9 = vweird.f32 %v5020_v61  ;;  %v811_v22 = vand.u32 2147483647, %v5020_v61 }
  0xd9   : > { %v1210_v5 = vmul.f32 %v785_v0, %v4936_v53  ;;  %v789_v6 = vsub.f32 1.0, %v788_v63  ;;  %v538_v7 = vmul.f32 %v4841_v23, %v452_v3  ;;  %v813_v25 = vand.u32 2147483648, %v5020_v61 }
  0xda   : > { %v1396_v9 = vld [vmem:[#allocation2 + $0x31] sm:$0xff]  ;;  %vm812_vm12 = vcmp.eq.f32.partialorder %v811_v22, 8.507059e+37 }
  0xdb   : > { %v5027_v10 = vld [vmem:[#allocation2 + $0x30] sm:$0xff]  ;;  %1299 = vst.msk [vmem:[#allocation2 + $0x39] sm:$0xff] %vm1239_vm1, %v1210_v5  ;;  %v790_v11 = vmul.f32 %v4309_v60, %v789_v6  ;;  %1464 = vrot.lane.b32.xlu2 %v1396_v9, %s4651_s20  ;;  %v5032_v12 = vadd.f32 %v4850_v24, %v538_v7  ;;  %v814_v38 = vor.u32 1.1754944e-38, %v813_v25 }
  0xdc   : > { %1653 = vrot.lane.b32.xlu1 %v2035_v50, %s4652_s8  ;;  %1364 = vst.msk [vmem:[#allocation3 + $0x60] sm:$0xff] %vm1239_vm1, %v5027_v10 }
  0xdd   : > { %v4311_v14 = vpop.eup %4310  ;;  %v791_v15 = vadd.f32 %v4309_v60, %v790_v11  ;;  %v4143_v16 = vmul.f32 -1.442695, %v5032_v12  ;;  %2005 = vst.msk [vmem:[#allocation3 + $0x38] sm:$0xff] %vm1239_vm1, %v1396_v9 }
  0xde   : > { %v4313_v17 = vpop.eup %4312  ;;  %v5044_v18 = vadd.f32 1.0, %v4311_v14 }
  0xdf   : > { %v795_v19 = vsel %vm5035_vm7, %v4309_v60, %v791_v15  ;;  %v803_v20 = vmul.f32 %v4313_v17, %v5020_v61  ;;  %4314 = vpow2.f32 %v4143_v16  ;;  %vm808_vm10 = vweird.f32 %v4313_v17 }
  0xe0   : > { %v800_v21 = vsel %vm797_vm8, %v799_v13, %v795_v19  ;;  %4316 = vrcp.f32 %v5044_v18  ;;  %v455_v26 = vpop.f32.mrf.mxu0  ;;  %vm5074_vm11 = vmor %vm807_vm9, %vm808_vm10  ;;  %vm822_vm13 = vweird.f32 %v5044_v18  ;;  %v826_v48 = vand.u32 2147483647, %v5044_v18 }
  0xe1   : > { %v1211_v28 = vmul.f32 %v800_v21, %v4962_v8  ;;  %v804_v29 = vsub.f32 1.0, %v803_v20  ;;  %v539_v30 = vmul.f32 %v4841_v23, %v455_v26  ;;  %v828_v49 = vand.u32 2147483648, %v5044_v18 }
  0xe2   : > { %v5057_v31 = vld [vmem:[#allocation2 + $0x39] sm:$0xff]  ;;  %vm827_vm2 = vcmp.eq.f32.partialorder %v826_v48, 8.507059e+37 }
  0xe3   : > { %v5059_v32 = vld [vmem:[#allocation2 + $0x32] sm:$0xff]  ;;  %v5061_v34 = vld [vmem:[#allocation2 + $0x3a] sm:$0xff]  ;;  %1300 = vst.msk [vmem:[#allocation2 + $0x49] sm:$0xff] %vm1239_vm1, %v1211_v28  ;;  %v805_v35 = vmul.f32 %v4313_v17, %v804_v29  ;;  %2484 = vrot.lane.b32.xlu2 %v1396_v9, %s4653_s22  ;;  %2486 = vrot.lane.b32.xlu0 %v5057_v31, %s4653_s22  ;;  %v5070_v36 = vadd.f32 %v4850_v24, %v539_v30  ;;  %v829_v61 = vor.u32 1.1754944e-38, %v828_v49 }
  0xe4   : > { %v5067_v8 = vld [vmem:[#allocation2 + $0x38] sm:$0xff]  ;;  %2101 = vrot.lane.b32.xlu1 %v5003_v51, %s4651_s20  ;;  %2644 = vst.msk [vmem:[#allocation3 + $0x10] sm:$0xff] %vm1239_vm1, %v5059_v32  ;;  %v295_v28 = vld [vmem:[%s4770_s17 + $0x90] sm:$0xff] }
  0xe5   : > { %v4315_v40 = vpop.eup %4314  ;;  %v806_v41 = vadd.f32 %v4313_v17, %v805_v35  ;;  %2645 = vst.msk [vmem:[#allocation3 + $0x28] sm:$0xff] %vm1239_vm1, %v5061_v34  ;;  %v4144_v42 = vmul.f32 -1.442695, %v5070_v36  ;;  %4122 = vmatmul.msk.f32.gmra.mxu0 %vm317_vm0, %v295_v28 }
  0xe6   : > { %v4317_v43 = vpop.eup %4316  ;;  %v5085_v44 = vadd.f32 1.0, %v4315_v40  ;;  %1365 = vst.msk [vmem:[#allocation3 + $0x78] sm:$0xff] %vm1239_vm1, %v5067_v8 }
  0xe7   : > { %v810_v45 = vsel %vm5074_vm11, %v4313_v17, %v806_v41  ;;  %v818_v46 = vmul.f32 %v4317_v43, %v5044_v18  ;;  %4318 = vpow2.f32 %v4144_v42  ;;  %2006 = vst.msk [vmem:[#allocation3 + $0x50] sm:$0xff] %vm1239_vm1, %v5057_v31  ;;  %vm823_vm14 = vweird.f32 %v4317_v43 }
  0xe8   : > { %v815_v47 = vsel %vm812_vm12, %v814_v38, %v810_v45  ;;  %4320 = vrcp.f32 %v5085_v44  ;;  %v458_v50 = vpop.f32.mrf.mxu0  ;;  %vm5112_vm15 = vmor %vm822_vm13, %vm823_vm14  ;;  %vm837_vm3 = vweird.f32 %v5085_v44  ;;  %v843_v5 = vand.u32 2147483648, %v5085_v44 }
  0xe9   : > { %v1212_v51 = vmul.f32 %v815_v47, %v4989_v33  ;;  %v819_v52 = vsub.f32 1.0, %v818_v46  ;;  %v540_v54 = vmul.f32 %v4841_v23, %v458_v50  ;;  %v841_v9 = vand.u32 2147483647, %v5085_v44  ;;  %v296_v50 = vld [vmem:[%s4770_s17 + $0x98] sm:$0xff] }
  0xea   : > { %v5100_v56 = vld [vmem:[#allocation2 + $0x48] sm:$0xff]  ;;  %v844_v16 = vor.u32 1.1754944e-38, %v843_v5 }
  0xeb   : > { %v1975_v57 = vld [vmem:[#allocation2 + $0x49] sm:$0xff]  ;;  %1301 = vst.msk [vmem:[#allocation2 + $0x51] sm:$0xff] %vm1239_vm1, %v1212_v51  ;;  %v820_v58 = vmul.f32 %v4317_v43, %v819_v52  ;;  %1846 = vrot.lane.b32.xlu2 %v5027_v10, %s4653_s22  ;;  %v2678_v59 = vld [vmem:[#allocation3 + $0x10] sm:$0xff]  ;;  %2105 = vrot.lane.b32.xlu0 %v5061_v34, %s4651_s20  ;;  %v5108_v60 = vadd.f32 %v4850_v24, %v540_v54  ;;  %vm842_vm6 = vcmp.eq.f32.partialorder %v841_v9, 8.507059e+37 }
  0xec   : > { %1844 = vrot.lane.b32.xlu1 %v5013_v55, %s4653_s22  ;;  %4168 = vmatmul.msk.f32.vlgmr.msra.gmra.mxu3 %vm1239_vm1, %v2678_v59  ;;  %1366 = vst.msk [vmem:[#allocation3 + $0x90] sm:$0xff] %vm1239_vm1, %v5100_v56  ;;  %v2681_v14 = vld [vmem:[#allocation3 + $0x28] sm:$0xff]  ;;  %v2785_v9 = vld [vmem:[%s7090_s2 + $0x68] sm:$0xff] }
  0xed   : > { %v4319_v62 = vpop.eup %4318  ;;  %v821_v63 = vadd.f32 %v4317_v43, %v820_v58  ;;  %v4145_v0 = vmul.f32 -1.442695, %v5108_v60  ;;  %2007 = vst.msk [vmem:[#allocation3 + $0x68] sm:$0xff] %vm1239_vm1, %v1975_v57  ;;  %4123 = vmatmul.msk.f32.gmra.mxu0 %vm317_vm0, %v296_v50  ;;  %v1650_v50 = vpop.permute.xlu2 %1649 }
  0xee   : > { %v4321_v1 = vpop.eup %4320  ;;  %v5123_v2 = vadd.f32 1.0, %v4319_v62 }
  0xef   : > { %v825_v3 = vsel %vm5112_vm15, %v4317_v43, %v821_v63  ;;  %v833_v55 = vmul.f32 %v4321_v1, %v5085_v44  ;;  %4322 = vpow2.f32 %v4145_v0  ;;  %vm838_vm4 = vweird.f32 %v4321_v1 }
  0xf0   : > { %v830_v4 = vsel %vm827_vm2, %v829_v61, %v825_v3  ;;  %4324 = vrcp.f32 %v5123_v2  ;;  %vm5146_vm5 = vmor %vm837_vm3, %vm838_vm4  ;;  %v461_v18 = vpop.f32.mrf.mxu0  ;;  %vm852_vm7 = vweird.f32 %v5123_v2  ;;  %v856_v30 = vand.u32 2147483647, %v5123_v2  ;;  %v2422_v61 = vld [vmem:[#allocation2 + $0x49] sm:$0xff] }
  0xf1   : > { %v1213_v6 = vmul.f32 %v830_v4, %v5011_v39  ;;  %v834_v7 = vsub.f32 1.0, %v833_v55  ;;  %v541_v21 = vmul.f32 %v4841_v23, %v461_v18  ;;  %v1328_v55 = vld [vmem:[#allocation2] sm:$0xff]  ;;  %v2787_v4 = vld [vmem:[%s7090_s2 + $0x78] sm:$0xff]  ;;  %vm1552_vm15 = vcmask 523520   ;;  %v1457_v39 = vpop.permute.xlu0 %1456 }
  0xf2   : > { %v5133_v11 = vld [vmem:[#allocation2 + $0x4a] sm:$0xff]  ;;  %v5135_v53 = vld [vmem:[#allocation2 + $0x52] sm:$0xff]  ;;  %vm857_vm10 = vcmp.eq.f32.partialorder %v856_v30, 8.507059e+37  ;;  %2904 = vmatpush.msra.mxu1 %v2787_v4  ;;  %1360 = vst.msk [vmem:[#allocation3] sm:$0xff] %vm1239_vm1, %v1328_v55 }
  0xf3   : > { %1302 = vst.msk [vmem:[#allocation2 + $0x61] sm:$0xff] %vm1239_vm1, %v1213_v6  ;;  %v835_v13 = vmul.f32 %v4321_v1, %v834_v7  ;;  %1848 = vrot.lane.b32.xlu0 %v5067_v8, %s4653_s22  ;;  %1466 = vrot.lane.b32.xlu2 %v5057_v31, %s4651_s20  ;;  %v5142_v15 = vld [vmem:[#allocation2 + $0x50] sm:$0xff]  ;;  %v5169_v27 = vadd.f32 %v4850_v24, %v541_v21  ;;  %v858_v31 = vand.u32 2147483648, %v5123_v2  ;;  %v2783_v30 = vld [vmem:[%s7090_s2 + $0x58] sm:$0xff] }
  0xf4   : > { %2292 = vrot.lane.b32.xlu1 %v5027_v10, %s4652_s8  ;;  %4169 = vmatmul.msk.f32.gmra.mxu3 %vm1239_vm1, %v2681_v14  ;;  %2646 = vst.msk [vmem:[#allocation3 + $0x40] sm:$0xff] %vm1239_vm1, %v5133_v11  ;;  %v5155_v17 = vld [vmem:[#allocation2 + $0x51] sm:$0xff] }
  0xf5   : > { %v4323_v19 = vpop.eup %4322  ;;  %v836_v20 = vadd.f32 %v4321_v1, %v835_v13  ;;  %2647 = vst.msk [vmem:[#allocation3 + $0x58] sm:$0xff] %vm1239_vm1, %v5135_v53  ;;  %v4146_v38 = vmul.f32 -1.442695, %v5169_v27  ;;  %v859_v44 = vor.u32 1.1754944e-38, %v858_v31  ;;  %v2786_v6 = vld [vmem:[%s7090_s2 + $0x70] sm:$0xff] }
  0xf6   : > { %v4325_v22 = vpop.eup %4324  ;;  %v5160_v25 = vadd.f32 1.0, %v4323_v19  ;;  %1367 = vst.msk [vmem:[#allocation3 + $0xa8] sm:$0xff] %vm1239_vm1, %v5142_v15  ;;  %2905 = vmatpush.msra.mxu1 %v2786_v6  ;;  %v2782_v31 = vld [vmem:[%s7090_s2 + $0x50] sm:$0xff] }
  0xf7   : > { %v840_v10 = vsel %vm5146_vm5, %v4321_v1, %v836_v20  ;;  %v848_v26 = vmul.f32 %v4325_v22, %v5123_v2  ;;  %2008 = vst.msk [vmem:[#allocation3 + $0x80] sm:$0xff] %vm1239_vm1, %v5155_v17  ;;  %vm853_vm8 = vweird.f32 %v4325_v22  ;;  %v2779_v2 = vld [vmem:[%s7090_s2 + $0x38] sm:$0xff]  ;;  %v2778_v4 = vld [vmem:[%s7090_s2 + $0x30] sm:$0xff] }
  0xf8   : > { %v845_v29 = vsel %vm842_vm6, %v844_v16, %v840_v10  ;;  %4326 = vrcp.f32 %v5160_v25  ;;  %vm5191_vm9 = vmor %vm852_vm7, %vm853_vm8  ;;  %v464_v45 = vpop.f32.mrf.mxu0  ;;  %vm867_vm11 = vweird.f32 %v5160_v25  ;;  %v873_v52 = vand.u32 2147483648, %v5160_v25  ;;  %1553 = vst.msk [vmem:[#allocation3] sm:$0xff] %vm1552_vm15, %v1457_v39  ;;  %2906 = vmatpush.msra.mxu1 %v2785_v9  ;;  %v2777_v9 = vld [vmem:[%s7090_s2 + $0x28] sm:$0xff] }
  0xf9   : > { %v1214_v35 = vmul.f32 %v845_v29, %v5032_v12  ;;  %v849_v37 = vsub.f32 1.0, %v848_v26  ;;  %4328 = vpow2.f32 %v4146_v38  ;;  %v871_v59 = vand.u32 2147483647, %v5160_v25  ;;  %v2784_v26 = vld [vmem:[%s7090_s2 + $0x60] sm:$0xff]  ;;  %v1329_v29 = vld [vmem:[#allocation2 + $0x8] sm:$0xff] }
  0xfa   : > { %v5180_v40 = vld [vmem:[#allocation2 + $0x61] sm:$0xff]  ;;  %v874_v3 = vor.u32 1.1754944e-38, %v873_v52  ;;  %2907 = vmatpush.msra.mxu1 %v2784_v26  ;;  %1361 = vst.msk [vmem:[#allocation3 + $0x18] sm:$0xff] %vm1239_vm1, %v1329_v29  ;;  %vm1745_vm7 = vcmask 785920  }
  0xfb   : > { %v5182_v41 = vld [vmem:[#allocation2 + $0x60] sm:$0xff]  ;;  %1303 = vst.msk [vmem:[#allocation2 + $0x69] sm:$0xff] %vm1239_vm1, %v1214_v35  ;;  %v850_v42 = vmul.f32 %v4325_v22, %v849_v37  ;;  %1659 = vrot.lane.b32.xlu0 %v5061_v34, %s4652_s8  ;;  %2294 = vrot.lane.b32.xlu2 %v5067_v8, %s4652_s8  ;;  %v2684_v43 = vld [vmem:[#allocation3 + $0x40] sm:$0xff]  ;;  %v542_v8 = vmul.f32 %v4841_v23, %v464_v45  ;;  %vm872_vm14 = vcmp.eq.f32.partialorder %v871_v59, 8.507059e+37  ;;  %v2781_v45 = vld [vmem:[%s7090_s2 + $0x48] sm:$0xff] }
  0xfc   : > { %1657 = vrot.lane.b32.xlu1 %v5059_v32, %s4652_s8  ;;  %4170 = vmatmul.msk.f32.gmra.mxu3 %vm1239_vm1, %v2684_v43  ;;  %1368 = vst.msk [vmem:[#allocation3 + $0xc0] sm:$0xff] %vm1239_vm1, %v5182_v41 }
  0xfd   : > { %v851_v34 = vadd.f32 %v4325_v22, %v850_v42  ;;  %2009 = vst.msk [vmem:[#allocation3 + $0x98] sm:$0xff] %vm1239_vm1, %v5180_v40  ;;  %v5207_v49 = vadd.f32 %v4850_v24, %v542_v8  ;;  %2908 = vmatpush.msra.mxu1 %v2783_v30 }
  0xfe   : > { %v4327_v46 = vpop.eup %4326  ;;  %1746 = vst.msk [vmem:[#allocation3] sm:$0xff] %vm1745_vm7, %v1650_v50 }
  0xff   : > { %v855_v47 = vsel %vm5191_vm9, %v4325_v22, %v851_v34  ;;  %v863_v48 = vmul.f32 %v4327_v46, %v5160_v25  ;;  %vm868_vm12 = vweird.f32 %v4327_v46  ;;  %v4329_v54 = vpop.eup %4328  ;;  %v4147_v33 = vmul.f32 -1.442695, %v5207_v49  ;;  %2909 = vmatpush.msra.mxu1 %v2782_v31 }
 0x100   : > { %v860_v51 = vsel %vm857_vm10, %v859_v44, %v855_v47  ;;  %v5218_v63 = vadd.f32 1.0, %v4329_v54  ;;  %vm5225_vm13 = vmor %vm867_vm11, %vm868_vm12 }
 0x101   : > { %v1215_v57 = vmul.f32 %v860_v51, %v5070_v36  ;;  %v864_v58 = vsub.f32 1.0, %v863_v48  ;;  %v2687_v36 = vld [vmem:[#allocation3 + $0x58] sm:$0xff]  ;;  %4330 = vpow2.f32 %v4147_v33  ;;  %v2780_v51 = vld [vmem:[%s7090_s2 + $0x40] sm:$0xff]  ;;  %2910 = vmatpush.msra.mxu1 %v2781_v45  ;;  %v467_v33 = vpop.f32.mrf.mxu0 }
 0x102   : > { %v5216_v62 = vld [vmem:[#allocation2 + $0x62] sm:$0xff]  ;;  %v5220_v0 = vld [vmem:[#allocation2 + $0x6a] sm:$0xff]  ;;  %4332 = vrcp.f32 %v5218_v63  ;;  %v888_v10 = vand.u32 2147483648, %v5218_v63  ;;  %vm882_vm2 = vweird.f32 %v5218_v63 }
 0x103   : > { %1304 = vst.msk [vmem:[#allocation2 + $0x79] sm:$0xff] %vm1239_vm1, %v1215_v57  ;;  %v865_v1 = vmul.f32 %v4327_v46, %v864_v58  ;;  %2103 = vrot.lane.b32.xlu2 %v5059_v32, %s4651_s20  ;;  %1468 = vrot.lane.b32.xlu0 %v2422_v61, %s4651_s20  ;;  %v5240_v32 = vld [vmem:[#allocation2 + $0x68] sm:$0xff] }
 0x104   : > { %2488 = vrot.lane.b32.xlu1 %v2422_v61, %s4653_s22  ;;  %4171 = vmatmul.msk.f32.gmra.mxu3 %vm1239_vm1, %v2687_v36  ;;  %2648 = vst.msk [vmem:[#allocation3 + $0x70] sm:$0xff] %vm1239_vm1, %v5216_v62  ;;  %v1978_v7 = vld [vmem:[#allocation2 + $0x69] sm:$0xff]  ;;  %v889_v38 = vor.u32 1.1754944e-38, %v888_v10  ;;  %v1459_v10 = vpop.permute.xlu0 %1458 }
 0x105   : > { %v866_v5 = vadd.f32 %v4327_v46, %v865_v1  ;;  %2649 = vst.msk [vmem:[#allocation3 + $0x88] sm:$0xff] %vm1239_vm1, %v5220_v0  ;;  %2911 = vmatpush.msra.mxu1 %v2780_v51  ;;  %v297_v1 = vld [vmem:[%s4770_s17 + $0xa0] sm:$0xff] }
 0x106   : > { %1369 = vst.msk [vmem:[#allocation3 + $0xd8] sm:$0xff] %vm1239_vm1, %v5240_v32  ;;  %4124 = vmatmul.msk.f32.gmra.mxu0 %vm317_vm0, %v297_v1 }
 0x107   : > { %v870_v13 = vsel %vm5225_vm13, %v4327_v46, %v866_v5  ;;  %2010 = vst.msk [vmem:[#allocation3 + $0xb0] sm:$0xff] %vm1239_vm1, %v1978_v7  ;;  %v4331_v16 = vpop.eup %4330  ;;  %2912 = vmatpush.msra.mxu1 %v2779_v2 }
 0x108   : > { %v875_v14 = vsel %vm872_vm14, %v874_v3, %v870_v13  ;;  %v4333_v19 = vpop.eup %4332  ;;  %v5258_v20 = vadd.f32 1.0, %v4331_v16  ;;  %v298_v16 = vld [vmem:[%s4770_s17 + $0xa8] sm:$0xff]  ;;  %1554 = vst.msk [vmem:[#allocation3 + $0x18] sm:$0xff] %vm1552_vm15, %v1459_v10 }
 0x109   : > { %v1216_v18 = vmul.f32 %v875_v14, %v5108_v60  ;;  %v878_v60 = vmul.f32 %v4333_v19, %v5218_v63  ;;  %vm883_vm3 = vweird.f32 %v4333_v19  ;;  %2913 = vmatpush.msra.mxu1 %v2778_v4  ;;  %v2776_v14 = vld [vmem:[%s7090_s2 + $0x20] sm:$0xff] }
 0x10a   : > { %v5260_v21 = vld [vmem:[#allocation2 + $0x79] sm:$0xff]  ;;  %4334 = vrcp.f32 %v5258_v20  ;;  %vm5288_vm4 = vmor %vm882_vm2, %vm883_vm3  ;;  %vm897_vm6 = vweird.f32 %v5258_v20  ;;  %v901_v57 = vand.u32 2147483647, %v5258_v20 }
 0x10b   : > { %v1338_v22 = vld [vmem:[#allocation2 + $0x78] sm:$0xff]  ;;  %1305 = vst.msk [vmem:[#allocation2 + $0x81] sm:$0xff] %vm1239_vm1, %v1216_v18  ;;  %1850 = vrot.lane.b32.xlu2 %v5100_v56, %s4653_s22  ;;  %2296 = vrot.lane.b32.xlu0 %v5100_v56, %s4652_s8  ;;  %v2690_v25 = vld [vmem:[#allocation3 + $0x70] sm:$0xff]  ;;  %v879_v28 = vsub.f32 1.0, %v878_v60  ;;  %v886_v56 = vand.u32 2147483647, %v5218_v63  ;;  %v543_v63 = vmul.f32 %v4841_v23, %v467_v33 }
 0x10c   : > { %1470 = vrot.lane.b32.xlu1 %v5155_v17, %s4651_s20  ;;  %4172 = vmatmul.msk.f32.gmra.mxu3 %vm1239_vm1, %v2690_v25  ;;  %1370 = vst.msk [vmem:[#allocation3 + $0xf0] sm:$0xff] %vm1239_vm1, %v1338_v22  ;;  %v2693_v43 = vld [vmem:[#allocation3 + $0x88] sm:$0xff]  ;;  %vm902_vm10 = vcmp.eq.f32.partialorder %v901_v57, 8.507059e+37  ;;  %v2773_v25 = vld [vmem:[%s7090_s2 + $0x8] sm:$0xff]  ;;  %v1652_v45 = vpop.permute.xlu0 %1651  ;;  %v5446_v33 = vld [vmem:[%s7091_s3] ss:$0 sm:$0xff] }
 0x10d   : > { %2011 = vst.msk [vmem:[#allocation3 + $0xc8] sm:$0xff] %vm1239_vm1, %v5260_v21  ;;  %v880_v35 = vmul.f32 %v4333_v19, %v879_v28  ;;  %vm887_vm5 = vcmp.eq.f32.partialorder %v886_v56, 8.507059e+37  ;;  %v5340_v55 = vadd.f32 %v4850_v24, %v543_v63  ;;  %2914 = vmatpush.msra.mxu1 %v2777_v9  ;;  %v1401_v60 = vld [vmem:[#allocation2 + $0x69] sm:$0xff]  ;;  %v5459_v4 = vld [vmem:[%s7092_s4] ss:$0 sm:$0xff]  ;;  %v5469_v9 = vld [vmem:[#allocation2 + $0x78] sm:$0xff] }
 0x10e   : > { %4125 = vmatmul.msk.f32.gmra.mxu0 %vm317_vm0, %v298_v16  ;;  %1747 = vst.msk [vmem:[#allocation3 + $0x18] sm:$0xff] %vm1745_vm7, %v1652_v45  ;;  %v2793_v45 = vld [vmem:[%s7090_s2 + $0xa8] sm:$0xff] }
 0x10f   : > { %v881_v42 = vadd.f32 %v4333_v19, %v880_v35  ;;  %v4148_v7 = vmul.f32 -1.442695, %v5340_v55  ;;  %2915 = vmatpush.msra.mxu1 %v2776_v14  ;;  %v2799_v14 = vld [vmem:[%s7090_s2 + $0xd8] sm:$0xff] }
 0x110   : > { %v4335_v12 = vpop.eup %4334 }
 0x111   : > { %v885_v34 = vsel %vm5288_vm4, %v4333_v19, %v881_v42  ;;  %v893_v8 = vmul.f32 %v4335_v12, %v5258_v20  ;;  %vm898_vm8 = vweird.f32 %v4335_v12  ;;  %4336 = vpow2.f32 %v4148_v7  ;;  %v299_v7 = vld [vmem:[%s4770_s17 + $0xb0] sm:$0xff] }
 0x112   : > { %v5292_v44 = vld [vmem:[#allocation2 + $0x7a] sm:$0xff]  ;;  %v5306_v46 = vld [vmem:[#allocation2 + $0x82] sm:$0xff]  ;;  %v890_v48 = vsel %vm887_vm5, %v889_v38, %v885_v34  ;;  %vm5328_vm9 = vmor %vm897_vm6, %vm898_vm8  ;;  %vm1938_vm4 = vcmask 1048320  }
 0x113   : > { %2490 = vrot.lane.b32.xlu2 %v5155_v17, %s4653_s22  ;;  %2109 = vrot.lane.b32.xlu0 %v5135_v53, %s4651_s20  ;;  %2650 = vst.msk [vmem:[#allocation3 + $0xa0] sm:$0xff] %vm1239_vm1, %v5292_v44  ;;  %v5308_v47 = vld [vmem:[#allocation2 + $0x80] sm:$0xff]  ;;  %v903_v17 = vand.u32 2147483648, %v5258_v20  ;;  %v1217_v52 = vmul.f32 %v890_v48, %v5169_v27  ;;  %v894_v54 = vsub.f32 1.0, %v893_v8 }
 0x114   : > { %2298 = vrot.lane.b32.xlu1 %v5142_v15, %s4652_s8  ;;  %4173 = vmatmul.msk.f32.gmra.mxu3 %vm1239_vm1, %v2693_v43  ;;  %2651 = vst.msk [vmem:[#allocation3 + $0xb8] sm:$0xff] %vm1239_vm1, %v5306_v46  ;;  %v1980_v58 = vld [vmem:[#allocation2 + $0x81] sm:$0xff]  ;;  %v2803_v43 = vld [vmem:[%s7090_s2 + $0xf8] sm:$0xff] }
 0x115   : > { %1371 = vst.msk [vmem:[#allocation3 + $0x108] sm:$0xff] %vm1239_vm1, %v5308_v47  ;;  %v895_v59 = vmul.f32 %v4335_v12, %v894_v54  ;;  %v904_v61 = vor.u32 1.1754944e-38, %v903_v17  ;;  %3017 = vmatpush.msra.mxu2 %v2803_v43 }
 0x116   : > { %1306 = vst.msk [vmem:[#allocation2 + $0x91] sm:$0xff] %vm1239_vm1, %v1217_v52  ;;  %4126 = vmatmul.msk.f32.gmra.mxu0 %vm317_vm0, %v299_v7  ;;  %v2788_v7 = vld [vmem:[%s7090_s2 + $0x80] sm:$0xff] }
 0x117   : > { %2012 = vst.msk [vmem:[#allocation3 + $0xe0] sm:$0xff] %vm1239_vm1, %v1980_v58  ;;  %v896_v36 = vadd.f32 %v4335_v12, %v895_v59  ;;  %v4337_v20 = vpop.eup %4336 }
 0x118   : > { %v707_v22 = vadd.f32 1.0, %v4337_v20 }
 0x119   : > { %v900_v5 = vsel %vm5328_vm9, %v4335_v12, %v896_v36  ;;  %v2802_v12 = vld [vmem:[%s7090_s2 + $0xf0] sm:$0xff] }
 0x11a   : > { %v2696_v3 = vld [vmem:[#allocation3 + $0xa0] sm:$0xff]  ;;  %v905_v6 = vsel %vm902_vm10, %v904_v61, %v900_v5  ;;  %v918_v37 = vand.u32 2147483648, %v707_v22  ;;  %vm912_vm11 = vweird.f32 %v707_v22  ;;  %3018 = vmatpush.msra.mxu2 %v2802_v12  ;;  %v2801_v61 = vld [vmem:[%s7090_s2 + $0xe8] sm:$0xff] }
 0x11b   : > { %1661 = vrot.lane.b32.xlu2 %v5133_v11, %s4652_s8  ;;  %2492 = vrot.lane.b32.xlu0 %v5180_v40, %s4653_s22  ;;  %v1218_v13 = vmul.f32 %v905_v6, %v5207_v49  ;;  %v2699_v18 = vld [vmem:[#allocation3 + $0xb8] sm:$0xff]  ;;  %v2775_v49 = vld [vmem:[%s7090_s2 + $0x18] sm:$0xff]  ;;  %v2800_v6 = vld [vmem:[%s7090_s2 + $0xe0] sm:$0xff] }
 0x11c   : > { %2107 = vrot.lane.b32.xlu1 %v5133_v11, %s4651_s20  ;;  %4174 = vmatmul.msk.f32.gmra.mxu3 %vm1239_vm1, %v2696_v3  ;;  %v470_v11 = vpop.f32.mrf.mxu0  ;;  %v919_v50 = vor.u32 1.1754944e-38, %v918_v37 }
 0x11d   : > { %1307 = vst.msk [vmem:[#allocation2 + $0x99] sm:$0xff] %vm1239_vm1, %v1218_v13  ;;  %v544_v39 = vmul.f32 %v4841_v23, %v470_v11  ;;  %2916 = vmatpush.msra.mxu1 %v2775_v49  ;;  %v5393_v26 = vld [vmem:[#allocation2 + $0x90] sm:$0xff]  ;;  %3019 = vmatpush.msra.mxu2 %v2801_v61 }
 0x11e   : > { %v1981_v56 = vld [vmem:[#allocation2 + $0x91] sm:$0xff]  ;;  %1372 = vst.msk [vmem:[#allocation3 + $0x120] sm:$0xff] %vm1239_vm1, %v5393_v26 }
 0x11f   : > { %v5367_v19 = vadd.f32 %v4850_v24, %v544_v39  ;;  %v2774_v24 = vld [vmem:[%s7090_s2 + $0x10] sm:$0xff]  ;;  %2013 = vst.msk [vmem:[#allocation3 + $0xf8] sm:$0xff] %vm1239_vm1, %v1981_v56  ;;  %3020 = vmatpush.msra.mxu2 %v2800_v6 }
 0x120   : > { %2917 = vmatpush.msra.mxu1 %v2774_v24 }
 0x121   : > { %v4149_v23 = vmul.f32 -1.442695, %v5367_v19  ;;  %3021 = vmatpush.msra.mxu2 %v2799_v14 }
 0x122   : > { %2918 = vmatpush.msra.mxu1 %v2773_v25  ;;  %v2797_v25 = vld [vmem:[%s7090_s2 + $0xc8] sm:$0xff] }
 0x123   : > { %1854 = vrot.lane.b32.xlu0 %v5182_v41, %s4653_s22  ;;  %1472 = vrot.lane.b32.xlu2 %v5180_v40, %s4651_s20  ;;  %4338 = vpow2.f32 %v4149_v23 }
 0x124   : > { %1852 = vrot.lane.b32.xlu1 %v5142_v15, %s4653_s22  ;;  %4175 = vmatmul.msk.f32.gmra.mxu3 %vm1239_vm1, %v2699_v18  ;;  %4340 = vrcp.f32 %v707_v22  ;;  %v2772_v15 = vld [vmem:[%s7090_s2] sm:$0xff]  ;;  %v5389_v40 = vld [vmem:[#allocation2 + $0x92] sm:$0xff]  ;;  %v473_v57 = vpop.f32.mrf.mxu0 }
 0x125   : > { %2652 = vst.msk [vmem:[#allocation3 + $0xd0] sm:$0xff] %vm1239_vm1, %v5389_v40  ;;  %v5395_v28 = vld [vmem:[#allocation2 + $0x98] sm:$0xff]  ;;  %2919 = vmatpush.msra.mxu1 %v2772_v15  ;;  %v545_v27 = vmul.f32 %v5446_v33, %v473_v57 }
 0x126   : > { %1373 = vst.msk [vmem:[#allocation3 + $0x138] sm:$0xff] %vm1239_vm1, %v5395_v28  ;;  %v5420_v8 = vld [vmem:[#allocation2 + $0x9a] sm:$0xff] }
 0x127   : > { %v5422_v48 = vld [vmem:[#allocation2 + $0x99] sm:$0xff]  ;;  %2653 = vst.msk [vmem:[#allocation3 + $0xe8] sm:$0xff] %vm1239_vm1, %v5420_v8  ;;  %v5462_v5 = vadd.f32 %v5459_v4, %v545_v27 }
 0x128   : > { %2014 = vst.msk [vmem:[#allocation3 + $0x110] sm:$0xff] %vm1239_vm1, %v5422_v48 }
 0x129   : > { %v4339_v29 = vpop.eup %4338  ;;  %v4150_v13 = vmul.f32 -1.442695, %v5462_v5 }
 0x12a   : > { %v4341_v30 = vpop.eup %4340  ;;  %v5407_v35 = vadd.f32 1.0, %v4339_v29  ;;  %v2796_v29 = vld [vmem:[%s7090_s2 + $0xc0] sm:$0xff] }
 0x12b   : > { %2300 = vrot.lane.b32.xlu2 %v5182_v41, %s4652_s8  ;;  %1474 = vrot.lane.b32.xlu0 %v1401_v60, %s4651_s20  ;;  %v908_v41 = vmul.f32 %v4341_v30, %v707_v22  ;;  %vm913_vm12 = vweird.f32 %v4341_v30 }
 0x12c   : > { %1663 = vrot.lane.b32.xlu1 %v5135_v53, %s4652_s8  ;;  %4342 = vrcp.f32 %v5407_v35  ;;  %v916_v53 = vand.u32 2147483647, %v707_v22  ;;  %v2702_v42 = vld [vmem:[#allocation3 + $0xd0] sm:$0xff]  ;;  %vm5429_vm13 = vmor %vm912_vm11, %vm913_vm12  ;;  %vm927_vm2 = vweird.f32 %v5407_v35  ;;  %v931_v1 = vand.u32 2147483647, %v5407_v35  ;;  %v476_v22 = vpop.f32.mrf.mxu0 }
 0x12d   : > { %v5405_v31 = vpop.permute.xlu2 %1655  ;;  %v909_v38 = vsub.f32 1.0, %v908_v41  ;;  %4176 = vmatmul.msk.f32.gmra.mxu3 %vm1239_vm1, %v2702_v42  ;;  %v933_v2 = vand.u32 2147483648, %v5407_v35  ;;  %4344 = vpow2.f32 %v4150_v13  ;;  %v300_v41 = vld [vmem:[%s4770_s17 + $0xb8] sm:$0xff] }
 0x12e   : > { %vm917_vm14 = vcmp.eq.f32.partialorder %v916_v53, 8.507059e+37  ;;  %v2705_v16 = vld [vmem:[#allocation3 + $0xe8] sm:$0xff]  ;;  %vm932_vm6 = vcmp.eq.f32.partialorder %v931_v1, 8.507059e+37  ;;  %4127 = vmatmul.msk.f32.gmra.mxu0 %vm317_vm0, %v300_v41 }
 0x12f   : > { %v910_v34 = vmul.f32 %v4341_v30, %v909_v38  ;;  %v934_v39 = vor.u32 1.1754944e-38, %v933_v2  ;;  %v2795_v38 = vld [vmem:[%s7090_s2 + $0xb8] sm:$0xff]  ;;  %v301_v2 = vld [vmem:[%s4770_s17 + $0xc0] sm:$0xff] }
 0x131   : > { %v911_v51 = vadd.f32 %v4341_v30, %v910_v34  ;;  %v2792_v34 = vld [vmem:[%s7090_s2 + $0xa0] sm:$0xff] }
 0x132   : > { %v4343_v52 = vpop.eup %4342 }
 0x133   : > { %2494 = vrot.lane.b32.xlu2 %v1401_v60, %s4653_s22  ;;  %1665 = vrot.lane.b32.xlu0 %v5216_v62, %s4652_s8  ;;  %v915_v58 = vsel %vm5429_vm13, %v4341_v30, %v911_v51  ;;  %v923_v59 = vmul.f32 %v4343_v52, %v5407_v35  ;;  %vm928_vm3 = vweird.f32 %v4343_v52  ;;  %v546_v60 = vmul.f32 %v5446_v33, %v476_v22  ;;  %v4345_v30 = vpop.eup %4344  ;;  %v5511_v35 = vld [vmem:[#allocation2 + $0x81] sm:$0xff] }
 0x134   : > { %2302 = vrot.lane.b32.xlu1 %v5240_v32, %s4652_s8  ;;  %v920_v63 = vsel %vm917_vm14, %v919_v50, %v915_v58  ;;  %vm5483_vm5 = vmor %vm927_vm2, %vm928_vm3  ;;  %v2791_v50 = vld [vmem:[%s7090_s2 + $0x98] sm:$0xff] }
 0x135   : > { %v1465_v54 = vpop.permute.xlu2 %1464  ;;  %v1219_v36 = vmul.f32 %v920_v63, %v5340_v55  ;;  %v924_v3 = vsub.f32 1.0, %v923_v59  ;;  %4177 = vmatmul.msk.f32.gmra.mxu3 %vm1239_vm1, %v2705_v16  ;;  %v5505_v56 = vadd.f32 %v5459_v4, %v546_v60 }
 0x136   : > { %1557 = vst.msk [vmem:[#allocation3 + $0x60] sm:$0xff] %vm1552_vm15, %v1465_v54  ;;  %4128 = vmatmul.msk.f32.gmra.mxu0 %vm317_vm0, %v301_v2 }
 0x137   : > { %1308 = vst.msk [vmem:[#allocation2 + $0xa9] sm:$0xff] %vm1239_vm1, %v1219_v36  ;;  %v925_v55 = vmul.f32 %v4343_v52, %v924_v3  ;;  %v4151_v37 = vmul.f32 -1.442695, %v5505_v56 }
 0x139   : > { %v926_v18 = vadd.f32 %v4343_v52, %v925_v55 }
 0x13b   : > { %2111 = vrot.lane.b32.xlu2 %v5216_v62, %s4651_s20  ;;  %2304 = vrot.lane.b32.xlu0 %v5469_v9, %s4652_s8  ;;  %v2798_v62 = vld [vmem:[%s7090_s2 + $0xd0] sm:$0xff]  ;;  %v930_v24 = vsel %vm5483_vm5, %v4343_v52, %v926_v18 }
 0x13c   : > { %2113 = vrot.lane.b32.xlu1 %v5220_v0, %s4651_s20  ;;  %v935_v15 = vsel %vm932_vm6, %v934_v39, %v930_v24  ;;  %3022 = vmatpush.msra.mxu2 %v2798_v62 }
 0x13d   : > { %v1843_v49 = vpop.permute.xlu0 %1842  ;;  %v5494_v23 = vpop.permute.xlu2 %2484  ;;  %v1220_v10 = vmul.f32 %v935_v15, %v5367_v19  ;;  %v709_v19 = vadd.f32 1.0, %v4345_v30 }
 0x13e   : > { %v1461_v20 = vpop.permute.xlu1 %1460  ;;  %1939 = vst.msk [vmem:[#allocation3] sm:$0xff] %vm1938_vm4, %v1843_v49  ;;  %3023 = vmatpush.msra.mxu2 %v2797_v25  ;;  %v5561_v63 = vld [vmem:[#allocation2 + $0xa8] sm:$0xff] }
 0x13f   : > { %1555 = vst.msk [vmem:[#allocation3 + $0x30] sm:$0xff] %vm1552_vm15, %v1461_v20  ;;  %4346 = vrcp.f32 %v709_v19  ;;  %v948_v52 = vand.u32 2147483648, %v709_v19  ;;  %vm942_vm8 = vweird.f32 %v709_v19  ;;  %v946_v61 = vand.u32 2147483647, %v709_v19  ;;  %v1983_v36 = vld [vmem:[#allocation2 + $0xa9] sm:$0xff] }
 0x140   : > { %1309 = vst.msk [vmem:[#allocation2 + $0xb1] sm:$0xff] %vm1239_vm1, %v1220_v10  ;;  %3024 = vmatpush.msra.mxu2 %v2796_v29  ;;  %4348 = vpow2.f32 %v4151_v37  ;;  %v302_v29 = vld [vmem:[%s4770_s17 + $0xc8] sm:$0xff] }
 0x141   : > { %v949_v6 = vor.u32 1.1754944e-38, %v948_v52  ;;  %vm947_vm11 = vcmp.eq.f32.partialorder %v946_v61, 8.507059e+37  ;;  %1374 = vst.msk [vmem:[#allocation3 + $0x150] sm:$0xff] %vm1239_vm1, %v5561_v63  ;;  %v479_v22 = vpop.f32.mrf.mxu0  ;;  %4129 = vmatmul.msk.f32.gmra.mxu0 %vm317_vm0, %v302_v29 }
 0x142   : > { %3025 = vmatpush.msra.mxu2 %v2795_v38  ;;  %2015 = vst.msk [vmem:[#allocation3 + $0x128] sm:$0xff] %vm1239_vm1, %v1983_v36  ;;  %v547_v15 = vmul.f32 %v5446_v33, %v479_v22 }
 0x143   : > { %1856 = vrot.lane.b32.xlu2 %v5240_v32, %s4653_s22  ;;  %2498 = vrot.lane.b32.xlu0 %v5511_v35, %s4653_s22  ;;  %v2794_v32 = vld [vmem:[%s7090_s2 + $0xb0] sm:$0xff] }
 0x144   : > { %1476 = vrot.lane.b32.xlu1 %v5260_v21, %s4651_s20  ;;  %3026 = vmatpush.msra.mxu2 %v2794_v32  ;;  %v5602_v10 = vadd.f32 %v5459_v4, %v547_v15 }
 0x145   : > { %v2100_v53 = vpop.permute.xlu0 %2099  ;;  %v2676_v42 = vld [vmem:[#allocation3] sm:$0xff]  ;;  %v1847_v12 = vpop.permute.xlu2 %1846 }
 0x146   : > { %2195 = vst.msk [vmem:[#allocation3 + $0x8] sm:$0xff] %vm1552_vm15, %v2100_v53  ;;  %v1463_v43 = vpop.permute.xlu1 %1462  ;;  %2920 = vmatmul.f32.vlgmr.msra.gmra.mxu1 %v2676_v42  ;;  %3027 = vmatpush.msra.mxu2 %v2793_v45  ;;  %v4347_v17 = vpop.eup %4346  ;;  %v4152_v38 = vmul.f32 -1.442695, %v5602_v10 }
 0x147   : > { %1556 = vst.msk [vmem:[#allocation3 + $0x48] sm:$0xff] %vm1552_vm15, %v1463_v43  ;;  %v4349_v51 = vpop.eup %4348  ;;  %v5552_v57 = vld [vmem:[#allocation2 + $0xaa] sm:$0xff]  ;;  %vm943_vm9 = vweird.f32 %v4347_v17  ;;  %v5605_v30 = vld [vmem:[#allocation2 + $0xb2] sm:$0xff] }
 0x148   : > { %1749 = vst.msk [vmem:[#allocation3 + $0x48] sm:$0xff] %vm1745_vm7, %v5405_v31  ;;  %v938_v31 = vmul.f32 %v4347_v17, %v709_v19  ;;  %3028 = vmatpush.msra.mxu2 %v2792_v34  ;;  %v5547_v54 = vadd.f32 1.0, %v4349_v51  ;;  %vm5567_vm10 = vmor %vm942_vm8, %vm943_vm9  ;;  %v5575_v55 = vld [vmem:[#allocation2 + $0xb0] sm:$0xff] }
 0x149   : > { %2654 = vst.msk [vmem:[#allocation3 + $0x100] sm:$0xff] %vm1239_vm1, %v5552_v57  ;;  %v1984_v19 = vld [vmem:[#allocation2 + $0xb1] sm:$0xff] }
 0x14a   : > { %v939_v27 = vsub.f32 1.0, %v938_v31  ;;  %3029 = vmatpush.msra.mxu2 %v2791_v50  ;;  %4350 = vrcp.f32 %v5547_v54  ;;  %1375 = vst.msk [vmem:[#allocation3 + $0x168] sm:$0xff] %vm1239_vm1, %v5575_v55  ;;  %vm957_vm12 = vweird.f32 %v5547_v54  ;;  %v1404_v34 = vld [vmem:[#allocation2 + $0x91] sm:$0xff] }
 0x14b   : > { %1667 = vrot.lane.b32.xlu2 %v5220_v0, %s4652_s8  ;;  %2115 = vrot.lane.b32.xlu0 %v5292_v44, %s4651_s20  ;;  %v2790_v0 = vld [vmem:[%s7090_s2 + $0x90] sm:$0xff]  ;;  %2655 = vst.msk [vmem:[#allocation3 + $0x118] sm:$0xff] %vm1239_vm1, %v5605_v30  ;;  %4352 = vpow2.f32 %v4152_v38 }
 0x14c   : > { %2496 = vrot.lane.b32.xlu1 %v5260_v21, %s4653_s22  ;;  %v2789_v21 = vld [vmem:[%s7090_s2 + $0x88] sm:$0xff]  ;;  %v940_v1 = vmul.f32 %v4347_v17, %v939_v27  ;;  %3030 = vmatpush.msra.mxu2 %v2790_v0  ;;  %2016 = vst.msk [vmem:[#allocation3 + $0x140] sm:$0xff] %vm1239_vm1, %v1984_v19  ;;  %v303_v51 = vld [vmem:[%s4770_s17 + $0xd0] sm:$0xff] }
 0x14d   : > { %v1467_v59 = vpop.permute.xlu2 %1466  ;;  %4130 = vmatmul.msk.f32.gmra.mxu0 %vm317_vm0, %v303_v51 }
 0x14e   : > { %v1654_v58 = vpop.permute.xlu1 %1653  ;;  %1558 = vst.msk [vmem:[#allocation3 + $0x78] sm:$0xff] %vm1552_vm15, %v1467_v59  ;;  %v941_v13 = vadd.f32 %v4347_v17, %v940_v1  ;;  %3031 = vmatpush.msra.mxu2 %v2789_v21  ;;  %v304_v59 = vld [vmem:[%s4770_s17 + $0xd8] sm:$0xff] }
 0x14f   : > { %1748 = vst.msk [vmem:[#allocation3 + $0x30] sm:$0xff] %vm1745_vm7, %v1654_v58 }
 0x150   : > { %1941 = vst.msk [vmem:[#allocation3 + $0x30] sm:$0xff] %vm1938_vm4, %v1847_v12  ;;  %v945_v14 = vsel %vm5567_vm10, %v4347_v17, %v941_v13  ;;  %3032 = vmatpush.msra.mxu2 %v2788_v7  ;;  %v4351_v11 = vpop.eup %4350  ;;  %v2708_v18 = vld [vmem:[#allocation3 + $0x100] sm:$0xff] }
 0x151   : > { %v950_v39 = vsel %vm947_vm11, %v949_v6, %v945_v14  ;;  %v953_v24 = vmul.f32 %v4351_v11, %v5547_v54  ;;  %4178 = vmatmul.msk.f32.gmra.mxu3 %vm1239_vm1, %v2708_v18  ;;  %vm958_vm13 = vweird.f32 %v4351_v11  ;;  %v4353_v31 = vpop.eup %4352 }
 0x152   : > { %v1221_v62 = vmul.f32 %v950_v39, %v5462_v5  ;;  %v961_v5 = vand.u32 2147483647, %v5547_v54  ;;  %vm5613_vm14 = vmor %vm957_vm12, %vm958_vm13  ;;  %v2711_v50 = vld [vmem:[#allocation3 + $0x118] sm:$0xff] }
 0x153   : > { %1860 = vrot.lane.b32.xlu0 %v5308_v47, %s4653_s22  ;;  %1478 = vrot.lane.b32.xlu2 %v5511_v35, %s4651_s20  ;;  %v954_v25 = vsub.f32 1.0, %v953_v24 }
 0x154   : > { %1858 = vrot.lane.b32.xlu1 %v5469_v9, %s4653_s22  ;;  %v963_v9 = vand.u32 2147483648, %v5547_v54  ;;  %1310 = vst.msk [vmem:[#allocation2 + $0xc1] sm:$0xff] %vm1239_vm1, %v1221_v62  ;;  %vm962_vm2 = vcmp.eq.f32.partialorder %v961_v5, 8.507059e+37  ;;  %v711_v54 = vadd.f32 1.0, %v4353_v31 }
 0x155   : > { %v2487_v16 = vpop.permute.xlu0 %2486  ;;  %v2295_v20 = vpop.permute.xlu2 %2294  ;;  %v955_v60 = vmul.f32 %v4351_v11, %v954_v25  ;;  %4131 = vmatmul.msk.f32.gmra.mxu0 %vm317_vm0, %v304_v59 }
 0x156   : > { %v2102_v49 = vpop.permute.xlu1 %2101  ;;  %v964_v41 = vor.u32 1.1754944e-38, %v963_v9  ;;  %v978_v39 = vand.u32 2147483648, %v711_v54  ;;  %vm972_vm3 = vweird.f32 %v711_v54  ;;  %v976_v18 = vand.u32 2147483647, %v711_v54 }
 0x157   : > { %2196 = vst.msk [vmem:[#allocation3 + $0x20] sm:$0xff] %vm1552_vm15, %v2102_v49  ;;  %v956_v37 = vadd.f32 %v4351_v11, %v955_v60  ;;  %v2682_v7 = vld [vmem:[#allocation3 + $0x30] sm:$0xff] }
 0x158   : > { %2389 = vst.msk [vmem:[#allocation3 + $0x20] sm:$0xff] %vm1745_vm7, %v2295_v20  ;;  %v305_v20 = vld [vmem:[%s4770_s17 + $0xe0] sm:$0xff]  ;;  %v979_v9 = vor.u32 1.1754944e-38, %v978_v39  ;;  %vm977_vm8 = vcmp.eq.f32.partialorder %v976_v18, 8.507059e+37 }
 0x159   : > { %2581 = vst.msk [vmem:[#allocation3 + $0x20] sm:$0xff] %vm1938_vm4, %v2487_v16  ;;  %v960_v53 = vsel %vm5613_vm14, %v4351_v11, %v956_v37  ;;  %4179 = vmatmul.msk.f32.gmra.mxu3 %vm1239_vm1, %v2711_v50  ;;  %v306_v50 = vld [vmem:[%s4770_s17 + $0xe8] sm:$0xff] }
 0x15a   : > { %v965_v43 = vsel %vm962_vm2, %v964_v41, %v960_v53 }
 0x15b   : > { %1671 = vrot.lane.b32.xlu0 %v5306_v46, %s4652_s8  ;;  %2306 = vrot.lane.b32.xlu2 %v5308_v47, %s4652_s8  ;;  %v1222_v12 = vmul.f32 %v965_v43, %v5505_v56  ;;  %v1344_v21 = vld [vmem:[#allocation2 + $0xc0] sm:$0xff] }
 0x15c   : > { %1669 = vrot.lane.b32.xlu1 %v5292_v44, %s4652_s8  ;;  %v482_v44 = vpop.f32.mrf.mxu0  ;;  %1376 = vst.msk [vmem:[#allocation3 + $0x180] sm:$0xff] %vm1239_vm1, %v1344_v21  ;;  %v1985_v14 = vld [vmem:[#allocation2 + $0xc1] sm:$0xff] }
 0x15d   : > { %v2106_v47 = vpop.permute.xlu0 %2105  ;;  %v2104_v32 = vpop.permute.xlu2 %2103  ;;  %v548_v45 = vmul.f32 %v5446_v33, %v482_v44  ;;  %1311 = vst.msk [vmem:[#allocation2 + $0xc9] sm:$0xff] %vm1239_vm1, %v1222_v12  ;;  %4132 = vmatmul.msk.f32.gmra.mxu0 %vm317_vm0, %v305_v20  ;;  %v2430_v44 = vld [vmem:[#allocation2 + $0xa9] sm:$0xff] }
 0x15e   : > { %v1845_v42 = vpop.permute.xlu1 %1844  ;;  %2198 = vst.msk [vmem:[#allocation3 + $0x50] sm:$0xff] %vm1552_vm15, %v2106_v47 }
 0x15f   : > { %1940 = vst.msk [vmem:[#allocation3 + $0x18] sm:$0xff] %vm1938_vm4, %v1845_v42  ;;  %v5633_v17 = vadd.f32 %v5459_v4, %v548_v45 }
 0x160   : > { %2197 = vst.msk [vmem:[#allocation3 + $0x38] sm:$0xff] %vm1552_vm15, %v2104_v32  ;;  %v2680_v37 = vld [vmem:[#allocation3 + $0x20] sm:$0xff] }
 0x161   : > { %v4153_v56 = vmul.f32 -1.442695, %v5633_v17  ;;  %2017 = vst.msk [vmem:[#allocation3 + $0x158] sm:$0xff] %vm1239_vm1, %v1985_v14 }
 0x163   : > { %2117 = vrot.lane.b32.xlu2 %v5306_v46, %s4651_s20  ;;  %1480 = vrot.lane.b32.xlu0 %v1404_v34, %s4651_s20  ;;  %4354 = vpow2.f32 %v4153_v56 }
 0x164   : > { %2308 = vrot.lane.b32.xlu1 %v5393_v26, %s4652_s8  ;;  %4356 = vrcp.f32 %v711_v54  ;;  %v5649_v27 = vld [vmem:[#allocation2 + $0xc2] sm:$0xff]  ;;  %v485_v32 = vpop.f32.mrf.mxu0 }
 0x165   : > { %v1849_v52 = vpop.permute.xlu0 %1848  ;;  %v1851_v58 = vpop.permute.xlu2 %1850  ;;  %2656 = vst.msk [vmem:[#allocation3 + $0x130] sm:$0xff] %vm1239_vm1, %v5649_v27  ;;  %v5656_v61 = vld [vmem:[#allocation2 + $0xc8] sm:$0xff]  ;;  %v549_v43 = vmul.f32 %v5446_v33, %v485_v32  ;;  %4133 = vmatmul.msk.f32.gmra.mxu0 %vm317_vm0, %v306_v50 }
 0x166   : > { %v2293_v0 = vpop.permute.xlu1 %2292  ;;  %1942 = vst.msk [vmem:[#allocation3 + $0x48] sm:$0xff] %vm1938_vm4, %v1849_v52  ;;  %v2679_v46 = vld [vmem:[#allocation3 + $0x18] sm:$0xff] }
 0x167   : > { %2388 = vst.msk [vmem:[#allocation3 + $0x8] sm:$0xff] %vm1745_vm7, %v2293_v0  ;;  %2923 = vmatmul.f32.gmra.mxu1 %v2679_v46  ;;  %v1986_v41 = vld [vmem:[#allocation2 + $0xc9] sm:$0xff] }
 0x168   : > { %2580 = vst.msk [vmem:[#allocation3 + $0x8] sm:$0xff] %vm1938_vm4, %v5494_v23 }
 0x169   : > { %v4355_v1 = vpop.eup %4354  ;;  %1377 = vst.msk [vmem:[#allocation3 + $0x198] sm:$0xff] %vm1239_vm1, %v5656_v61 }
 0x16a   : > { %v4357_v23 = vpop.eup %4356  ;;  %v5662_v36 = vadd.f32 1.0, %v4355_v1  ;;  %2018 = vst.msk [vmem:[#allocation3 + $0x170] sm:$0xff] %vm1239_vm1, %v1986_v41 }
 0x16b   : > { %2500 = vrot.lane.b32.xlu2 %v1404_v34, %s4653_s22  ;;  %2310 = vrot.lane.b32.xlu0 %v5395_v28, %s4652_s8  ;;  %v968_v13 = vmul.f32 %v4357_v23, %v711_v54  ;;  %vm973_vm5 = vweird.f32 %v4357_v23  ;;  %v5712_v34 = vadd.f32 %v5459_v4, %v549_v43 }
 0x16c   : > { %1482 = vrot.lane.b32.xlu1 %v5422_v48, %s4651_s20  ;;  %4358 = vrcp.f32 %v5662_v36  ;;  %v2714_v49 = vld [vmem:[#allocation3 + $0x130] sm:$0xff]  ;;  %vm5678_vm6 = vmor %vm972_vm3, %vm973_vm5  ;;  %vm987_vm9 = vweird.f32 %v5662_v36  ;;  %v993_v38 = vand.u32 2147483648, %v5662_v36  ;;  %v991_v42 = vand.u32 2147483647, %v5662_v36  ;;  %v488_v21 = vpop.f32.mrf.mxu0 }
 0x16d   : > { %v1660_v2 = vpop.permute.xlu0 %1659  ;;  %v5667_v6 = vpop.permute.xlu2 %2490  ;;  %v969_v16 = vsub.f32 1.0, %v968_v13  ;;  %4180 = vmatmul.msk.f32.gmra.mxu3 %vm1239_vm1, %v2714_v49  ;;  %v2685_v35 = vld [vmem:[#allocation3 + $0x48] sm:$0xff]  ;;  %v4154_v56 = vmul.f32 -1.442695, %v5712_v34  ;;  %v550_v1 = vmul.f32 %v5446_v33, %v488_v21 }
 0x16e   : > { %1751 = vst.msk [vmem:[#allocation3 + $0x78] sm:$0xff] %vm1745_vm7, %v1660_v2  ;;  %v1658_v3 = vpop.permute.xlu1 %1657  ;;  %v994_v45 = vor.u32 1.1754944e-38, %v993_v38  ;;  %vm992_vm12 = vcmp.eq.f32.partialorder %v991_v42, 8.507059e+37 }
 0x16f   : > { %1750 = vst.msk [vmem:[#allocation3 + $0x60] sm:$0xff] %vm1745_vm7, %v1658_v3  ;;  %2926 = vmatmul.f32.gmra.mxu1 %v2682_v7  ;;  %v2677_v11 = vld [vmem:[#allocation3 + $0x8] sm:$0xff]  ;;  %v970_v62 = vmul.f32 %v4357_v23, %v969_v16  ;;  %4360 = vpow2.f32 %v4154_v56  ;;  %v5781_v56 = vld [vmem:[#allocation2 + $0xc0] sm:$0xff] }
 0x170   : > { %1943 = vst.msk [vmem:[#allocation3 + $0x60] sm:$0xff] %vm1938_vm4, %v1851_v58  ;;  %3033 = vmatmul.f32.vlgmr.msra.gmra.mxu2 %v2677_v11  ;;  %v1407_v11 = vld [vmem:[#allocation2 + $0xb1] sm:$0xff] }
 0x171   : > { %v971_v22 = vadd.f32 %v4357_v23, %v970_v62 }
 0x172   : > { %v4359_v25 = vpop.eup %4358 }
 0x173   : > { %1862 = vrot.lane.b32.xlu2 %v5393_v26, %s4653_s22  ;;  %2121 = vrot.lane.b32.xlu0 %v5420_v8, %s4651_s20  ;;  %v5686_v26 = vld [vmem:[#allocation2 + $0xca] sm:$0xff]  ;;  %v975_v15 = vsel %vm5678_vm6, %v4357_v23, %v971_v22  ;;  %vm988_vm10 = vweird.f32 %v4359_v25  ;;  %v5733_v23 = vadd.f32 %v5459_v4, %v550_v1 }
 0x174   : > { %2502 = vrot.lane.b32.xlu1 %v5422_v48, %s4653_s22  ;;  %v983_v48 = vmul.f32 %v4359_v25, %v5662_v36  ;;  %v980_v19 = vsel %vm977_vm8, %v979_v9, %v975_v15  ;;  %2657 = vst.msk [vmem:[#allocation3 + $0x148] sm:$0xff] %vm1239_vm1, %v5686_v26  ;;  %vm5707_vm11 = vmor %vm987_vm9, %vm988_vm10 }
 0x175   : > { %v1469_v5 = vpop.permute.xlu0 %1468  ;;  %v1662_v29 = vpop.permute.xlu2 %1661  ;;  %v1223_v47 = vmul.f32 %v980_v19, %v5602_v10  ;;  %v4155_v36 = vmul.f32 -1.442695, %v5733_v23 }
 0x176   : > { %v2489_v60 = vpop.permute.xlu1 %2488  ;;  %1559 = vst.msk [vmem:[#allocation3 + $0x90] sm:$0xff] %vm1552_vm15, %v1469_v5  ;;  %v984_v53 = vsub.f32 1.0, %v983_v48 }
 0x177   : > { %1752 = vst.msk [vmem:[#allocation3 + $0x90] sm:$0xff] %vm1745_vm7, %v1662_v29  ;;  %2929 = vmatmul.f32.gmra.mxu1 %v2685_v35  ;;  %v2688_v58 = vld [vmem:[#allocation3 + $0x60] sm:$0xff]  ;;  %4362 = vpow2.f32 %v4155_v36 }
 0x178   : > { %3036 = vmatmul.f32.gmra.mxu2 %v2680_v37  ;;  %1312 = vst.msk [vmem:[#allocation2 + $0xd9] sm:$0xff] %vm1239_vm1, %v1223_v47  ;;  %v985_v12 = vmul.f32 %v4359_v25, %v984_v53 }
 0x17a   : > { %v986_v51 = vadd.f32 %v4359_v25, %v985_v12 }
 0x17b   : > { %1673 = vrot.lane.b32.xlu2 %v5389_v40, %s4652_s8  ;;  %2504 = vrot.lane.b32.xlu0 %v2430_v44, %s4653_s22 }
 0x17c   : > { %2119 = vrot.lane.b32.xlu1 %v5389_v40, %s4651_s20  ;;  %v990_v52 = vsel %vm5707_vm11, %v4359_v25, %v986_v51  ;;  %v2717_v40 = vld [vmem:[#allocation3 + $0x148] sm:$0xff] }
 0x17d   : > { %v2297_v31 = vpop.permute.xlu0 %2296  ;;  %v1473_v0 = vpop.permute.xlu2 %1472  ;;  %v995_v46 = vsel %vm992_vm12, %v994_v45, %v990_v52  ;;  %4181 = vmatmul.msk.f32.gmra.mxu3 %vm1239_vm1, %v2717_v40 }
 0x17e   : > { %2390 = vst.msk [vmem:[#allocation3 + $0x38] sm:$0xff] %vm1745_vm7, %v2297_v31  ;;  %v1471_v54 = vpop.permute.xlu1 %1470  ;;  %v1224_v59 = vmul.f32 %v995_v46, %v5633_v17  ;;  %v4361_v17 = vpop.eup %4360 }
 0x17f   : > { %2582 = vst.msk [vmem:[#allocation3 + $0x38] sm:$0xff] %vm1938_vm4, %v2489_v60  ;;  %2932 = vmatmul.f32.gmra.mxu1 %v2688_v58  ;;  %v713_v14 = vadd.f32 1.0, %v4361_v17  ;;  %v1346_v39 = vld [vmem:[#allocation2 + $0xd8] sm:$0xff]  ;;  %v4363_v18 = vpop.eup %4362 }
 0x180   : > { %1560 = vst.msk [vmem:[#allocation3 + $0xa8] sm:$0xff] %vm1552_vm15, %v1471_v54  ;;  %v714_v24 = vadd.f32 1.0, %v4363_v18 }
 0x181   : > { %1561 = vst.msk [vmem:[#allocation3 + $0xc0] sm:$0xff] %vm1552_vm15, %v1473_v0  ;;  %4364 = vrcp.f32 %v713_v14  ;;  %vm1002_vm13 = vweird.f32 %v713_v14  ;;  %v1006_v5 = vand.u32 2147483647, %v713_v14 }
 0x182   : > { %1313 = vst.msk [vmem:[#allocation2 + $0xe1] sm:$0xff] %vm1239_vm1, %v1224_v59  ;;  %4366 = vrcp.f32 %v714_v24  ;;  %vm1017_vm5 = vweird.f32 %v714_v24  ;;  %v1023_v10 = vand.u32 2147483648, %v714_v24  ;;  %v1021_v31 = vand.u32 2147483647, %v714_v24 }
 0x183   : > { %1866 = vrot.lane.b32.xlu0 %v5561_v63, %s4653_s22  ;;  %1484 = vrot.lane.b32.xlu2 %v2430_v44, %s4651_s20  ;;  %1378 = vst.msk [vmem:[#allocation3 + $0x1b0] sm:$0xff] %vm1239_vm1, %v1346_v39  ;;  %vm1007_vm3 = vcmp.eq.f32.partialorder %v1006_v5, 8.507059e+37  ;;  %v491_v43 = vpop.f32.mrf.mxu0 }
 0x184   : > { %1864 = vrot.lane.b32.xlu1 %v5395_v28, %s4653_s22  ;;  %v551_v45 = vmul.f32 %v5446_v33, %v491_v43  ;;  %v1024_v58 = vor.u32 1.1754944e-38, %v1023_v10  ;;  %vm1022_vm9 = vcmp.eq.f32.partialorder %v1021_v31, 8.507059e+37 }
 0x185   : > { %v2110_v2 = vpop.permute.xlu0 %2109  ;;  %v2301_v7 = vpop.permute.xlu2 %2300 }
 0x186   : > { %2200 = vst.msk [vmem:[#allocation3 + $0x80] sm:$0xff] %vm1552_vm15, %v2110_v2  ;;  %v2299_v3 = vpop.permute.xlu1 %2298  ;;  %v2683_v13 = vld [vmem:[#allocation3 + $0x38] sm:$0xff]  ;;  %v5784_v52 = vadd.f32 %v5459_v4, %v551_v45 }
 0x187   : > { %2391 = vst.msk [vmem:[#allocation3 + $0x50] sm:$0xff] %vm1745_vm7, %v2299_v3  ;;  %3039 = vmatmul.f32.gmra.mxu2 %v2683_v13  ;;  %v4365_v49 = vpop.eup %4364  ;;  %v2433_v13 = vld [vmem:[#allocation2 + $0xc9] sm:$0xff] }
 0x188   : > { %2583 = vst.msk [vmem:[#allocation3 + $0x50] sm:$0xff] %vm1938_vm4, %v5667_v6  ;;  %v1987_v6 = vld [vmem:[#allocation2 + $0xd9] sm:$0xff]  ;;  %v998_v22 = vmul.f32 %v4365_v49, %v713_v14  ;;  %vm1003_vm14 = vweird.f32 %v4365_v49  ;;  %v4367_v38 = vpop.eup %4366  ;;  %v4156_v46 = vmul.f32 -1.442695, %v5784_v52 }
 0x189   : > { %v5742_v28 = vld [vmem:[#allocation2 + $0xda] sm:$0xff]  ;;  %2019 = vst.msk [vmem:[#allocation3 + $0x188] sm:$0xff] %vm1239_vm1, %v1987_v6  ;;  %v5759_v60 = vld [vmem:[#allocation2 + $0xe2] sm:$0xff]  ;;  %vm5768_vm2 = vmor %vm1002_vm13, %vm1003_vm14  ;;  %v1013_v32 = vmul.f32 %v4367_v38, %v714_v24  ;;  %vm1018_vm6 = vweird.f32 %v4367_v38 }
 0x18a   : > { %2658 = vst.msk [vmem:[#allocation3 + $0x160] sm:$0xff] %vm1239_vm1, %v5742_v28  ;;  %v1347_v16 = vld [vmem:[#allocation2 + $0xe0] sm:$0xff]  ;;  %v999_v25 = vsub.f32 1.0, %v998_v22  ;;  %vm5794_vm8 = vmor %vm1017_vm5, %vm1018_vm6  ;;  %4368 = vpow2.f32 %v4156_v46 }
 0x18b   : > { %2312 = vrot.lane.b32.xlu2 %v5561_v63, %s4652_s8  ;;  %1486 = vrot.lane.b32.xlu0 %v1407_v11, %s4651_s20  ;;  %1379 = vst.msk [vmem:[#allocation3 + $0x1c8] sm:$0xff] %vm1239_vm1, %v1347_v16  ;;  %v1988_v35 = vld [vmem:[#allocation2 + $0xe1] sm:$0xff]  ;;  %v1014_v51 = vsub.f32 1.0, %v1013_v32  ;;  %v494_v2 = vpop.f32.mrf.mxu0 }
 0x18c   : > { %1675 = vrot.lane.b32.xlu1 %v5420_v8, %s4652_s8  ;;  %v1008_v8 = vand.u32 2147483648, %v713_v14  ;;  %v1000_v29 = vmul.f32 %v4365_v49, %v999_v25  ;;  %2659 = vst.msk [vmem:[#allocation3 + $0x178] sm:$0xff] %vm1239_vm1, %v5759_v60  ;;  %v552_v3 = vmul.f32 %v5446_v33, %v494_v2 }
 0x18d   : > { %v2493_v62 = vpop.permute.xlu0 %2492  ;;  %v5753_v63 = vpop.permute.xlu2 %2494  ;;  %2020 = vst.msk [vmem:[#allocation3 + $0x1a0] sm:$0xff] %vm1239_vm1, %v1988_v35  ;;  %v1015_v0 = vmul.f32 %v4367_v38, %v1014_v51 }
 0x18e   : > { %v2108_v20 = vpop.permute.xlu1 %2107  ;;  %v1009_v41 = vor.u32 1.1754944e-38, %v1008_v8  ;;  %v1001_v37 = vadd.f32 %v4365_v49, %v1000_v29  ;;  %v5808_v14 = vadd.f32 %v5459_v4, %v552_v3 }
 0x18f   : > { %2199 = vst.msk [vmem:[#allocation3 + $0x68] sm:$0xff] %vm1552_vm15, %v2108_v20  ;;  %v2686_v9 = vld [vmem:[#allocation3 + $0x50] sm:$0xff]  ;;  %v1016_v59 = vadd.f32 %v4367_v38, %v1015_v0 }
 0x190   : > { %2392 = vst.msk [vmem:[#allocation3 + $0x68] sm:$0xff] %vm1745_vm7, %v2301_v7  ;;  %3042 = vmatmul.f32.gmra.mxu2 %v2686_v9  ;;  %v1005_v42 = vsel %vm5768_vm2, %v4365_v49, %v1001_v37  ;;  %v4369_v39 = vpop.eup %4368  ;;  %v4157_v16 = vmul.f32 -1.442695, %v5808_v14 }
 0x191   : > { %2584 = vst.msk [vmem:[#allocation3 + $0x68] sm:$0xff] %vm1938_vm4, %v2493_v62  ;;  %v2720_v15 = vld [vmem:[#allocation3 + $0x160] sm:$0xff]  ;;  %v1010_v44 = vsel %vm1007_vm3, %v1009_v41, %v1005_v42  ;;  %v1020_v17 = vsel %vm5794_vm8, %v4367_v38, %v1016_v59 }
 0x192   : > { %4182 = vmatmul.msk.f32.gmra.mxu3 %vm1239_vm1, %v2720_v15  ;;  %v1225_v50 = vmul.f32 %v1010_v44, %v5712_v34  ;;  %v1025_v36 = vsel %vm1022_vm9, %v1024_v58, %v1020_v17  ;;  %4370 = vpow2.f32 %v4157_v16 }
 0x193   : > { %2506 = vrot.lane.b32.xlu2 %v1407_v11, %s4653_s22  ;;  %1677 = vrot.lane.b32.xlu0 %v5552_v57, %s4652_s8  ;;  %v2723_v54 = vld [vmem:[#allocation3 + $0x178] sm:$0xff]  ;;  %v1226_v7 = vmul.f32 %v1025_v36, %v5733_v23  ;;  %v715_v23 = vadd.f32 1.0, %v4369_v39 }
 0x194   : > { %2314 = vrot.lane.b32.xlu1 %v5575_v55, %s4652_s8  ;;  %1314 = vst.msk [vmem:[#allocation2 + $0xf1] sm:$0xff] %vm1239_vm1, %v1225_v50  ;;  %v1408_v11 = vld [vmem:[#allocation2 + $0xc1] sm:$0xff] }
 0x195   : > { %v1855_v19 = vpop.permute.xlu0 %1854  ;;  %v2112_v53 = vpop.permute.xlu2 %2111  ;;  %1315 = vst.msk [vmem:[#allocation2 + $0xf9] sm:$0xff] %vm1239_vm1, %v1226_v7  ;;  %4372 = vrcp.f32 %v715_v23  ;;  %v1038_v29 = vand.u32 2147483648, %v715_v23  ;;  %vm1032_vm10 = vweird.f32 %v715_v23  ;;  %v1036_v41 = vand.u32 2147483647, %v715_v23 }
 0x196   : > { %v1853_v47 = vpop.permute.xlu1 %1852  ;;  %1945 = vst.msk [vmem:[#allocation3 + $0x90] sm:$0xff] %vm1938_vm4, %v1855_v19  ;;  %v308_v19 = vld [vmem:[%s4770_s17 + $0xf8] sm:$0xff] }
 0x197   : > { %1944 = vst.msk [vmem:[#allocation3 + $0x78] sm:$0xff] %vm1938_vm4, %v1853_v47  ;;  %vm1037_vm13 = vcmp.eq.f32.partialorder %v1036_v41, 8.507059e+37 }
 0x198   : > { %2201 = vst.msk [vmem:[#allocation3 + $0x98] sm:$0xff] %vm1552_vm15, %v2112_v53  ;;  %v2689_v12 = vld [vmem:[#allocation3 + $0x68] sm:$0xff]  ;;  %v4371_v20 = vpop.eup %4370  ;;  %v1039_v53 = vor.u32 1.1754944e-38, %v1038_v29 }
 0x199   : > { %3045 = vmatmul.f32.gmra.mxu2 %v2689_v12  ;;  %v5828_v22 = vadd.f32 1.0, %v4371_v20  ;;  %v5908_v20 = vld [vmem:[#allocation2 + $0xe0] sm:$0xff] }
 0x19a   : > { %4183 = vmatmul.msk.f32.gmra.mxu3 %vm1239_vm1, %v2723_v54 }
 0x19b   : > { %2123 = vrot.lane.b32.xlu2 %v5552_v57, %s4651_s20  ;;  %2316 = vrot.lane.b32.xlu0 %v5781_v56, %s4652_s8  ;;  %v4373_v24 = vpop.eup %4372  ;;  %4374 = vrcp.f32 %v5828_v22  ;;  %v5835_v35 = vld [vmem:[#allocation2 + $0xf0] sm:$0xff]  ;;  %vm1047_vm14 = vweird.f32 %v5828_v22  ;;  %v1051_v51 = vand.u32 2147483647, %v5828_v22  ;;  %v1053_v31 = vand.u32 2147483648, %v5828_v22 }
 0x19c   : > { %2125 = vrot.lane.b32.xlu1 %v5605_v30, %s4651_s20  ;;  %v1028_v5 = vmul.f32 %v4373_v24, %v715_v23  ;;  %v5831_v15 = vld [vmem:[#allocation2 + $0xf2] sm:$0xff]  ;;  %vm1033_vm11 = vweird.f32 %v4373_v24  ;;  %1380 = vst.msk [vmem:[#allocation3 + $0x1e0] sm:$0xff] %vm1239_vm1, %v5835_v35  ;;  %v5865_v59 = vld [vmem:[#allocation2 + $0xfa] sm:$0xff] }
 0x19d   : > { %v1475_v40 = vpop.permute.xlu0 %1474  ;;  %v1857_v21 = vpop.permute.xlu2 %1856  ;;  %v2694_v49 = vld [vmem:[#allocation3 + $0x90] sm:$0xff]  ;;  %v1989_v37 = vld [vmem:[#allocation2 + $0xf1] sm:$0xff]  ;;  %2660 = vst.msk [vmem:[#allocation3 + $0x190] sm:$0xff] %vm1239_vm1, %v5831_v15  ;;  %vm1034_vm12 = vmor %vm1032_vm10, %vm1033_vm11  ;;  %vm1052_vm5 = vcmp.eq.f32.partialorder %v1051_v51, 8.507059e+37 }
 0x19e   : > { %v1664_v57 = vpop.permute.xlu1 %1663  ;;  %1562 = vst.msk [vmem:[#allocation3 + $0xd8] sm:$0xff] %vm1552_vm15, %v1475_v40  ;;  %v2691_v1 = vld [vmem:[#allocation3 + $0x78] sm:$0xff]  ;;  %v1029_v48 = vsub.f32 1.0, %v1028_v5  ;;  %v1349_v38 = vld [vmem:[#allocation2 + $0xf8] sm:$0xff] }
 0x19f   : > { %1753 = vst.msk [vmem:[#allocation3 + $0xa8] sm:$0xff] %vm1745_vm7, %v1664_v57  ;;  %2935 = vmatmul.f32.gmra.mxu1 %v2691_v1 }
 0x1a0   : > { %1946 = vst.msk [vmem:[#allocation3 + $0xa8] sm:$0xff] %vm1938_vm4, %v1857_v21  ;;  %v1030_v47 = vmul.f32 %v4373_v24, %v1029_v48 }
 0x1a1   : > { %2021 = vst.msk [vmem:[#allocation3 + $0x1b8] sm:$0xff] %vm1239_vm1, %v1989_v37  ;;  %v4375_v32 = vpop.eup %4374 }
 0x1a2   : > { %v1031_v42 = vadd.f32 %v4373_v24, %v1030_v47  ;;  %1381 = vst.msk [vmem:[#allocation3 + $0x1f8] sm:$0xff] %vm1239_vm1, %v1349_v38  ;;  %v1043_v45 = vmul.f32 %v4375_v32, %v5828_v22  ;;  %vm1048_vm2 = vweird.f32 %v4375_v32 }
 0x1a3   : > { %1868 = vrot.lane.b32.xlu2 %v5575_v55, %s4653_s22  ;;  %2510 = vrot.lane.b32.xlu0 %v2433_v13, %s4653_s22  ;;  %v307_v55 = vld [vmem:[%s4770_s17 + $0xf0] sm:$0xff]  ;;  %vm1049_vm3 = vmor %vm1047_vm14, %vm1048_vm2  ;;  %2661 = vst.msk [vmem:[#allocation3 + $0x1a8] sm:$0xff] %vm1239_vm1, %v5865_v59 }
 0x1a4   : > { %1488 = vrot.lane.b32.xlu1 %v1408_v11, %s4651_s20  ;;  %4134 = vmatmul.msk.f32.gmra.mxu0 %vm317_vm0, %v307_v55  ;;  %v1035_v44 = vsel %vm1034_vm12, %v4373_v24, %v1031_v42  ;;  %v1044_v0 = vsub.f32 1.0, %v1043_v45  ;;  %v2726_v34 = vld [vmem:[#allocation3 + $0x190] sm:$0xff] }
 0x1a5   : > { %v1666_v6 = vpop.permute.xlu0 %1665  ;;  %v1668_v62 = vpop.permute.xlu2 %1667  ;;  %v1040_v50 = vsel %vm1037_vm13, %v1039_v53, %v1035_v44  ;;  %4184 = vmatmul.msk.f32.gmra.mxu3 %vm1239_vm1, %v2726_v34 }
 0x1a6   : > { %v2303_v18 = vpop.permute.xlu1 %2302  ;;  %1754 = vst.msk [vmem:[#allocation3 + $0xc0] sm:$0xff] %vm1745_vm7, %v1666_v6  ;;  %v1227_v54 = vmul.f32 %v1040_v50, %v5784_v52  ;;  %v1045_v46 = vmul.f32 %v4375_v32, %v1044_v0  ;;  %v1990_v52 = vld [vmem:[#allocation2 + $0xf9] sm:$0xff] }
 0x1a7   : > { %2393 = vst.msk [vmem:[#allocation3 + $0x80] sm:$0xff] %vm1745_vm7, %v2303_v18  ;;  %2938 = vmatmul.f32.gmra.mxu1 %v2694_v49  ;;  %v2697_v25 = vld [vmem:[#allocation3 + $0xa8] sm:$0xff] }
 0x1a8   : > { %2585 = vst.msk [vmem:[#allocation3 + $0x80] sm:$0xff] %vm1938_vm4, %v5753_v63 }
 0x1a9   : > { %1755 = vst.msk [vmem:[#allocation3 + $0xd8] sm:$0xff] %vm1745_vm7, %v1668_v62 }
 0x1aa   : > { %1316 = vst.msk [vmem:[#allocation2 + $0x109] sm:$0xff] %vm1239_vm1, %v1227_v54  ;;  %v2729_v7 = vld [vmem:[#allocation3 + $0x1a8] sm:$0xff] }
 0x1ab   : > { %1679 = vrot.lane.b32.xlu2 %v5605_v30, %s4652_s8  ;;  %2127 = vrot.lane.b32.xlu0 %v5649_v27, %s4651_s20  ;;  %2022 = vst.msk [vmem:[#allocation3 + $0x1d0] sm:$0xff] %vm1239_vm1, %v1990_v52 }
 0x1ac   : > { %2508 = vrot.lane.b32.xlu1 %v1408_v11, %s4653_s22  ;;  %4135 = vmatmul.msk.f32.gmra.mxu0 %vm317_vm0, %v308_v19  ;;  %v5890_v11 = vld [vmem:[%s7091_s3] ss:$0 sm:$0xff] }
 0x1ad   : > { %v2305_v9 = vpop.permute.xlu0 %2304  ;;  %v1479_v63 = vpop.permute.xlu2 %1478  ;;  %4185 = vmatmul.msk.f32.gmra.mxu3 %vm1239_vm1, %v2729_v7 }
 0x1ae   : > { %v2114_v8 = vpop.permute.xlu1 %2113  ;;  %2394 = vst.msk [vmem:[#allocation3 + $0x98] sm:$0xff] %vm1745_vm7, %v2305_v9  ;;  %v1411_v9 = vld [vmem:[#allocation2 + $0xe1] sm:$0xff] }
 0x1af   : > { %2202 = vst.msk [vmem:[#allocation3 + $0xb0] sm:$0xff] %vm1552_vm15, %v2114_v8  ;;  %2941 = vmatmul.f32.gmra.mxu1 %v2697_v25  ;;  %v2692_v30 = vld [vmem:[#allocation3 + $0x80] sm:$0xff] }
 0x1b0   : > { %1564 = vst.msk [vmem:[#allocation3 + $0x108] sm:$0xff] %vm1552_vm15, %v1479_v63  ;;  %3048 = vmatmul.f32.gmra.mxu2 %v2692_v30 }
 0x1b1   : > { %v1350_v8 = vld [vmem:[#allocation2 + $0x108] sm:$0xff] }
 0x1b2   : > { %1382 = vst.msk [vmem:[#allocation3 + $0x210] sm:$0xff] %vm1239_vm1, %v1350_v8  ;;  %v1991_v19 = vld [vmem:[#allocation2 + $0x109] sm:$0xff] }
 0x1b3   : > { %1872 = vrot.lane.b32.xlu0 %v5656_v61, %s4653_s22  ;;  %1490 = vrot.lane.b32.xlu2 %v2433_v13, %s4651_s20  ;;  %v2242_v13 = vld [vmem:[#allocation2 + $0xd8] sm:$0xff]  ;;  %2023 = vst.msk [vmem:[#allocation3 + $0x1e8] sm:$0xff] %vm1239_vm1, %v1991_v19 }
 0x1b4   : > { %1870 = vrot.lane.b32.xlu1 %v5781_v56, %s4653_s22  ;;  %v497_v56 = vpop.f32.mrf.mxu0 }
 0x1b5   : > { %v2499_v43 = vpop.permute.xlu0 %2498  ;;  %v2307_v10 = vpop.permute.xlu2 %2306  ;;  %v553_v58 = vmul.f32 %v5446_v33, %v497_v56  ;;  %v1054_v33 = vor.u32 1.1754944e-38, %v1053_v31 }
 0x1b6   : > { %v1477_v12 = vpop.permute.xlu1 %1476  ;;  %2395 = vst.msk [vmem:[#allocation3 + $0xb0] sm:$0xff] %vm1745_vm7, %v2307_v10 }
 0x1b7   : > { %1563 = vst.msk [vmem:[#allocation3 + $0xf0] sm:$0xff] %vm1552_vm15, %v1477_v12  ;;  %v5863_v40 = vadd.f32 %v5459_v4, %v553_v58  ;;  %v1046_v4 = vadd.f32 %v4375_v32, %v1045_v46 }
 0x1b8   : > { %2587 = vst.msk [vmem:[#allocation3 + $0xb0] sm:$0xff] %vm1938_vm4, %v2499_v43 }
 0x1b9   : > { %v4158_v57 = vmul.f32 -1.442695, %v5863_v40  ;;  %v1050_v1 = vsel %vm1049_vm3, %v4375_v32, %v1046_v4 }
 0x1ba   : > { %v1055_v2 = vsel %vm1052_vm5, %v1054_v33, %v1050_v1 }
 0x1bb   : > { %1683 = vrot.lane.b32.xlu0 %v5686_v26, %s4652_s8  ;;  %2318 = vrot.lane.b32.xlu2 %v5656_v61, %s4652_s8  ;;  %4376 = vpow2.f32 %v4158_v57  ;;  %v1228_v36 = vmul.f32 %v1055_v2, %v5808_v14 }
 0x1bc   : > { %1681 = vrot.lane.b32.xlu1 %v5649_v27, %s4652_s8  ;;  %v1410_v27 = vld [vmem:[#allocation2 + $0xd9] sm:$0xff]  ;;  %v500_v3 = vpop.f32.mrf.mxu0 }
 0x1bd   : > { %v2116_v21 = vpop.permute.xlu0 %2115  ;;  %v2118_v61 = vpop.permute.xlu2 %2117  ;;  %1317 = vst.msk [vmem:[#allocation2 + $0x111] sm:$0xff] %vm1239_vm1, %v1228_v36  ;;  %v554_v14 = vmul.f32 %v5890_v11, %v500_v3 }
 0x1be   : > { %v2497_v17 = vpop.permute.xlu1 %2496  ;;  %2203 = vst.msk [vmem:[#allocation3 + $0xc8] sm:$0xff] %vm1552_vm15, %v2116_v21  ;;  %v2436_v21 = vld [vmem:[#allocation2 + $0xf1] sm:$0xff] }
 0x1bf   : > { %2586 = vst.msk [vmem:[#allocation3 + $0x98] sm:$0xff] %vm1938_vm4, %v2497_v17  ;;  %v2698_v48 = vld [vmem:[#allocation3 + $0xb0] sm:$0xff] }
 0x1c0   : > { %2204 = vst.msk [vmem:[#allocation3 + $0xe0] sm:$0xff] %vm1552_vm15, %v2118_v61 }
 0x1c1   : > { %v4377_v39 = vpop.eup %4376 }
 0x1c2   : > { %v717_v6 = vadd.f32 1.0, %v4377_v39 }
 0x1c3   : > { %2129 = vrot.lane.b32.xlu2 %v5686_v26, %s4651_s20  ;;  %1492 = vrot.lane.b32.xlu0 %v1410_v27, %s4651_s20  ;;  %v5898_v26 = vld [vmem:[%s7092_s4] ss:$0 sm:$0xff] }
 0x1c4   : > { %2320 = vrot.lane.b32.xlu1 %v2242_v13, %s4652_s8  ;;  %v5901_v23 = vadd.f32 %v5898_v26, %v554_v14  ;;  %4378 = vrcp.f32 %v717_v6  ;;  %v5910_v24 = vld [vmem:[#allocation2 + $0x10a] sm:$0xff]  ;;  %v1068_v37 = vand.u32 2147483648, %v717_v6  ;;  %vm1062_vm6 = vweird.f32 %v717_v6  ;;  %v503_v32 = vpop.f32.mrf.mxu0  ;;  %v5951_v33 = vld [vmem:[#allocation2 + $0x112] sm:$0xff] }
 0x1c5   : > { %v1861_v16 = vpop.permute.xlu0 %1860  ;;  %v5904_v62 = vpop.permute.xlu2 %2500  ;;  %2662 = vst.msk [vmem:[#allocation3 + $0x1c0] sm:$0xff] %vm1239_vm1, %v5910_v24  ;;  %v5917_v22 = vld [vmem:[#allocation2 + $0x110] sm:$0xff]  ;;  %v1066_v53 = vand.u32 2147483647, %v717_v6  ;;  %v555_v44 = vmul.f32 %v5890_v11, %v503_v32 }
 0x1c6   : > { %v1859_v18 = vpop.permute.xlu1 %1858  ;;  %1948 = vst.msk [vmem:[#allocation3 + $0xd8] sm:$0xff] %vm1938_vm4, %v1861_v16  ;;  %v2695_v49 = vld [vmem:[#allocation3 + $0x98] sm:$0xff]  ;;  %v4159_v55 = vmul.f32 -1.442695, %v5901_v23  ;;  %v1069_v45 = vor.u32 1.1754944e-38, %v1068_v37  ;;  %v1992_v57 = vld [vmem:[#allocation2 + $0x111] sm:$0xff] }
 0x1c7   : > { %1947 = vst.msk [vmem:[#allocation3 + $0xc0] sm:$0xff] %vm1938_vm4, %v1859_v18  ;;  %3051 = vmatmul.f32.gmra.mxu2 %v2695_v49  ;;  %vm1067_vm10 = vcmp.eq.f32.partialorder %v1066_v53, 8.507059e+37  ;;  %v5940_v51 = vadd.f32 %v5898_v26, %v555_v44 }
 0x1c8   : > { %4380 = vpow2.f32 %v4159_v55  ;;  %1383 = vst.msk [vmem:[#allocation3 + $0x228] sm:$0xff] %vm1239_vm1, %v5917_v22 }
 0x1c9   : > { %v4160_v58 = vmul.f32 -1.442695, %v5940_v51  ;;  %2663 = vst.msk [vmem:[#allocation3 + $0x1d8] sm:$0xff] %vm1239_vm1, %v5951_v33 }
 0x1ca   : > { %v4379_v63 = vpop.eup %4378  ;;  %2024 = vst.msk [vmem:[#allocation3 + $0x200] sm:$0xff] %vm1239_vm1, %v1992_v57 }
 0x1cb   : > { %2512 = vrot.lane.b32.xlu2 %v1410_v27, %s4653_s22  ;;  %2322 = vrot.lane.b32.xlu0 %v5908_v20, %s4652_s8  ;;  %v1058_v41 = vmul.f32 %v4379_v63, %v717_v6  ;;  %vm1063_vm8 = vweird.f32 %v4379_v63 }
 0x1cc   : > { %1494 = vrot.lane.b32.xlu1 %v1411_v9, %s4651_s20  ;;  %v2732_v12 = vld [vmem:[#allocation3 + $0x1c0] sm:$0xff]  ;;  %vm5933_vm9 = vmor %vm1062_vm6, %vm1063_vm8  ;;  %v506_v17 = vpop.f32.mrf.mxu0 }
 0x1cd   : > { %v1672_v25 = vpop.permute.xlu0 %1671  ;;  %v1863_v30 = vpop.permute.xlu2 %1862  ;;  %v1059_v47 = vsub.f32 1.0, %v1058_v41  ;;  %4186 = vmatmul.msk.f32.gmra.mxu3 %vm1239_vm1, %v2732_v12  ;;  %v2703_v34 = vld [vmem:[#allocation3 + $0xd8] sm:$0xff]  ;;  %v556_v36 = vmul.f32 %v5890_v11, %v506_v17 }
 0x1ce   : > { %1757 = vst.msk [vmem:[#allocation3 + $0x108] sm:$0xff] %vm1745_vm7, %v1672_v25  ;;  %v1670_v5 = vpop.permute.xlu1 %1669  ;;  %v2700_v29 = vld [vmem:[#allocation3 + $0xc0] sm:$0xff]  ;;  %v4381_v38 = vpop.eup %4380 }
 0x1cf   : > { %1756 = vst.msk [vmem:[#allocation3 + $0xf0] sm:$0xff] %vm1745_vm7, %v1670_v5  ;;  %2944 = vmatmul.f32.gmra.mxu1 %v2700_v29  ;;  %3054 = vmatmul.f32.gmra.mxu2 %v2698_v48  ;;  %v5926_v42 = vadd.f32 1.0, %v4381_v38  ;;  %v1060_v43 = vmul.f32 %v4379_v63, %v1059_v47  ;;  %v5970_v16 = vadd.f32 %v5898_v26, %v556_v36  ;;  %v2921_v17 = vpop.f32.mrf.mxu1 }
 0x1d0   : > { %1949 = vst.msk [vmem:[#allocation3 + $0xf0] sm:$0xff] %vm1938_vm4, %v1863_v30  ;;  %v2735_v8 = vld [vmem:[#allocation3 + $0x1d8] sm:$0xff] }
 0x1d1   : > { %4382 = vrcp.f32 %v5926_v42  ;;  %v1061_v50 = vadd.f32 %v4379_v63, %v1060_v43  ;;  %vm1077_vm11 = vweird.f32 %v5926_v42  ;;  %v1081_v2 = vand.u32 2147483647, %v5926_v42 }
 0x1d2   : > { %4384 = vpow2.f32 %v4160_v58  ;;  %v4161_v55 = vmul.f32 -1.442695, %v5970_v16 }
 0x1d3   : > { %1874 = vrot.lane.b32.xlu2 %v2242_v13, %s4653_s22  ;;  %2133 = vrot.lane.b32.xlu0 %v5759_v60, %s4651_s20  ;;  %v1065_v56 = vsel %vm5933_vm9, %v4379_v63, %v1061_v50  ;;  %vm1082_vm14 = vcmp.eq.f32.partialorder %v1081_v2, 8.507059e+37 }
 0x1d4   : > { %2514 = vrot.lane.b32.xlu1 %v1411_v9, %s4653_s22  ;;  %v1070_v46 = vsel %vm1067_vm10, %v1069_v45, %v1065_v56  ;;  %v509_v25 = vpop.f32.mrf.mxu0 }
 0x1d5   : > { %v1481_v31 = vpop.permute.xlu0 %1480  ;;  %v1674_v0 = vpop.permute.xlu2 %1673  ;;  %v1229_v52 = vmul.f32 %v1070_v46, %v5863_v40  ;;  %v1083_v40 = vand.u32 2147483648, %v5926_v42  ;;  %4187 = vmatmul.msk.f32.gmra.mxu3 %vm1239_vm1, %v2735_v8  ;;  %v557_v12 = vmul.f32 %v5890_v11, %v509_v25 }
 0x1d6   : > { %v2309_v54 = vpop.permute.xlu1 %2308  ;;  %1565 = vst.msk [vmem:[#allocation3 + $0x120] sm:$0xff] %vm1552_vm15, %v1481_v31 }
 0x1d7   : > { %2396 = vst.msk [vmem:[#allocation3 + $0xc8] sm:$0xff] %vm1745_vm7, %v2309_v54  ;;  %2947 = vmatmul.f32.gmra.mxu1 %v2703_v34  ;;  %v4383_v4 = vpop.eup %4382  ;;  %v2706_v39 = vld [vmem:[#allocation3 + $0xf0] sm:$0xff]  ;;  %v1084_v6 = vor.u32 1.1754944e-38, %v1083_v40  ;;  %v3147_v40 = vpop.f32.mrf.mxu3 }
 0x1d8   : > { %2588 = vst.msk [vmem:[#allocation3 + $0xc8] sm:$0xff] %vm1938_vm4, %v5904_v62  ;;  %v1073_v1 = vmul.f32 %v4383_v4, %v5926_v42  ;;  %vm1078_vm12 = vweird.f32 %v4383_v4  ;;  %v4385_v3 = vpop.eup %4384 }
 0x1d9   : > { %1758 = vst.msk [vmem:[#allocation3 + $0x120] sm:$0xff] %vm1745_vm7, %v1674_v0  ;;  %vm5974_vm13 = vmor %vm1077_vm11, %vm1078_vm12  ;;  %v719_v62 = vadd.f32 1.0, %v4385_v3  ;;  %v6019_v0 = vadd.f32 %v5898_v26, %v557_v12 }
 0x1da   : > { %1318 = vst.msk [vmem:[#allocation2 + $0x121] sm:$0xff] %vm1239_vm1, %v1229_v52  ;;  %v1074_v61 = vsub.f32 1.0, %v1073_v1 }
 0x1db   : > { %1685 = vrot.lane.b32.xlu2 %v5742_v28, %s4652_s8  ;;  %2516 = vrot.lane.b32.xlu0 %v2436_v21, %s4653_s22  ;;  %4386 = vrcp.f32 %v719_v62  ;;  %v1098_v38 = vand.u32 2147483648, %v719_v62  ;;  %vm1092_vm2 = vweird.f32 %v719_v62 }
 0x1dc   : > { %2131 = vrot.lane.b32.xlu1 %v5742_v28, %s4651_s20  ;;  %v1075_v7 = vmul.f32 %v4383_v4, %v1074_v61  ;;  %4388 = vpow2.f32 %v4161_v55  ;;  %v512_v43 = vpop.f32.mrf.mxu0 }
 0x1dd   : > { %v2311_v27 = vpop.permute.xlu0 %2310  ;;  %v1485_v14 = vpop.permute.xlu2 %1484  ;;  %v558_v10 = vmul.f32 %v5890_v11, %v512_v43  ;;  %v1099_v50 = vor.u32 1.1754944e-38, %v1098_v38 }
 0x1de   : > { %2397 = vst.msk [vmem:[#allocation3 + $0xe0] sm:$0xff] %vm1745_vm7, %v2311_v27  ;;  %v1483_v13 = vpop.permute.xlu1 %1482  ;;  %v1076_v49 = vadd.f32 %v4383_v4, %v1075_v7  ;;  %v6044_v7 = vld [vmem:[#allocation2 + $0xf8] sm:$0xff] }
 0x1df   : > { %1566 = vst.msk [vmem:[#allocation3 + $0x138] sm:$0xff] %vm1552_vm15, %v1483_v13  ;;  %2950 = vmatmul.f32.gmra.mxu1 %v2706_v39  ;;  %v2701_v18 = vld [vmem:[#allocation3 + $0xc8] sm:$0xff]  ;;  %v6022_v34 = vadd.f32 %v5898_v26, %v558_v10 }
 0x1e0   : > { %1567 = vst.msk [vmem:[#allocation3 + $0x150] sm:$0xff] %vm1552_vm15, %v1485_v14  ;;  %3057 = vmatmul.f32.gmra.mxu2 %v2701_v18  ;;  %v1080_v9 = vsel %vm5974_vm13, %v4383_v4, %v1076_v49  ;;  %v4162_v4 = vmul.f32 -1.442695, %v6019_v0  ;;  %v6054_v14 = vld [vmem:[%s7093_s5] ss:$0 sm:$0xff] }
 0x1e1   : > { %v1085_v63 = vsel %vm1082_vm14, %v1084_v6, %v1080_v9  ;;  %v4387_v41 = vpop.eup %4386  ;;  %v5995_v42 = vld [vmem:[#allocation2 + $0x120] sm:$0xff]  ;;  %v4163_v57 = vmul.f32 -1.442695, %v6022_v34 }
 0x1e2   : > { %v1230_v5 = vmul.f32 %v1085_v63, %v5901_v23  ;;  %v4389_v19 = vpop.eup %4388  ;;  %v1088_v37 = vmul.f32 %v4387_v41, %v719_v62  ;;  %v1413_v23 = vld [vmem:[#allocation2 + $0xf9] sm:$0xff]  ;;  %vm1093_vm3 = vweird.f32 %v4387_v41  ;;  %v1993_v32 = vld [vmem:[#allocation2 + $0x121] sm:$0xff]  ;;  %1384 = vst.msk [vmem:[#allocation3 + $0x240] sm:$0xff] %vm1239_vm1, %v5995_v42 }
 0x1e3   : > { %1878 = vrot.lane.b32.xlu0 %v5835_v35, %s4653_s22  ;;  %1496 = vrot.lane.b32.xlu2 %v2436_v21, %s4651_s20  ;;  %v5993_v47 = vadd.f32 1.0, %v4389_v19  ;;  %2025 = vst.msk [vmem:[#allocation3 + $0x218] sm:$0xff] %vm1239_vm1, %v1993_v32  ;;  %vm6010_vm5 = vmor %vm1092_vm2, %vm1093_vm3 }
 0x1e4   : > { %1876 = vrot.lane.b32.xlu1 %v5908_v20, %s4653_s22  ;;  %1319 = vst.msk [vmem:[#allocation2 + $0x129] sm:$0xff] %vm1239_vm1, %v1230_v5  ;;  %v1089_v53 = vsub.f32 1.0, %v1088_v37  ;;  %v1096_v20 = vand.u32 2147483647, %v719_v62  ;;  %v6063_v62 = vld [vmem:[%s7094_s6] ss:$0 sm:$0xff]  ;;  %v2924_v38 = vpop.f32.mrf.mxu1 }
 0x1e5   : > { %v2122_v30 = vpop.permute.xlu0 %2121  ;;  %v2313_v48 = vpop.permute.xlu2 %2312  ;;  %4390 = vrcp.f32 %v5993_v47  ;;  %v1113_v8 = vand.u32 2147483648, %v5993_v47  ;;  %vm1107_vm8 = vweird.f32 %v5993_v47 }
 0x1e6   : > { %v2503_v29 = vpop.permute.xlu1 %2502  ;;  %2206 = vst.msk [vmem:[#allocation3 + $0x110] sm:$0xff] %vm1552_vm15, %v2122_v30  ;;  %v1090_v44 = vmul.f32 %v4387_v41, %v1089_v53  ;;  %vm1097_vm6 = vcmp.eq.f32.partialorder %v1096_v20, 8.507059e+37  ;;  %4392 = vpow2.f32 %v4162_v4  ;;  %v6088_v20 = vld [vmem:[#allocation2 + $0x108] sm:$0xff] }
 0x1e7   : > { %2589 = vst.msk [vmem:[#allocation3 + $0xe0] sm:$0xff] %vm1938_vm4, %v2503_v29  ;;  %4394 = vpow2.f32 %v4163_v57  ;;  %v1114_v19 = vor.u32 1.1754944e-38, %v1113_v8 }
 0x1eb   : > { %2324 = vrot.lane.b32.xlu2 %v5835_v35, %s4652_s8  ;;  %1498 = vrot.lane.b32.xlu0 %v1413_v23, %s4651_s20  ;;  %v6014_v31 = vld [vmem:[#allocation2 + $0x122] sm:$0xff]  ;;  %v6032_v21 = vpop.eup %4390  ;;  %v6038_v36 = vld [vmem:[#allocation2 + $0x12a] sm:$0xff]  ;;  %v3150_v35 = vpop.f32.mrf.mxu3 }
 0x1ec   : > { %1687 = vrot.lane.b32.xlu1 %v5759_v60, %s4652_s8  ;;  %v1091_v60 = vadd.f32 %v4387_v41, %v1090_v44  ;;  %2664 = vst.msk [vmem:[#allocation3 + $0x1f0] sm:$0xff] %vm1239_vm1, %v6014_v31  ;;  %v1353_v46 = vld [vmem:[#allocation2 + $0x128] sm:$0xff]  ;;  %v1103_v2 = vmul.f32 %v6032_v21, %v5993_v47  ;;  %v4393_v63 = vpop.eup %4392  ;;  %vm1108_vm9 = vweird.f32 %v6032_v21 }
 0x1ed   : > { %v2505_v45 = vpop.permute.xlu0 %2504  ;;  %v6016_v54 = vpop.permute.xlu2 %2506  ;;  %v6040_v27 = vld [vmem:[#allocation2 + $0x129] sm:$0xff]  ;;  %1385 = vst.msk [vmem:[#allocation3 + $0x258] sm:$0xff] %vm1239_vm1, %v1353_v46  ;;  %vm6075_vm10 = vmor %vm1107_vm8, %vm1108_vm9  ;;  %v6080_v37 = vadd.f32 1.0, %v4393_v63 }
 0x1ee   : > { %v2120_v56 = vpop.permute.xlu1 %2119  ;;  %v2704_v58 = vld [vmem:[#allocation3 + $0xe0] sm:$0xff]  ;;  %v1095_v52 = vsel %vm6010_vm5, %v4387_v41, %v1091_v60  ;;  %2665 = vst.msk [vmem:[#allocation3 + $0x208] sm:$0xff] %vm1239_vm1, %v6038_v36  ;;  %v1104_v39 = vsub.f32 1.0, %v1103_v2  ;;  %v4395_v29 = vpop.eup %4394  ;;  %v1111_v41 = vand.u32 2147483647, %v5993_v47 }
 0x1ef   : > { %2205 = vst.msk [vmem:[#allocation3 + $0xf8] sm:$0xff] %vm1552_vm15, %v2120_v56  ;;  %3060 = vmatmul.f32.gmra.mxu2 %v2704_v58  ;;  %v1100_v1 = vsel %vm1097_vm6, %v1099_v50, %v1095_v52  ;;  %v6090_v32 = vadd.f32 1.0, %v4395_v29  ;;  %4396 = vrcp.f32 %v6080_v37  ;;  %v6123_v2 = vld [vmem:[#allocation2 + $0x111] sm:$0xff]  ;;  %vm1122_vm12 = vweird.f32 %v6080_v37  ;;  %v2927_v29 = vpop.f32.mrf.mxu1 }
 0x1f0   : > { %2398 = vst.msk [vmem:[#allocation3 + $0xf8] sm:$0xff] %vm1745_vm7, %v2313_v48  ;;  %v1231_v61 = vmul.f32 %v1100_v1, %v5940_v51  ;;  %v515_v51 = vpop.f32.mrf.mxu0  ;;  %v1105_v9 = vmul.f32 %v6032_v21, %v1104_v39  ;;  %vm1112_vm11 = vcmp.eq.f32.partialorder %v1111_v41, 8.507059e+37 }
 0x1f1   : > { %2590 = vst.msk [vmem:[#allocation3 + $0xf8] sm:$0xff] %vm1938_vm4, %v2505_v45  ;;  %4398 = vrcp.f32 %v6090_v32  ;;  %v559_v56 = vmul.f32 %v5890_v11, %v515_v51  ;;  %vm1137_vm14 = vweird.f32 %v6090_v32 }
 0x1f2   : > { %1320 = vst.msk [vmem:[#allocation2 + $0x139] sm:$0xff] %vm1239_vm1, %v1231_v61  ;;  %v1106_v5 = vadd.f32 %v6032_v21, %v1105_v9 }
 0x1f3   : > { %v3034_v3 = vpop.f32.mrf.mxu2  ;;  %2518 = vrot.lane.b32.xlu2 %v1413_v23, %s4653_s22  ;;  %1689 = vrot.lane.b32.xlu0 %v5831_v15, %s4652_s8  ;;  %v2738_v6 = vld [vmem:[#allocation3 + $0x1f0] sm:$0xff]  ;;  %2026 = vst.msk [vmem:[#allocation3 + $0x230] sm:$0xff] %vm1239_vm1, %v6040_v27  ;;  %v6108_v57 = vadd.f32 %v5898_v26, %v559_v56 }
 0x1f4   : > { %v3035_v13 = vadd.f32 %v3034_v3, %v2921_v17  ;;  %2326 = vrot.lane.b32.xlu1 %v6044_v7, %s4652_s8  ;;  %4188 = vmatmul.msk.f32.gmra.mxu3 %vm1239_vm1, %v2738_v6  ;;  %v1110_v53 = vsel %vm6075_vm10, %v6032_v21, %v1106_v5  ;;  %v1126_v6 = vand.u32 2147483647, %v6080_v37 }
 0x1f5   : > { %v1867_v28 = vpop.permute.xlu0 %1866  ;;  %v2124_v55 = vpop.permute.xlu2 %2123  ;;  %v2741_v44 = vld [vmem:[#allocation3 + $0x208] sm:$0xff]  ;;  %v1115_v10 = vsel %vm1112_vm11, %v1114_v19, %v1110_v53  ;;  %v4164_v1 = vmul.f32 -1.442695, %v6108_v57 }
 0x1f6   : > { %v3148_v18 = vadd.f32 %v3147_v40, %v3035_v13  ;;  %v1865_v49 = vpop.permute.xlu1 %1864  ;;  %1951 = vst.msk [vmem:[#allocation3 + $0x120] sm:$0xff] %vm1938_vm4, %v1867_v28  ;;  %v1232_v50 = vmul.f32 %v1115_v10, %v5970_v16  ;;  %v4397_v21 = vpop.eup %4396  ;;  %vm6153_vm5 = vcmp.eq.f32.partialorder %v1126_v6, 8.507059e+37 }
 0x1f7   : > { %1950 = vst.msk [vmem:[#allocation3 + $0x108] sm:$0xff] %vm1938_vm4, %v1865_v49  ;;  %v6117_v40 = vpop.eup %4398  ;;  %v1118_v61 = vmul.f32 %v4397_v21, %v6080_v37  ;;  %vm1123_vm13 = vweird.f32 %v4397_v21 }
 0x1f8   : > { %v3247_v25 = vmul.f32 %v6054_v14, %v3148_v18  ;;  %2207 = vst.msk [vmem:[#allocation3 + $0x128] sm:$0xff] %vm1552_vm15, %v2124_v55  ;;  %v2707_v30 = vld [vmem:[#allocation3 + $0xf8] sm:$0xff]  ;;  %v518_v47 = vpop.f32.mrf.mxu0  ;;  %v1133_v3 = vmul.f32 %v6117_v40, %v6090_v32  ;;  %v1128_v18 = vand.u32 2147483648, %v6080_v37  ;;  %vm1138_vm2 = vweird.f32 %v6117_v40  ;;  %vm6146_vm3 = vmor %vm1122_vm12, %vm1123_vm13 }
 0x1f9   : > { %3063 = vmatmul.f32.gmra.mxu2 %v2707_v30  ;;  %v560_v60 = vmul.f32 %v5890_v11, %v518_v47  ;;  %1321 = vst.msk [vmem:[#allocation2 + $0x141] sm:$0xff] %vm1239_vm1, %v1232_v50  ;;  %v1119_v28 = vsub.f32 1.0, %v1118_v61  ;;  %vm6167_vm6 = vmor %vm1137_vm14, %vm1138_vm2  ;;  %v1141_v47 = vand.u32 2147483647, %v6090_v32 }
 0x1fa   : > { %v6083_v23 = vadd.f32 %v6063_v62, %v3247_v25  ;;  %v1134_v55 = vsub.f32 1.0, %v1133_v3  ;;  %v1129_v19 = vor.u32 1.1754944e-38, %v1128_v18 }
 0x1fb   : > { %v3037_v43 = vpop.f32.mrf.mxu2  ;;  %2135 = vrot.lane.b32.xlu2 %v5831_v15, %s4651_s20  ;;  %2328 = vrot.lane.b32.xlu0 %v6088_v20, %s4652_s8  ;;  %v6111_v16 = vadd.f32 %v5898_v26, %v560_v60  ;;  %v1414_v26 = vld [vmem:[#allocation2 + $0x109] sm:$0xff]  ;;  %v1120_v9 = vmul.f32 %v4397_v21, %v1119_v28  ;;  %vm1142_vm8 = vcmp.eq.f32.partialorder %v1141_v47, 8.507059e+37 }
 0x1fc   : > { %v4200_v12 = vmul.f32 -1.442695, %v6083_v23  ;;  %v3038_v45 = vadd.f32 %v3037_v43, %v2924_v38  ;;  %2137 = vrot.lane.b32.xlu1 %v5865_v59, %s4651_s20  ;;  %4189 = vmatmul.msk.f32.gmra.mxu3 %vm1239_vm1, %v2741_v44  ;;  %v1135_v37 = vmul.f32 %v6117_v40, %v1134_v55  ;;  %v6160_v38 = vld [vmem:[#allocation2 + $0x138] sm:$0xff]  ;;  %v1143_v44 = vand.u32 2147483648, %v6090_v32 }
 0x1fd   : > { %v1487_v15 = vpop.permute.xlu0 %1486  ;;  %v1869_v52 = vpop.permute.xlu2 %1868  ;;  %v4165_v51 = vmul.f32 -1.442695, %v6111_v16  ;;  %v2712_v25 = vld [vmem:[#allocation3 + $0x120] sm:$0xff]  ;;  %v1121_v48 = vadd.f32 %v4397_v21, %v1120_v9  ;;  %1386 = vst.msk [vmem:[#allocation3 + $0x270] sm:$0xff] %vm1239_vm1, %v6160_v38 }
 0x1fe   : > { %4400 = vpow2.f32 %v4200_v12  ;;  %v3151_v58 = vadd.f32 %v3150_v35, %v3038_v45  ;;  %v1676_v46 = vpop.permute.xlu1 %1675  ;;  %1568 = vst.msk [vmem:[#allocation3 + $0x168] sm:$0xff] %vm1552_vm15, %v1487_v15  ;;  %v2709_v4 = vld [vmem:[#allocation3 + $0x108] sm:$0xff]  ;;  %v1136_v10 = vadd.f32 %v6117_v40, %v1135_v37  ;;  %v1144_v32 = vor.u32 1.1754944e-38, %v1143_v44 }
 0x1ff   : > { %2953 = vmatmul.f32.gmra.mxu1 %v2709_v4  ;;  %1759 = vst.msk [vmem:[#allocation3 + $0x138] sm:$0xff] %vm1745_vm7, %v1676_v46  ;;  %4402 = vpow2.f32 %v4164_v1  ;;  %v1125_v12 = vsel %vm6146_vm3, %v4397_v21, %v1121_v48 }
 0x200   : > { %v3248_v11 = vmul.f32 %v6054_v14, %v3151_v58  ;;  %1952 = vst.msk [vmem:[#allocation3 + $0x138] sm:$0xff] %vm1938_vm4, %v1869_v52  ;;  %v6151_v30 = vld [vmem:[#allocation2 + $0x13a] sm:$0xff]  ;;  %v1130_v15 = vsel %vm6153_vm5, %v1129_v19, %v1125_v12  ;;  %v3153_v58 = vpop.f32.mrf.mxu3  ;;  %v1140_v52 = vsel %vm6167_vm6, %v6117_v40, %v1136_v10  ;;  %v6216_v18 = vld [vmem:[#allocation2 + $0x142] sm:$0xff] }
 0x201   : > { %2666 = vst.msk [vmem:[#allocation3 + $0x220] sm:$0xff] %vm1239_vm1, %v6151_v30  ;;  %v6182_v50 = vld [vmem:[#allocation2 + $0x140] sm:$0xff]  ;;  %v1233_v46 = vmul.f32 %v1130_v15, %v6019_v0 }
 0x202   : > { %v6120_v17 = vadd.f32 %v6063_v62, %v3248_v11  ;;  %v1145_v11 = vsel %vm1142_vm8, %v1144_v32, %v1140_v52  ;;  %1387 = vst.msk [vmem:[#allocation3 + $0x288] sm:$0xff] %vm1239_vm1, %v6182_v50  ;;  %v1996_v9 = vld [vmem:[#allocation2 + $0x141] sm:$0xff] }
 0x203   : > { %1880 = vrot.lane.b32.xlu2 %v6044_v7, %s4653_s22  ;;  %2522 = vrot.lane.b32.xlu0 %v6123_v2, %s4653_s22  ;;  %1322 = vst.msk [vmem:[#allocation2 + $0x151] sm:$0xff] %vm1239_vm1, %v1233_v46  ;;  %v1234_v40 = vmul.f32 %v1145_v11, %v6022_v34 }
 0x204   : > { %v4401_v13 = vpop.eup %4400  ;;  %v4201_v39 = vmul.f32 -1.442695, %v6120_v17  ;;  %1500 = vrot.lane.b32.xlu1 %v1414_v26, %s4651_s20  ;;  %2667 = vst.msk [vmem:[#allocation3 + $0x238] sm:$0xff] %vm1239_vm1, %v6216_v18 }
 0x205   : > { %v6135_v7 = vadd.f32 1.0, %v4401_v13  ;;  %v1678_v49 = vpop.permute.xlu0 %1677  ;;  %v1680_v63 = vpop.permute.xlu2 %1679  ;;  %1323 = vst.msk [vmem:[#allocation2 + $0x159] sm:$0xff] %vm1239_vm1, %v1234_v40 }
 0x206   : > { %4404 = vpow2.f32 %v4201_v39  ;;  %v2315_v8 = vpop.permute.xlu1 %2314  ;;  %1760 = vst.msk [vmem:[#allocation3 + $0x150] sm:$0xff] %vm1745_vm7, %v1678_v49  ;;  %v4403_v53 = vpop.eup %4402 }
 0x207   : > { %4406 = vrcp.f32 %v6135_v7  ;;  %2399 = vst.msk [vmem:[#allocation3 + $0x110] sm:$0xff] %vm1745_vm7, %v2315_v8  ;;  %2956 = vmatmul.f32.gmra.mxu1 %v2712_v25  ;;  %v6178_v35 = vadd.f32 1.0, %v4403_v53  ;;  %v2715_v3 = vld [vmem:[#allocation3 + $0x138] sm:$0xff]  ;;  %v3454_v13 = vand.u32 2147483648, %v6135_v7  ;;  %vm3448_vm9 = vweird.f32 %v6135_v7  ;;  %v2930_v25 = vpop.f32.mrf.mxu1 }
 0x208   : > { %2591 = vst.msk [vmem:[#allocation3 + $0x110] sm:$0xff] %vm1938_vm4, %v6016_v54  ;;  %v6173_v54 = vld [vmem:[#allocation2 + $0x139] sm:$0xff]  ;;  %4408 = vpow2.f32 %v4165_v51  ;;  %v3452_v51 = vand.u32 2147483647, %v6135_v7  ;;  %v2744_v55 = vld [vmem:[#allocation3 + $0x220] sm:$0xff] }
 0x209   : > { %1761 = vst.msk [vmem:[#allocation3 + $0x168] sm:$0xff] %vm1745_vm7, %v1680_v63  ;;  %4410 = vrcp.f32 %v6178_v35  ;;  %4190 = vmatmul.msk.f32.gmra.mxu3 %vm1239_vm1, %v2744_v55  ;;  %v3455_v48 = vor.u32 1.1754944e-38, %v3454_v13  ;;  %vm1152_vm12 = vweird.f32 %v6178_v35  ;;  %v1156_v44 = vand.u32 2147483647, %v6178_v35 }
 0x20a   : > { %v3040_v45 = vpop.f32.mrf.mxu2  ;;  %2027 = vst.msk [vmem:[#allocation3 + $0x248] sm:$0xff] %vm1239_vm1, %v6173_v54  ;;  %vm6232_vm11 = vcmp.eq.f32.partialorder %v3452_v51, 8.507059e+37  ;;  %v1158_v12 = vand.u32 2147483648, %v6178_v35 }
 0x20b   : > { %v3041_v56 = vadd.f32 %v3040_v45, %v2927_v29  ;;  %1691 = vrot.lane.b32.xlu2 %v5865_v59, %s4652_s8  ;;  %2139 = vrot.lane.b32.xlu0 %v5910_v24, %s4651_s20  ;;  %2028 = vst.msk [vmem:[#allocation3 + $0x260] sm:$0xff] %vm1239_vm1, %v1996_v9  ;;  %vm6302_vm6 = vcmp.eq.f32.partialorder %v1156_v44, 8.507059e+37  ;;  %v2747_v55 = vld [vmem:[#allocation3 + $0x238] sm:$0xff]  ;;  %v1997_v9 = vld [vmem:[#allocation2 + $0x151] sm:$0xff] }
 0x20c   : > { %v4405_v60 = vpop.eup %4404  ;;  %2520 = vrot.lane.b32.xlu1 %v1414_v26, %s4653_s22  ;;  %v6284_v11 = vld [vmem:[#allocation2 + $0x152] sm:$0xff]  ;;  %v1159_v40 = vor.u32 1.1754944e-38, %v1158_v12  ;;  %2029 = vst.msk [vmem:[#allocation3 + $0x278] sm:$0xff] %vm1239_vm1, %v1997_v9 }
 0x20d   : > { %v6200_v59 = vpop.eup %4406  ;;  %v6202_v4 = vadd.f32 1.0, %v4405_v60  ;;  %v3154_v21 = vadd.f32 %v3153_v58, %v3041_v56  ;;  %v2317_v1 = vpop.permute.xlu0 %2316  ;;  %2668 = vst.msk [vmem:[#allocation3 + $0x250] sm:$0xff] %vm1239_vm1, %v6284_v11 }
 0x20e   : > { %v3444_v0 = vmul.f32 %v6200_v59, %v6135_v7  ;;  %v2126_v61 = vpop.permute.xlu1 %2125  ;;  %v1491_v26 = vpop.permute.xlu2 %1490  ;;  %2400 = vst.msk [vmem:[#allocation3 + $0x128] sm:$0xff] %vm1745_vm7, %v2317_v1  ;;  %vm3449_vm10 = vweird.f32 %v6200_v59 }
 0x20f   : > { %4412 = vrcp.f32 %v6202_v4  ;;  %2208 = vst.msk [vmem:[#allocation3 + $0x140] sm:$0xff] %vm1552_vm15, %v2126_v61  ;;  %2959 = vmatmul.f32.gmra.mxu1 %v2715_v3  ;;  %v2710_v39 = vld [vmem:[#allocation3 + $0x110] sm:$0xff]  ;;  %v4409_v28 = vpop.eup %4408  ;;  %v3249_v34 = vmul.f32 %v6054_v14, %v3154_v21  ;;  %vm6258_vm14 = vmor %vm3448_vm9, %vm3449_vm10  ;;  %vm3463_vm2 = vweird.f32 %v6202_v4  ;;  %v3156_v60 = vpop.f32.mrf.mxu3  ;;  %v3467_v46 = vand.u32 2147483647, %v6202_v4 }
 0x210   : > { %v3445_v6 = vsub.f32 1.0, %v3444_v0  ;;  %3066 = vmatmul.f32.gmra.mxu2 %v2710_v39  ;;  %v6219_v49 = vadd.f32 1.0, %v4409_v28  ;;  %v6221_v8 = vpop.eup %4410  ;;  %1570 = vst.msk [vmem:[#allocation3 + $0x198] sm:$0xff] %vm1552_vm15, %v1491_v26  ;;  %v3469_v52 = vand.u32 2147483648, %v6202_v4  ;;  %v6296_v26 = vld [vmem:[#allocation2 + $0x158] sm:$0xff] }
 0x211   : > { %v6227_v5 = vadd.f32 %v6063_v62, %v3249_v34  ;;  %v1148_v41 = vmul.f32 %v6221_v8, %v6178_v35  ;;  %vm1153_vm13 = vweird.f32 %v6221_v8  ;;  %v4548_v35 = vld [vmem:[%s4770_s17] sm:$0xff]  ;;  %1389 = vst.msk [vmem:[#allocation3 + $0x2b8] sm:$0xff] %vm1239_vm1, %v6296_v26  ;;  %4191 = vmatmul.msk.f32.gmra.mxu3 %vm1239_vm1, %v2747_v55 }
 0x212   : > { %v3446_v63 = vmul.f32 %v6200_v59, %v3445_v6  ;;  %4414 = vrcp.f32 %v6219_v49  ;;  %vm6291_vm3 = vmor %vm1152_vm12, %vm1153_vm13  ;;  %vm1167_vm8 = vweird.f32 %v6219_v49  ;;  %v6313_v34 = vld [vmem:[#allocation2 + $0x121] sm:$0xff]  ;;  %v1173_v29 = vand.u32 2147483648, %v6219_v49 }
 0x213   : > { %v3043_v19 = vpop.f32.mrf.mxu2  ;;  %1884 = vrot.lane.b32.xlu0 %v5917_v22, %s4653_s22  ;;  %1502 = vrot.lane.b32.xlu2 %v6123_v2, %s4651_s20  ;;  %v4202_v53 = vmul.f32 -1.442695, %v6227_v5  ;;  %v1149_v47 = vsub.f32 1.0, %v1148_v41  ;;  %v2933_v41 = vpop.f32.mrf.mxu1 }
 0x214   : > { %v3447_v37 = vadd.f32 %v6200_v59, %v3446_v63  ;;  %1882 = vrot.lane.b32.xlu1 %v6088_v20, %s4653_s22  ;;  %v3044_v10 = vadd.f32 %v3043_v19, %v2930_v25  ;;  %v6264_v20 = vld [vmem:[#allocation2 + $0x150] sm:$0xff]  ;;  %v1171_v25 = vand.u32 2147483647, %v6219_v49 }
 0x215   : > { %v6252_v2 = vpop.eup %4412  ;;  %v2511_v45 = vpop.permute.xlu0 %2510  ;;  %4416 = vpow2.f32 %v4202_v53  ;;  %1388 = vst.msk [vmem:[#allocation3 + $0x2a0] sm:$0xff] %vm1239_vm1, %v6264_v20 }
 0x216   : > { %v3451_v7 = vsel %vm6258_vm14, %v6200_v59, %v3447_v37  ;;  %v3459_v15 = vmul.f32 %v6252_v2, %v6202_v4  ;;  %v1489_v32 = vpop.permute.xlu1 %1488  ;;  %v2319_v56 = vpop.permute.xlu2 %2318  ;;  %v1150_v59 = vmul.f32 %v6221_v8, %v1149_v47  ;;  %v3157_v61 = vadd.f32 %v3156_v60, %v3044_v10  ;;  %v6371_v60 = vld [vmem:[#allocation2 + $0x15a] sm:$0xff] }
 0x217   : > { %v3456_v58 = vsel %vm6232_vm11, %v3455_v48, %v3451_v7  ;;  %1569 = vst.msk [vmem:[#allocation3 + $0x180] sm:$0xff] %vm1552_vm15, %v1489_v32  ;;  %vm3464_vm5 = vweird.f32 %v6252_v2  ;;  %v3470_v47 = vor.u32 1.1754944e-38, %v3469_v52  ;;  %vm3468_vm11 = vcmp.eq.f32.partialorder %v3467_v46, 8.507059e+37 }
 0x218   : > { %v3923_v21 = vmul.f32 %v3456_v58, %v6083_v23  ;;  %v3460_v1 = vsub.f32 1.0, %v3459_v15  ;;  %2401 = vst.msk [vmem:[#allocation3 + $0x140] sm:$0xff] %vm1745_vm7, %v2319_v56  ;;  %v6298_v3 = vpop.eup %4414  ;;  %v1151_v23 = vadd.f32 %v6221_v8, %v1150_v59  ;;  %v3250_v28 = vmul.f32 %v6054_v14, %v3157_v61  ;;  %vm6346_vm10 = vmor %vm3463_vm2, %vm3464_vm5  ;;  %v3159_v58 = vpop.f32.mrf.mxu3  ;;  %v6376_v59 = vld [vmem:[#allocation2 + $0x159] sm:$0xff] }
 0x219   : > { %2593 = vst.msk [vmem:[#allocation3 + $0x140] sm:$0xff] %vm1938_vm4, %v2511_v45  ;;  %v1163_v6 = vmul.f32 %v6298_v3, %v6219_v49  ;;  %vm1168_vm9 = vweird.f32 %v6298_v3  ;;  %v1174_v56 = vor.u32 1.1754944e-38, %v1173_v29  ;;  %vm1172_vm13 = vcmp.eq.f32.partialorder %v1171_v25, 8.507059e+37 }
 0x21a   : > { %v3955_v13 = vadd.f32 %v4548_v35, %v3923_v21  ;;  %v3461_v39 = vmul.f32 %v6252_v2, %v3460_v1  ;;  %v1155_v63 = vsel %vm6291_vm3, %v6221_v8, %v1151_v23  ;;  %vm6367_vm12 = vmor %vm1167_vm8, %vm1168_vm9  ;;  %v4549_v21 = vld [vmem:[%s4770_s17 + $0x8] sm:$0xff]  ;;  %2669 = vst.msk [vmem:[#allocation3 + $0x268] sm:$0xff] %vm1239_vm1, %v6371_v60 }
 0x21b   : > { %2330 = vrot.lane.b32.xlu2 %v5917_v22, %s4652_s8  ;;  %1504 = vrot.lane.b32.xlu0 %v6313_v34, %s4651_s20  ;;  %v4417_v48 = vpop.eup %4416  ;;  %v1160_v19 = vsel %vm6302_vm6, %v1159_v40, %v1155_v63  ;;  %v6338_v22 = vadd.f32 %v6063_v62, %v3250_v28  ;;  %v1164_v37 = vsub.f32 1.0, %v1163_v6  ;;  %v6383_v40 = vld [vmem:[#allocation2 + $0x128] sm:$0xff]  ;;  %2030 = vst.msk [vmem:[#allocation3 + $0x290] sm:$0xff] %vm1239_vm1, %v6376_v59 }
 0x21c   : > { %3987 = vst.msk [vmem:[%s6330_s19] sm:$0xff] %vm317_vm0, %v3955_v13  ;;  %v3462_v8 = vadd.f32 %v6252_v2, %v3461_v39  ;;  %v3046_v53 = vpop.f32.mrf.mxu2  ;;  %1693 = vrot.lane.b32.xlu1 %v5910_v24, %s4652_s8  ;;  %v6350_v44 = vadd.f32 1.0, %v4417_v48  ;;  %v1235_v12 = vmul.f32 %v1160_v19, %v6108_v57 }
 0x21d   : > { %v3047_v10 = vadd.f32 %v3046_v53, %v2933_v41  ;;  %v2128_v45 = vpop.permute.xlu0 %2127  ;;  %v4203_v4 = vmul.f32 -1.442695, %v6338_v22  ;;  %v1165_v7 = vmul.f32 %v6298_v3, %v1164_v37 }
 0x21e   : > { %v3466_v24 = vsel %vm6346_vm10, %v6252_v2, %v3462_v8  ;;  %v2509_v15 = vpop.permute.xlu1 %2508  ;;  %2209 = vst.msk [vmem:[#allocation3 + $0x158] sm:$0xff] %vm1552_vm15, %v2128_v45  ;;  %v2130_v32 = vpop.permute.xlu2 %2129  ;;  %4418 = vrcp.f32 %v6350_v44  ;;  %v3484_v8 = vand.u32 2147483648, %v6350_v44  ;;  %v3482_v19 = vand.u32 2147483647, %v6350_v44 }
 0x21f   : > { %v3471_v57 = vsel %vm3468_vm11, %v3470_v47, %v3466_v24  ;;  %1324 = vst.msk [vmem:[#allocation2 + $0x169] sm:$0xff] %vm1239_vm1, %v1235_v12  ;;  %4420 = vpow2.f32 %v4203_v4  ;;  %v1166_v52 = vadd.f32 %v6298_v3, %v1165_v7  ;;  %v3160_v49 = vadd.f32 %v3159_v58, %v3047_v10 }
 0x220   : > { %v3924_v46 = vmul.f32 %v3471_v57, %v6120_v17  ;;  %2592 = vst.msk [vmem:[#allocation3 + $0x128] sm:$0xff] %vm1938_vm4, %v2509_v15  ;;  %v2750_v17 = vld [vmem:[#allocation3 + $0x250] sm:$0xff]  ;;  %vm3478_vm2 = vweird.f32 %v6350_v44  ;;  %v3485_v47 = vor.u32 1.1754944e-38, %v3484_v8  ;;  %vm3483_vm5 = vcmp.eq.f32.partialorder %v3482_v19, 8.507059e+37  ;;  %v2716_v15 = vld [vmem:[#allocation3 + $0x140] sm:$0xff] }
 0x221   : > { %2210 = vst.msk [vmem:[#allocation3 + $0x170] sm:$0xff] %vm1552_vm15, %v2130_v32  ;;  %v1170_v0 = vsel %vm6367_vm12, %v6298_v3, %v1166_v52  ;;  %v3251_v23 = vmul.f32 %v6054_v14, %v3160_v49  ;;  %4192 = vmatmul.msk.f32.gmra.mxu3 %vm1239_vm1, %v2750_v17  ;;  %v2753_v37 = vld [vmem:[#allocation3 + $0x268] sm:$0xff]  ;;  %v521_v53 = vpop.f32.mrf.mxu0  ;;  %v4552_v8 = vld [vmem:[%s7092_s4] ss:$0 sm:$0xff] }
 0x222   : > { %v3956_v1 = vadd.f32 %v4549_v21, %v3924_v46  ;;  %v1175_v61 = vsel %vm1172_vm13, %v1174_v56, %v1170_v0  ;;  %v4550_v46 = vld [vmem:[%s4770_s17 + $0x10] sm:$0xff]  ;;  %v2936_v21 = vpop.f32.mrf.mxu1 }
 0x223   : > { %2141 = vrot.lane.b32.xlu2 %v5951_v33, %s4651_s20  ;;  %2334 = vrot.lane.b32.xlu0 %v6383_v40, %s4652_s8  ;;  %v1236_v3 = vmul.f32 %v1175_v61, %v6111_v16  ;;  %v6400_v35 = vadd.f32 %v6063_v62, %v3251_v23 }
 0x224   : > { %3988 = vst.msk [vmem:[%s6330_s19 + $0x8] sm:$0xff] %vm317_vm0, %v3956_v1  ;;  %2332 = vrot.lane.b32.xlu1 %v5995_v42, %s4652_s8  ;;  %v4419_v51 = vpop.eup %4418 }
 0x225   : > { %v1873_v13 = vpop.permute.xlu0 %1872  ;;  %v4421_v39 = vpop.eup %4420  ;;  %v3474_v28 = vmul.f32 %v4419_v51, %v6350_v44  ;;  %1325 = vst.msk [vmem:[#allocation2 + $0x171] sm:$0xff] %vm1239_vm1, %v1236_v3  ;;  %v4204_v63 = vmul.f32 -1.442695, %v6400_v35  ;;  %vm3479_vm14 = vweird.f32 %v4419_v51 }
 0x226   : > { %v1871_v6 = vpop.permute.xlu1 %1870  ;;  %v6405_v55 = vpop.permute.xlu2 %2512  ;;  %v6407_v9 = vld [vmem:[#allocation2 + $0x168] sm:$0xff]  ;;  %v6409_v16 = vadd.f32 1.0, %v4421_v39  ;;  %1954 = vst.msk [vmem:[#allocation3 + $0x168] sm:$0xff] %vm1938_vm4, %v1873_v13  ;;  %vm3480_vm3 = vmor %vm3478_vm2, %vm3479_vm14  ;;  %v4551_v13 = vld [vmem:[%s7091_s3] ss:$0 sm:$0xff] }
 0x227   : > { %1953 = vst.msk [vmem:[#allocation3 + $0x150] sm:$0xff] %vm1938_vm4, %v1871_v6  ;;  %v2713_v25 = vld [vmem:[#allocation3 + $0x128] sm:$0xff]  ;;  %v1999_v29 = vld [vmem:[#allocation2 + $0x169] sm:$0xff]  ;;  %v3475_v48 = vsub.f32 1.0, %v3474_v28  ;;  %v3162_v39 = vpop.f32.mrf.mxu3 }
 0x228   : > { %3069 = vmatmul.f32.gmra.mxu2 %v2713_v25  ;;  %4422 = vrcp.f32 %v6409_v16  ;;  %1390 = vst.msk [vmem:[#allocation3 + $0x2d0] sm:$0xff] %vm1239_vm1, %v6407_v9  ;;  %v3499_v17 = vand.u32 2147483648, %v6409_v16  ;;  %vm3493_vm8 = vweird.f32 %v6409_v16 }
 0x229   : > { %v3476_v41 = vmul.f32 %v4419_v51, %v3475_v48  ;;  %4424 = vpow2.f32 %v4204_v63  ;;  %2031 = vst.msk [vmem:[#allocation3 + $0x2a8] sm:$0xff] %vm1239_vm1, %v1999_v29  ;;  %4193 = vmatmul.msk.f32.gmra.mxu3 %vm1239_vm1, %v2753_v37  ;;  %v524_v23 = vpop.f32.mrf.mxu0 }
 0x22a   : > { %v562_v6 = vmul.f32 %v4551_v13, %v524_v23  ;;  %v3500_v19 = vor.u32 1.1754944e-38, %v3499_v17 }
 0x22b   : > { %2524 = vrot.lane.b32.xlu2 %v6313_v34, %s4653_s22  ;;  %2145 = vrot.lane.b32.xlu0 %v6038_v36, %s4651_s20  ;;  %v3477_v43 = vadd.f32 %v4419_v51, %v3476_v41 }
 0x22c   : > { %1506 = vrot.lane.b32.xlu1 %v6040_v27, %s4651_s20  ;;  %v6429_v4 = vld [vmem:[#allocation2 + $0x16a] sm:$0xff]  ;;  %v6442_v1 = vld [vmem:[#allocation2 + $0x172] sm:$0xff]  ;;  %v6475_v37 = vadd.f32 %v4552_v8, %v562_v6 }
 0x22d   : > { %v1684_v12 = vpop.permute.xlu0 %1683  ;;  %v3481_v10 = vsel %vm3480_vm3, %v4419_v51, %v3477_v43  ;;  %v6432_v32 = vld [vmem:[#allocation2 + $0x170] sm:$0xff]  ;;  %2670 = vst.msk [vmem:[#allocation3 + $0x280] sm:$0xff] %vm1239_vm1, %v6429_v4 }
 0x22e   : > { %1763 = vst.msk [vmem:[#allocation3 + $0x198] sm:$0xff] %vm1745_vm7, %v1684_v12  ;;  %v1682_v34 = vpop.permute.xlu1 %1681  ;;  %v1875_v45 = vpop.permute.xlu2 %1874  ;;  %v2718_v24 = vld [vmem:[#allocation3 + $0x150] sm:$0xff]  ;;  %v3486_v44 = vsel %vm3483_vm5, %v3485_v47, %v3481_v10  ;;  %v6444_v0 = vld [vmem:[#allocation2 + $0x171] sm:$0xff] }
 0x22f   : > { %v4423_v7 = vpop.eup %4422  ;;  %1762 = vst.msk [vmem:[#allocation3 + $0x180] sm:$0xff] %vm1745_vm7, %v1682_v34  ;;  %2962 = vmatmul.f32.gmra.mxu1 %v2718_v24  ;;  %v3925_v2 = vmul.f32 %v3486_v44, %v6227_v5  ;;  %v3497_v5 = vand.u32 2147483647, %v6409_v16  ;;  %v4167_v34 = vmul.f32 -1.442695, %v6475_v37  ;;  %v4553_v44 = vld [vmem:[%s4770_s17 + $0x18] sm:$0xff] }
 0x230   : > { %v4425_v57 = vpop.eup %4424  ;;  %v3489_v56 = vmul.f32 %v4423_v7, %v6409_v16  ;;  %1955 = vst.msk [vmem:[#allocation3 + $0x180] sm:$0xff] %vm1938_vm4, %v1875_v45  ;;  %3072 = vmatmul.f32.gmra.mxu2 %v2716_v15  ;;  %vm3494_vm6 = vweird.f32 %v4423_v7 }
 0x231   : > { %v6437_v58 = vadd.f32 1.0, %v4425_v57  ;;  %v3957_v52 = vadd.f32 %v4550_v46, %v3925_v2  ;;  %1391 = vst.msk [vmem:[#allocation3 + $0x2e8] sm:$0xff] %vm1239_vm1, %v6432_v32  ;;  %vm3495_vm9 = vmor %vm3493_vm8, %vm3494_vm6  ;;  %vm3498_vm10 = vcmp.eq.f32.partialorder %v3497_v5, 8.507059e+37 }
 0x232   : > { %v3490_v49 = vsub.f32 1.0, %v3489_v56  ;;  %2671 = vst.msk [vmem:[#allocation3 + $0x298] sm:$0xff] %vm1239_vm1, %v6442_v1 }
 0x233   : > { %4426 = vrcp.f32 %v6437_v58  ;;  %v3049_v61 = vpop.f32.mrf.mxu2  ;;  %1886 = vrot.lane.b32.xlu2 %v5995_v42, %s4653_s22  ;;  %2528 = vrot.lane.b32.xlu0 %v6173_v54, %s4653_s22  ;;  %3989 = vst.msk [vmem:[%s6330_s19 + $0x10] sm:$0xff] %vm317_vm0, %v3957_v52  ;;  %v561_v42 = vmul.f32 %v4551_v13, %v521_v53  ;;  %vm3508_vm12 = vweird.f32 %v6437_v58 }
 0x234   : > { %v3491_v3 = vmul.f32 %v4423_v7, %v3490_v49  ;;  %v3050_v51 = vadd.f32 %v3049_v61, %v2936_v21  ;;  %2526 = vrot.lane.b32.xlu1 %v6040_v27, %s4653_s22  ;;  %2032 = vst.msk [vmem:[#allocation3 + $0x2c0] sm:$0xff] %vm1239_vm1, %v6444_v0  ;;  %v2721_v27 = vld [vmem:[#allocation3 + $0x168] sm:$0xff]  ;;  %v2756_v47 = vld [vmem:[#allocation3 + $0x280] sm:$0xff] }
 0x235   : > { %v1493_v28 = vpop.permute.xlu0 %1492  ;;  %v6471_v41 = vadd.f32 %v4552_v8, %v561_v42  ;;  %4194 = vmatmul.msk.f32.gmra.mxu3 %vm1239_vm1, %v2756_v47 }
 0x236   : > { %v3492_v63 = vadd.f32 %v4423_v7, %v3491_v3  ;;  %v3163_v25 = vadd.f32 %v3162_v39, %v3050_v51  ;;  %v2321_v29 = vpop.permute.xlu1 %2320  ;;  %1571 = vst.msk [vmem:[#allocation3 + $0x1b0] sm:$0xff] %vm1552_vm15, %v1493_v28  ;;  %v1686_v48 = vpop.permute.xlu2 %1685 }
 0x237   : > { %2402 = vst.msk [vmem:[#allocation3 + $0x158] sm:$0xff] %vm1745_vm7, %v2321_v29  ;;  %2965 = vmatmul.f32.gmra.mxu1 %v2721_v27  ;;  %v4166_v43 = vmul.f32 -1.442695, %v6471_v41  ;;  %v2724_v21 = vld [vmem:[#allocation3 + $0x180] sm:$0xff]  ;;  %v4554_v29 = vld [vmem:[%s4770_s17 + $0x20] sm:$0xff] }
 0x238   : > { %v3496_v16 = vsel %vm3495_vm9, %v4423_v7, %v3492_v63  ;;  %v3252_v53 = vmul.f32 %v6054_v14, %v3163_v25  ;;  %2594 = vst.msk [vmem:[#allocation3 + $0x158] sm:$0xff] %vm1938_vm4, %v6405_v55  ;;  %v6489_v55 = vld [vmem:[#allocation2 + $0x141] sm:$0xff] }
 0x239   : > { %v4427_v12 = vpop.eup %4426  ;;  %v3501_v10 = vsel %vm3498_vm10, %v3500_v19, %v3496_v16  ;;  %1764 = vst.msk [vmem:[#allocation3 + $0x1b0] sm:$0xff] %vm1745_vm7, %v1686_v48  ;;  %4428 = vpow2.f32 %v4166_v43  ;;  %v2759_v5 = vld [vmem:[#allocation3 + $0x298] sm:$0xff] }
 0x23a   : > { %v3926_v45 = vmul.f32 %v3501_v10, %v6338_v22  ;;  %v3504_v24 = vmul.f32 %v4427_v12, %v6437_v58  ;;  %v6487_v7 = vadd.f32 %v6063_v62, %v3252_v53  ;;  %4430 = vpow2.f32 %v4167_v34 }
 0x23b   : > { %1508 = vrot.lane.b32.xlu2 %v6173_v54, %s4651_s20  ;;  %1510 = vrot.lane.b32.xlu0 %v6489_v55, %s4651_s20  ;;  %v3514_v22 = vand.u32 2147483648, %v6437_v58  ;;  %vm3509_vm11 = vweird.f32 %v4427_v12  ;;  %v3512_v54 = vand.u32 2147483647, %v6437_v58 }
 0x23c   : > { %v3958_v15 = vadd.f32 %v4553_v44, %v3926_v45  ;;  %v3505_v57 = vsub.f32 1.0, %v3504_v24  ;;  %v4205_v2 = vmul.f32 -1.442695, %v6487_v7  ;;  %2143 = vrot.lane.b32.xlu1 %v6014_v31, %s4651_s20  ;;  %vm3510_vm13 = vmor %vm3508_vm12, %vm3509_vm11 }
 0x23d   : > { %v2323_v56 = vpop.permute.xlu0 %2322  ;;  %v3515_v3 = vor.u32 1.1754944e-38, %v3514_v22  ;;  %4195 = vmatmul.msk.f32.gmra.mxu3 %vm1239_vm1, %v2759_v5  ;;  %vm3513_vm14 = vcmp.eq.f32.partialorder %v3512_v54, 8.507059e+37 }
 0x23e   : > { %3990 = vst.msk [vmem:[%s6330_s19 + $0x18] sm:$0xff] %vm317_vm0, %v3958_v15  ;;  %v3506_v46 = vmul.f32 %v4427_v12, %v3505_v57  ;;  %4432 = vpow2.f32 %v4205_v2  ;;  %v1495_v52 = vpop.permute.xlu1 %1494  ;;  %v1497_v49 = vpop.permute.xlu2 %1496 }
 0x23f   : > { %2403 = vst.msk [vmem:[#allocation3 + $0x170] sm:$0xff] %vm1745_vm7, %v2323_v56  ;;  %2968 = vmatmul.f32.gmra.mxu1 %v2724_v21  ;;  %v2719_v17 = vld [vmem:[#allocation3 + $0x158] sm:$0xff]  ;;  %v4429_v23 = vpop.eup %4428 }
 0x240   : > { %v3507_v61 = vadd.f32 %v4427_v12, %v3506_v46  ;;  %1572 = vst.msk [vmem:[#allocation3 + $0x1c8] sm:$0xff] %vm1552_vm15, %v1495_v52  ;;  %3075 = vmatmul.f32.gmra.mxu2 %v2719_v17  ;;  %v4431_v51 = vpop.eup %4430  ;;  %v725_v42 = vadd.f32 1.0, %v4429_v23 }
 0x241   : > { %1573 = vst.msk [vmem:[#allocation3 + $0x1e0] sm:$0xff] %vm1552_vm15, %v1497_v49  ;;  %v6513_v58 = vadd.f32 1.0, %v4431_v51 }
 0x242   : > { %v3511_v13 = vsel %vm3510_vm13, %v4427_v12, %v3507_v61  ;;  %4434 = vrcp.f32 %v725_v42  ;;  %v1188_v43 = vand.u32 2147483648, %v725_v42  ;;  %v3165_v12 = vpop.f32.mrf.mxu3  ;;  %vm1182_vm2 = vweird.f32 %v725_v42 }
 0x243   : > { %v3516_v39 = vsel %vm3513_vm14, %v3515_v3, %v3511_v13  ;;  %2336 = vrot.lane.b32.xlu2 %v6160_v38, %s4652_s8  ;;  %1695 = vrot.lane.b32.xlu0 %v5951_v33, %s4652_s8  ;;  %4436 = vrcp.f32 %v6513_v58  ;;  %v1203_v21 = vand.u32 2147483648, %v6513_v58  ;;  %vm1197_vm9 = vweird.f32 %v6513_v58 }
 0x244   : > { %v4433_v28 = vpop.eup %4432  ;;  %v3927_v6 = vmul.f32 %v3516_v39, %v6400_v35  ;;  %1888 = vrot.lane.b32.xlu1 %v6383_v40, %s4653_s22  ;;  %v2939_v35 = vpop.f32.mrf.mxu1  ;;  %v1186_v40 = vand.u32 2147483647, %v725_v42  ;;  %v1189_v52 = vor.u32 1.1754944e-38, %v1188_v43  ;;  %v1201_v51 = vand.u32 2147483647, %v6513_v58 }
 0x245   : > { %v6518_v63 = vadd.f32 1.0, %v4433_v28  ;;  %v2134_v25 = vpop.permute.xlu0 %2133  ;;  %v1204_v13 = vor.u32 1.1754944e-38, %v1203_v21 }
 0x246   : > { %v3959_v48 = vadd.f32 %v4554_v29, %v3927_v6  ;;  %2212 = vst.msk [vmem:[#allocation3 + $0x1a0] sm:$0xff] %vm1552_vm15, %v2134_v25  ;;  %v2515_v33 = vpop.permute.xlu1 %2514  ;;  %v2325_v27 = vpop.permute.xlu2 %2324  ;;  %vm6539_vm5 = vcmp.eq.f32.partialorder %v1186_v40, 8.507059e+37  ;;  %v6575_v25 = vld [vmem:[#allocation2 + $0x169] sm:$0xff]  ;;  %vm1202_vm13 = vcmp.eq.f32.partialorder %v1201_v51, 8.507059e+37 }
 0x247   : > { %4438 = vrcp.f32 %v6518_v63  ;;  %2595 = vst.msk [vmem:[#allocation3 + $0x170] sm:$0xff] %vm1938_vm4, %v2515_v33  ;;  %vm3523_vm6 = vweird.f32 %v6518_v63  ;;  %v3529_v57 = vand.u32 2147483648, %v6518_v63  ;;  %v3527_v28 = vand.u32 2147483647, %v6518_v63  ;;  %v1420_v33 = vld [vmem:[#allocation2 + $0x151] sm:$0xff] }
 0x248   : > { %3991 = vst.msk [vmem:[%s6330_s19 + $0x20] sm:$0xff] %vm317_vm0, %v3959_v48  ;;  %v4435_v8 = vpop.eup %4434 }
 0x249   : > { %v6527_v16 = vpop.eup %4436  ;;  %v1178_v53 = vmul.f32 %v4435_v8, %v725_v42  ;;  %vm1183_vm3 = vweird.f32 %v4435_v8  ;;  %v3530_v40 = vor.u32 1.1754944e-38, %v3529_v57  ;;  %v4557_v57 = vld [vmem:[%s4770_s17 + $0x28] sm:$0xff] }
 0x24a   : > { %v3052_v19 = vpop.f32.mrf.mxu2  ;;  %v1193_v10 = vmul.f32 %v6527_v16, %v6513_v58  ;;  %vm6554_vm8 = vmor %vm1182_vm2, %vm1183_vm3  ;;  %vm1198_vm10 = vweird.f32 %v6527_v16  ;;  %vm3528_vm2 = vcmp.eq.f32.partialorder %v3527_v28, 8.507059e+37 }
 0x24b   : > { %v3053_v47 = vadd.f32 %v3052_v19, %v2939_v35  ;;  %2530 = vrot.lane.b32.xlu2 %v6489_v55, %s4653_s22  ;;  %2340 = vrot.lane.b32.xlu0 %v6264_v20, %s4652_s8  ;;  %v1179_v45 = vsub.f32 1.0, %v1178_v53  ;;  %vm6566_vm11 = vmor %vm1197_vm9, %vm1198_vm10 }
 0x24c   : > { %2338 = vrot.lane.b32.xlu1 %v6182_v50, %s4652_s8  ;;  %v1194_v46 = vsub.f32 1.0, %v1193_v10  ;;  %v2942_v42 = vpop.f32.mrf.mxu1 }
 0x24d   : > { %v6537_v34 = vpop.eup %4438  ;;  %v3166_v55 = vadd.f32 %v3165_v12, %v3053_v47  ;;  %v2517_v44 = vpop.permute.xlu0 %2516  ;;  %v1180_v54 = vmul.f32 %v4435_v8, %v1179_v45 }
 0x24e   : > { %v3519_v15 = vmul.f32 %v6537_v34, %v6518_v63  ;;  %v2132_v2 = vpop.permute.xlu1 %2131  ;;  %v6547_v22 = vpop.permute.xlu2 %2518  ;;  %v2722_v56 = vld [vmem:[#allocation3 + $0x170] sm:$0xff]  ;;  %v1195_v61 = vmul.f32 %v6527_v16, %v1194_v46  ;;  %vm3524_vm12 = vweird.f32 %v6537_v34 }
 0x24f   : > { %v3253_v49 = vmul.f32 %v6054_v14, %v3166_v55  ;;  %2211 = vst.msk [vmem:[#allocation3 + $0x188] sm:$0xff] %vm1552_vm15, %v2132_v2  ;;  %3078 = vmatmul.f32.gmra.mxu2 %v2722_v56  ;;  %v1181_v14 = vadd.f32 %v4435_v8, %v1180_v54  ;;  %vm3525_vm14 = vmor %vm3523_vm6, %vm3524_vm12 }
 0x250   : > { %v3520_v5 = vsub.f32 1.0, %v3519_v15  ;;  %2404 = vst.msk [vmem:[#allocation3 + $0x188] sm:$0xff] %vm1745_vm7, %v2325_v27  ;;  %v1196_v6 = vadd.f32 %v6527_v16, %v1195_v61  ;;  %v3168_v27 = vpop.f32.mrf.mxu3 }
 0x251   : > { %v6563_v23 = vadd.f32 %v6063_v62, %v3253_v49  ;;  %2596 = vst.msk [vmem:[#allocation3 + $0x188] sm:$0xff] %vm1938_vm4, %v2517_v44  ;;  %v1185_v29 = vsel %vm6554_vm8, %v4435_v8, %v1181_v14  ;;  %v6611_v44 = vld [vmem:[%s7094_s6] ss:$0 sm:$0xff] }
 0x252   : > { %v3521_v39 = vmul.f32 %v6537_v34, %v3520_v5  ;;  %v3055_v62 = vpop.f32.mrf.mxu2  ;;  %v1190_v19 = vsel %vm6539_vm5, %v1189_v52, %v1185_v29  ;;  %v1200_v8 = vsel %vm6566_vm11, %v6527_v16, %v1196_v6 }
 0x253   : > { %v4206_v48 = vmul.f32 -1.442695, %v6563_v23  ;;  %v3056_v58 = vadd.f32 %v3055_v62, %v2942_v42  ;;  %2147 = vrot.lane.b32.xlu2 %v6151_v30, %s4651_s20  ;;  %1516 = vrot.lane.b32.xlu0 %v6575_v25, %s4651_s20  ;;  %v1237_v53 = vmul.f32 %v1190_v19, %v6471_v41  ;;  %v1205_v43 = vsel %vm1202_vm13, %v1204_v13, %v1200_v8  ;;  %v6603_v41 = vld [vmem:[%s7093_s5] ss:$0 sm:$0xff] }
 0x254   : > { %v3522_v35 = vadd.f32 %v6537_v34, %v3521_v39  ;;  %1512 = vrot.lane.b32.xlu1 %v1420_v33, %s4651_s20  ;;  %v1238_v45 = vmul.f32 %v1205_v43, %v6475_v37  ;;  %v2945_v61 = vpop.f32.mrf.mxu1 }
 0x255   : > { %4440 = vpow2.f32 %v4206_v48  ;;  %v3169_v47 = vadd.f32 %v3168_v27, %v3056_v58  ;;  %v1879_v12 = vpop.permute.xlu0 %1878  ;;  %1326 = vst.msk [vmem:[#allocation2 + $0x181] sm:$0xff] %vm1239_vm1, %v1237_v53 }
 0x256   : > { %v3526_v10 = vsel %vm3525_vm14, %v6537_v34, %v3522_v35  ;;  %v1877_v16 = vpop.permute.xlu1 %1876  ;;  %1957 = vst.msk [vmem:[#allocation3 + $0x1b0] sm:$0xff] %vm1938_vm4, %v1879_v12  ;;  %v2136_v24 = vpop.permute.xlu2 %2135 }
 0x257   : > { %v3531_v55 = vsel %vm3528_vm2, %v3530_v40, %v3526_v10  ;;  %v3254_v63 = vmul.f32 %v6603_v41, %v3169_v47  ;;  %1327 = vst.msk [vmem:[#allocation2 + $0x189] sm:$0xff] %vm1239_vm1, %v1238_v45 }
 0x258   : > { %v3928_v34 = vmul.f32 %v3531_v55, %v6487_v7  ;;  %v2725_v37 = vld [vmem:[#allocation3 + $0x188] sm:$0xff]  ;;  %1956 = vst.msk [vmem:[#allocation3 + $0x198] sm:$0xff] %vm1938_vm4, %v1877_v16  ;;  %v3171_v42 = vpop.f32.mrf.mxu3 }
 0x259   : > { %v6614_v15 = vadd.f32 %v6611_v44, %v3254_v63  ;;  %3081 = vmatmul.f32.gmra.mxu2 %v2725_v37  ;;  %2213 = vst.msk [vmem:[#allocation3 + $0x1b8] sm:$0xff] %vm1552_vm15, %v2136_v24 }
 0x25a   : > { %v3960_v2 = vadd.f32 %v4557_v57, %v3928_v34 }
 0x25b   : > { %v4441_v56 = vpop.eup %4440  ;;  %v4207_v7 = vmul.f32 -1.442695, %v6614_v15  ;;  %1514 = vrot.lane.b32.xlu2 %v6376_v59, %s4651_s20  ;;  %1890 = vrot.lane.b32.xlu0 %v6160_v38, %s4653_s22 }
 0x25c   : > { %3992 = vst.msk [vmem:[%s6330_s19 + $0x28] sm:$0xff] %vm317_vm0, %v3960_v2  ;;  %v3417_v46 = vadd.f32 1.0, %v4441_v56  ;;  %2532 = vrot.lane.b32.xlu1 %v1420_v33, %s4653_s22  ;;  %v6631_v5 = vld [vmem:[#allocation2 + $0x181] sm:$0xff]  ;;  %v4558_v56 = vld [vmem:[%s4770_s17 + $0x30] sm:$0xff] }
 0x25d   : > { %4442 = vpow2.f32 %v4207_v7  ;;  %v1499_v54 = vpop.permute.xlu0 %1498  ;;  %2033 = vst.msk [vmem:[#allocation3 + $0x2d8] sm:$0xff] %vm1239_vm1, %v6631_v5  ;;  %v2730_v48 = vld [vmem:[#allocation3 + $0x1b0] sm:$0xff] }
 0x25e   : > { %4444 = vrcp.f32 %v3417_v46  ;;  %v1688_v52 = vpop.permute.xlu1 %1687  ;;  %v1881_v49 = vpop.permute.xlu2 %1880  ;;  %1574 = vst.msk [vmem:[#allocation3 + $0x1f8] sm:$0xff] %vm1552_vm15, %v1499_v54  ;;  %v6629_v21 = vld [vmem:[#allocation2 + $0x182] sm:$0xff]  ;;  %v3542_v27 = vand.u32 2147483647, %v3417_v46  ;;  %v6654_v40 = vld [vmem:[#allocation2 + $0x18a] sm:$0xff]  ;;  %vm3538_vm5 = vweird.f32 %v3417_v46 }
 0x25f   : > { %1765 = vst.msk [vmem:[#allocation3 + $0x1c8] sm:$0xff] %vm1745_vm7, %v1688_v52  ;;  %v2727_v38 = vld [vmem:[#allocation3 + $0x198] sm:$0xff] }
 0x260   : > { %1958 = vst.msk [vmem:[#allocation3 + $0x1c8] sm:$0xff] %vm1938_vm4, %v1881_v49  ;;  %2971 = vmatmul.f32.gmra.mxu1 %v2727_v38  ;;  %v6656_v19 = vld [vmem:[#allocation2 + $0x189] sm:$0xff]  ;;  %vm3543_vm8 = vcmp.eq.f32.partialorder %v3542_v27, 8.507059e+37 }
 0x261   : > { %2672 = vst.msk [vmem:[#allocation3 + $0x2b0] sm:$0xff] %vm1239_vm1, %v6629_v21 }
 0x262   : > { %2673 = vst.msk [vmem:[#allocation3 + $0x2c8] sm:$0xff] %vm1239_vm1, %v6654_v40 }
 0x263   : > { %v4443_v17 = vpop.eup %4442  ;;  %v3058_v14 = vpop.f32.mrf.mxu2  ;;  %1697 = vrot.lane.b32.xlu2 %v6014_v31, %s4652_s8  ;;  %2534 = vrot.lane.b32.xlu0 %v6376_v59, %s4653_s22  ;;  %v3544_v59 = vand.u32 2147483648, %v3417_v46  ;;  %2034 = vst.msk [vmem:[#allocation3 + $0x2f0] sm:$0xff] %vm1239_vm1, %v6656_v19 }
 0x264   : > { %v4445_v3 = vpop.eup %4444  ;;  %v6642_v51 = vadd.f32 1.0, %v4443_v17  ;;  %v3059_v13 = vadd.f32 %v3058_v14, %v2945_v61  ;;  %2149 = vrot.lane.b32.xlu1 %v6216_v18, %s4651_s20 }
 0x265   : > { %v3534_v39 = vmul.f32 %v4445_v3, %v3417_v46  ;;  %v1690_v28 = vpop.permute.xlu0 %1689  ;;  %vm3539_vm3 = vweird.f32 %v4445_v3  ;;  %v3545_v43 = vor.u32 1.1754944e-38, %v3544_v59 }
 0x266   : > { %4446 = vrcp.f32 %v6642_v51  ;;  %v2327_v6 = vpop.permute.xlu1 %2326  ;;  %v1692_v62 = vpop.permute.xlu2 %1691  ;;  %1766 = vst.msk [vmem:[#allocation3 + $0x1e0] sm:$0xff] %vm1745_vm7, %v1690_v28  ;;  %v3172_v29 = vadd.f32 %v3171_v42, %v3059_v13  ;;  %vm3540_vm6 = vmor %vm3538_vm5, %vm3539_vm3  ;;  %v3559_v57 = vand.u32 2147483648, %v6642_v51  ;;  %v3557_v54 = vand.u32 2147483647, %v6642_v51 }
 0x267   : > { %v3535_v31 = vsub.f32 1.0, %v3534_v39  ;;  %2405 = vst.msk [vmem:[#allocation3 + $0x1a0] sm:$0xff] %vm1745_vm7, %v2327_v6  ;;  %v2733_v2 = vld [vmem:[#allocation3 + $0x1c8] sm:$0xff]  ;;  %vm3553_vm10 = vweird.f32 %v6642_v51 }
 0x268   : > { %2597 = vst.msk [vmem:[#allocation3 + $0x1a0] sm:$0xff] %vm1938_vm4, %v6547_v22  ;;  %v2762_v58 = vld [vmem:[#allocation3 + $0x2b0] sm:$0xff]  ;;  %v3255_v35 = vmul.f32 %v6603_v41, %v3172_v29  ;;  %2974 = vmatmul.f32.gmra.mxu1 %v2730_v48  ;;  %v3560_v17 = vor.u32 1.1754944e-38, %v3559_v57  ;;  %vm3558_vm12 = vcmp.eq.f32.partialorder %v3557_v54, 8.507059e+37 }
 0x269   : > { %v3536_v33 = vmul.f32 %v4445_v3, %v3535_v31  ;;  %1767 = vst.msk [vmem:[#allocation3 + $0x1f8] sm:$0xff] %vm1745_vm7, %v1692_v62  ;;  %4196 = vmatmul.msk.f32.gmra.mxu3 %vm1239_vm1, %v2762_v58  ;;  %v2765_v52 = vld [vmem:[#allocation3 + $0x2c8] sm:$0xff] }
 0x26a   : > { %v6659_v22 = vadd.f32 %v6611_v44, %v3255_v35 }
 0x26b   : > { %v3537_v8 = vadd.f32 %v4445_v3, %v3536_v33  ;;  %2342 = vrot.lane.b32.xlu2 %v6296_v26, %s4652_s8  ;;  %2151 = vrot.lane.b32.xlu0 %v6284_v11, %s4651_s20 }
 0x26c   : > { %v4447_v53 = vpop.eup %4446  ;;  %1518 = vrot.lane.b32.xlu1 %v6444_v0, %s4651_s20  ;;  %v4208_v10 = vmul.f32 -1.442695, %v6659_v22 }
 0x26d   : > { %v3541_v47 = vsel %vm3540_vm6, %v4445_v3, %v3537_v8  ;;  %v3549_v12 = vmul.f32 %v4447_v53, %v6642_v51  ;;  %v2329_v45 = vpop.permute.xlu0 %2328  ;;  %vm3554_vm9 = vweird.f32 %v4447_v53  ;;  %v3174_v3 = vpop.f32.mrf.mxu3 }
 0x26e   : > { %v3546_v16 = vsel %vm3543_vm8, %v3545_v43, %v3541_v47  ;;  %v2138_v24 = vpop.permute.xlu1 %2137  ;;  %2406 = vst.msk [vmem:[#allocation3 + $0x1b8] sm:$0xff] %vm1745_vm7, %v2329_v45  ;;  %v1503_v55 = vpop.permute.xlu2 %1502  ;;  %4448 = vpow2.f32 %v4208_v10  ;;  %vm3555_vm11 = vmor %vm3553_vm10, %vm3554_vm9 }
 0x26f   : > { %v3929_v63 = vmul.f32 %v3546_v16, %v6563_v23  ;;  %v3550_v34 = vsub.f32 1.0, %v3549_v12  ;;  %2214 = vst.msk [vmem:[#allocation3 + $0x1d0] sm:$0xff] %vm1552_vm15, %v2138_v24  ;;  %v2728_v37 = vld [vmem:[#allocation3 + $0x1a0] sm:$0xff]  ;;  %v2948_v23 = vpop.f32.mrf.mxu1 }
 0x270   : > { %1576 = vst.msk [vmem:[#allocation3 + $0x228] sm:$0xff] %vm1552_vm15, %v1503_v55  ;;  %3084 = vmatmul.f32.gmra.mxu2 %v2728_v37  ;;  %2977 = vmatmul.f32.gmra.mxu1 %v2733_v2 }
 0x271   : > { %v3961_v7 = vadd.f32 %v4558_v56, %v3929_v63  ;;  %v3551_v46 = vmul.f32 %v4447_v53, %v3550_v34  ;;  %4197 = vmatmul.msk.f32.gmra.mxu3 %vm1239_vm1, %v2765_v52 }
 0x272   : > { %v3061_v38 = vpop.f32.mrf.mxu2 }
 0x273   : > { %3993 = vst.msk [vmem:[%s6330_s19 + $0x30] sm:$0xff] %vm317_vm0, %v3961_v7  ;;  %v3552_v49 = vadd.f32 %v4447_v53, %v3551_v46  ;;  %1892 = vrot.lane.b32.xlu2 %v6182_v50, %s4653_s22  ;;  %1701 = vrot.lane.b32.xlu0 %v6151_v30, %s4652_s8  ;;  %v3062_v61 = vadd.f32 %v3061_v38, %v2948_v23  ;;  %v4560_v23 = vld [vmem:[%s4770_s17 + $0x40] sm:$0xff] }
 0x274   : > { %1699 = vrot.lane.b32.xlu1 %v6038_v36, %s4652_s8  ;;  %v4449_v14 = vpop.eup %4448  ;;  %v4559_v36 = vld [vmem:[%s4770_s17 + $0x38] sm:$0xff] }
 0x275   : > { %v3556_v13 = vsel %vm3555_vm11, %v4447_v53, %v3552_v49  ;;  %v2523_v51 = vpop.permute.xlu0 %2522  ;;  %v3419_v50 = vadd.f32 1.0, %v4449_v14  ;;  %v3175_v39 = vadd.f32 %v3174_v3, %v3062_v61  ;;  %v3177_v48 = vpop.f32.mrf.mxu3 }
 0x276   : > { %v3561_v42 = vsel %vm3558_vm12, %v3560_v17, %v3556_v13  ;;  %v1501_v28 = vpop.permute.xlu1 %1500  ;;  %v2331_v30 = vpop.permute.xlu2 %2330 }
 0x277   : > { %v3930_v6 = vmul.f32 %v3561_v42, %v6614_v15  ;;  %1575 = vst.msk [vmem:[#allocation3 + $0x210] sm:$0xff] %vm1552_vm15, %v1501_v28  ;;  %4450 = vrcp.f32 %v3419_v50  ;;  %v3256_v31 = vmul.f32 %v6603_v41, %v3175_v39  ;;  %v2951_v15 = vpop.f32.mrf.mxu1  ;;  %v3574_v10 = vand.u32 2147483648, %v3419_v50 }
 0x278   : > { %2407 = vst.msk [vmem:[#allocation3 + $0x1d0] sm:$0xff] %vm1745_vm7, %v2331_v30  ;;  %v3572_v16 = vand.u32 2147483647, %v3419_v50  ;;  %vm3568_vm14 = vweird.f32 %v3419_v50 }
 0x279   : > { %v3962_v62 = vadd.f32 %v4559_v36, %v3930_v6  ;;  %2599 = vst.msk [vmem:[#allocation3 + $0x1d0] sm:$0xff] %vm1938_vm4, %v2523_v51  ;;  %v6700_v29 = vadd.f32 %v6611_v44, %v3256_v31  ;;  %v3575_v57 = vor.u32 1.1754944e-38, %v3574_v10  ;;  %v6741_v51 = vld [vmem:[#allocation2 + $0x180] sm:$0xff]  ;;  %v4561_v10 = vld [vmem:[%s4770_s17 + $0x48] sm:$0xff] }
 0x27a   : > { %vm3573_vm3 = vcmp.eq.f32.partialorder %v3572_v16, 8.507059e+37 }
 0x27b   : > { %3994 = vst.msk [vmem:[%s6330_s19 + $0x38] sm:$0xff] %vm317_vm0, %v3962_v62  ;;  %2536 = vrot.lane.b32.xlu2 %v6575_v25, %s4653_s22  ;;  %2346 = vrot.lane.b32.xlu0 %v6432_v32, %s4652_s8  ;;  %v4209_v58 = vmul.f32 -1.442695, %v6700_v29 }
 0x27c   : > { %v3064_v59 = vpop.f32.mrf.mxu2  ;;  %2344 = vrot.lane.b32.xlu1 %v6407_v9, %s4652_s8 }
 0x27d   : > { %v3065_v33 = vadd.f32 %v3064_v59, %v2951_v15  ;;  %v2140_v27 = vpop.permute.xlu0 %2139  ;;  %v4451_v35 = vpop.eup %4450  ;;  %4452 = vpow2.f32 %v4209_v58 }
 0x27e   : > { %v2521_v8 = vpop.permute.xlu1 %2520  ;;  %2215 = vst.msk [vmem:[#allocation3 + $0x1e8] sm:$0xff] %vm1552_vm15, %v2140_v27  ;;  %v2142_v53 = vpop.permute.xlu2 %2141  ;;  %v3564_v43 = vmul.f32 %v4451_v35, %v3419_v50  ;;  %vm3569_vm13 = vweird.f32 %v4451_v35 }
 0x27f   : > { %v3178_v25 = vadd.f32 %v3177_v48, %v3065_v33  ;;  %2598 = vst.msk [vmem:[#allocation3 + $0x1b8] sm:$0xff] %vm1938_vm4, %v2521_v8  ;;  %vm3570_vm2 = vmor %vm3568_vm14, %vm3569_vm13  ;;  %v2954_v39 = vpop.f32.mrf.mxu1  ;;  %v3180_v6 = vpop.f32.mrf.mxu3 }
 0x280   : > { %2216 = vst.msk [vmem:[#allocation3 + $0x200] sm:$0xff] %vm1552_vm15, %v2142_v53  ;;  %v3565_v47 = vsub.f32 1.0, %v3564_v43  ;;  %v2734_v13 = vld [vmem:[#allocation3 + $0x1d0] sm:$0xff] }
 0x281   : > { %v3257_v12 = vmul.f32 %v6603_v41, %v3178_v25 }
 0x282   : > { %v3566_v45 = vmul.f32 %v4451_v35, %v3565_v47 }
 0x283   : > { %v6714_v24 = vadd.f32 %v6611_v44, %v3257_v12  ;;  %2153 = vrot.lane.b32.xlu2 %v6371_v60, %s4651_s20  ;;  %1896 = vrot.lane.b32.xlu0 %v6296_v26, %s4653_s22  ;;  %v4453_v55 = vpop.eup %4452 }
 0x284   : > { %1894 = vrot.lane.b32.xlu1 %v6264_v20, %s4653_s22  ;;  %v3567_v63 = vadd.f32 %v4451_v35, %v3566_v45  ;;  %v3420_v2 = vadd.f32 1.0, %v4453_v55 }
 0x285   : > { %v4210_v34 = vmul.f32 -1.442695, %v6714_v24  ;;  %v1885_v37 = vpop.permute.xlu0 %1884 }
 0x286   : > { %v1883_v56 = vpop.permute.xlu1 %1882  ;;  %1960 = vst.msk [vmem:[#allocation3 + $0x1f8] sm:$0xff] %vm1938_vm4, %v1885_v37  ;;  %v2525_v7 = vpop.permute.xlu2 %2524  ;;  %v2731_v46 = vld [vmem:[#allocation3 + $0x1b8] sm:$0xff]  ;;  %v3571_v26 = vsel %vm3570_vm2, %v4451_v35, %v3567_v63  ;;  %v3587_v50 = vand.u32 2147483647, %v3420_v2  ;;  %vm3583_vm6 = vweird.f32 %v3420_v2 }
 0x287   : > { %4454 = vpow2.f32 %v4210_v34  ;;  %1959 = vst.msk [vmem:[#allocation3 + $0x1e0] sm:$0xff] %vm1938_vm4, %v1883_v56  ;;  %3087 = vmatmul.f32.gmra.mxu2 %v2731_v46  ;;  %v3576_v20 = vsel %vm3573_vm3, %v3575_v57, %v3571_v26  ;;  %v4562_v26 = vld [vmem:[%s4770_s17 + $0x50] sm:$0xff] }
 0x288   : > { %4456 = vrcp.f32 %v3420_v2  ;;  %v3931_v54 = vmul.f32 %v3576_v20, %v6659_v22  ;;  %vm3588_vm9 = vcmp.eq.f32.partialorder %v3587_v50, 8.507059e+37  ;;  %v2451_v50 = vld [vmem:[#allocation2 + $0x1a1] sm:$0xff] }
 0x28a   : > { %v3963_v52 = vadd.f32 %v4560_v23, %v3931_v54  ;;  %v6779_v54 = vld [vmem:[#allocation2 + $0x188] sm:$0xff] }
 0x28b   : > { %1703 = vrot.lane.b32.xlu2 %v6216_v18, %s4652_s8  ;;  %2540 = vrot.lane.b32.xlu0 %v6631_v5, %s4653_s22  ;;  %v3589_v5 = vand.u32 2147483648, %v3420_v2 }
 0x28c   : > { %2538 = vrot.lane.b32.xlu1 %v6444_v0, %s4653_s22  ;;  %3995 = vst.msk [vmem:[%s6330_s19 + $0x40] sm:$0xff] %vm317_vm0, %v3963_v52 }
 0x28d   : > { %v4455_v49 = vpop.eup %4454  ;;  %v1505_v38 = vpop.permute.xlu0 %1504  ;;  %v3590_v15 = vor.u32 1.1754944e-38, %v3589_v5  ;;  %v2739_v33 = vld [vmem:[#allocation3 + $0x1f8] sm:$0xff] }
 0x28e   : > { %v4457_v17 = vpop.eup %4456  ;;  %v6735_v61 = vadd.f32 1.0, %v4455_v49  ;;  %v1694_v14 = vpop.permute.xlu1 %1693  ;;  %1577 = vst.msk [vmem:[#allocation3 + $0x240] sm:$0xff] %vm1552_vm15, %v1505_v38  ;;  %v2736_v3 = vld [vmem:[#allocation3 + $0x1e0] sm:$0xff] }
 0x28f   : > { %v1887_v22 = vpop.permute.xlu2 %1886  ;;  %v3579_v18 = vmul.f32 %v4457_v17, %v3420_v2  ;;  %1768 = vst.msk [vmem:[#allocation3 + $0x210] sm:$0xff] %vm1745_vm7, %v1694_v14  ;;  %2980 = vmatmul.f32.gmra.mxu1 %v2736_v3  ;;  %3090 = vmatmul.f32.gmra.mxu2 %v2734_v13  ;;  %vm3584_vm5 = vweird.f32 %v4457_v17 }
 0x290   : > { %4458 = vrcp.f32 %v6735_v61  ;;  %1961 = vst.msk [vmem:[#allocation3 + $0x210] sm:$0xff] %vm1938_vm4, %v1887_v22  ;;  %vm3585_vm8 = vmor %vm3583_vm6, %vm3584_vm5  ;;  %v3604_v47 = vand.u32 2147483648, %v6735_v61  ;;  %v3602_v55 = vand.u32 2147483647, %v6735_v61  ;;  %vm3598_vm11 = vweird.f32 %v6735_v61  ;;  %v3183_v22 = vpop.f32.mrf.mxu3 }
 0x291   : > { %v3580_v0 = vsub.f32 1.0, %v3579_v18 }
 0x292   : > { %v3605_v37 = vor.u32 1.1754944e-38, %v3604_v47  ;;  %vm3603_vm13 = vcmp.eq.f32.partialorder %v3602_v55, 8.507059e+37 }
 0x293   : > { %v3581_v42 = vmul.f32 %v4457_v17, %v3580_v0  ;;  %v3067_v28 = vpop.f32.mrf.mxu2  ;;  %2157 = vrot.lane.b32.xlu0 %v6442_v1, %s4651_s20  ;;  %2348 = vrot.lane.b32.xlu2 %v6741_v51, %s4652_s8 }
 0x294   : > { %v3068_v30 = vadd.f32 %v3067_v28, %v2954_v39  ;;  %2155 = vrot.lane.b32.xlu1 %v6429_v4, %s4651_s20  ;;  %v2450_v39 = vld [vmem:[#allocation2 + $0x199] sm:$0xff] }
 0x295   : > { %v3582_v36 = vadd.f32 %v4457_v17, %v3581_v42  ;;  %v2335_v62 = vpop.permute.xlu0 %2334 }
 0x296   : > { %v4459_v31 = vpop.eup %4458  ;;  %v3181_v59 = vadd.f32 %v3180_v6, %v3068_v30  ;;  %v2333_v48 = vpop.permute.xlu1 %2332  ;;  %2409 = vst.msk [vmem:[#allocation3 + $0x200] sm:$0xff] %vm1745_vm7, %v2335_v62 }
 0x297   : > { %v1509_v58 = vpop.permute.xlu2 %1508  ;;  %v3586_v27 = vsel %vm3585_vm8, %v4457_v17, %v3582_v36  ;;  %v3594_v35 = vmul.f32 %v4459_v31, %v6735_v61  ;;  %2408 = vst.msk [vmem:[#allocation3 + $0x1e8] sm:$0xff] %vm1745_vm7, %v2333_v48  ;;  %2983 = vmatmul.f32.gmra.mxu1 %v2739_v33  ;;  %vm3599_vm10 = vweird.f32 %v4459_v31 }
 0x298   : > { %v3591_v8 = vsel %vm3588_vm9, %v3590_v15, %v3586_v27  ;;  %v3258_v53 = vmul.f32 %v6603_v41, %v3181_v59  ;;  %2600 = vst.msk [vmem:[#allocation3 + $0x1e8] sm:$0xff] %vm1938_vm4, %v2525_v7  ;;  %vm3600_vm12 = vmor %vm3598_vm11, %vm3599_vm10  ;;  %v2258_v7 = vld [vmem:[#allocation2 + $0x198] sm:$0xff]  ;;  %v3186_v48 = vpop.f32.mrf.mxu3 }
 0x299   : > { %v3932_v43 = vmul.f32 %v3591_v8, %v6700_v29  ;;  %v3595_v25 = vsub.f32 1.0, %v3594_v35  ;;  %1579 = vst.msk [vmem:[#allocation3 + $0x270] sm:$0xff] %vm1552_vm15, %v1509_v58 }
 0x29a   : > { %v6758_v12 = vadd.f32 %v6611_v44, %v3258_v53 }
 0x29b   : > { %v3964_v45 = vadd.f32 %v4561_v10, %v3932_v43  ;;  %v3596_v16 = vmul.f32 %v4459_v31, %v3595_v25  ;;  %1707 = vrot.lane.b32.xlu0 %v6371_v60, %s4652_s8  ;;  %1898 = vrot.lane.b32.xlu2 %v6407_v9, %s4653_s22  ;;  %v2742_v9 = vld [vmem:[#allocation3 + $0x210] sm:$0xff] }
 0x29c   : > { %v4211_v29 = vmul.f32 -1.442695, %v6758_v12  ;;  %1705 = vrot.lane.b32.xlu1 %v6284_v11, %s4652_s8  ;;  %v2259_v10 = vld [vmem:[#allocation2 + $0x1a0] sm:$0xff] }
 0x29d   : > { %3996 = vst.msk [vmem:[%s6330_s19 + $0x48] sm:$0xff] %vm317_vm0, %v3964_v45  ;;  %v3597_v63 = vadd.f32 %v4459_v31, %v3596_v16  ;;  %v2146_v34 = vpop.permute.xlu0 %2145  ;;  %v4563_v45 = vld [vmem:[%s4770_s17 + $0x58] sm:$0xff] }
 0x29e   : > { %4460 = vpow2.f32 %v4211_v29  ;;  %2218 = vst.msk [vmem:[#allocation3 + $0x230] sm:$0xff] %vm1552_vm15, %v2146_v34  ;;  %v1507_v60 = vpop.permute.xlu1 %1506 }
 0x29f   : > { %v2337_v57 = vpop.permute.xlu2 %2336  ;;  %v3601_v2 = vsel %vm3600_vm12, %v4459_v31, %v3597_v63  ;;  %1578 = vst.msk [vmem:[#allocation3 + $0x258] sm:$0xff] %vm1552_vm15, %v1507_v60  ;;  %2986 = vmatmul.f32.gmra.mxu1 %v2742_v9  ;;  %v2737_v11 = vld [vmem:[#allocation3 + $0x1e8] sm:$0xff] }
 0x2a0   : > { %v3606_v56 = vsel %vm3603_vm13, %v3605_v37, %v3601_v2  ;;  %3093 = vmatmul.f32.gmra.mxu2 %v2737_v11 }
 0x2a1   : > { %v3933_v46 = vmul.f32 %v3606_v56, %v6714_v24  ;;  %v2957_v24 = vpop.f32.mrf.mxu1 }
 0x2a3   : > { %v3965_v20 = vadd.f32 %v4562_v26, %v3933_v46  ;;  %2352 = vrot.lane.b32.xlu0 %v2258_v7, %s4652_s8  ;;  %2542 = vrot.lane.b32.xlu2 %v6656_v19, %s4653_s22  ;;  %v3189_v7 = vpop.f32.mrf.mxu3 }
 0x2a4   : > { %v4461_v23 = vpop.eup %4460  ;;  %2350 = vrot.lane.b32.xlu1 %v6779_v54, %s4652_s8 }
 0x2a5   : > { %3997 = vst.msk [vmem:[%s6330_s19 + $0x50] sm:$0xff] %vm317_vm0, %v3965_v20  ;;  %v3422_v52 = vadd.f32 1.0, %v4461_v23  ;;  %v2529_v49 = vpop.permute.xlu0 %2528 }
 0x2a6   : > { %v2527_v38 = vpop.permute.xlu1 %2526 }
 0x2a7   : > { %v6785_v17 = vpop.permute.xlu2 %2530  ;;  %4462 = vrcp.f32 %v3422_v52  ;;  %2601 = vst.msk [vmem:[#allocation3 + $0x200] sm:$0xff] %vm1938_vm4, %v2527_v38  ;;  %v3617_v30 = vand.u32 2147483647, %v3422_v52  ;;  %vm3613_vm2 = vweird.f32 %v3422_v52 }
 0x2a9   : > { %v2960_v36 = vpop.f32.mrf.mxu1  ;;  %vm3618_vm5 = vcmp.eq.f32.partialorder %v3617_v30, 8.507059e+37 }
 0x2ab   : > { %v3070_v61 = vpop.f32.mrf.mxu2  ;;  %1902 = vrot.lane.b32.xlu0 %v6741_v51, %s4653_s22  ;;  %2159 = vrot.lane.b32.xlu2 %v6629_v21, %s4651_s20 }
 0x2ac   : > { %v3071_v19 = vadd.f32 %v3070_v61, %v2957_v24  ;;  %1900 = vrot.lane.b32.xlu1 %v6432_v32, %s4653_s22  ;;  %v3619_v32 = vand.u32 2147483648, %v3422_v52 }
 0x2ad   : > { %v4463_v14 = vpop.eup %4462  ;;  %v1511_v3 = vpop.permute.xlu0 %1510 }
 0x2ae   : > { %v3609_v13 = vmul.f32 %v4463_v14, %v3422_v52  ;;  %v3184_v18 = vadd.f32 %v3183_v22, %v3071_v19  ;;  %v2144_v0 = vpop.permute.xlu1 %2143  ;;  %1580 = vst.msk [vmem:[#allocation3 + $0x288] sm:$0xff] %vm1552_vm15, %v1511_v3  ;;  %v2740_v42 = vld [vmem:[#allocation3 + $0x200] sm:$0xff]  ;;  %vm3614_vm14 = vweird.f32 %v4463_v14  ;;  %v3620_v58 = vor.u32 1.1754944e-38, %v3619_v32 }
 0x2af   : > { %v2148_v5 = vpop.permute.xlu2 %2147  ;;  %2217 = vst.msk [vmem:[#allocation3 + $0x218] sm:$0xff] %vm1552_vm15, %v2144_v0  ;;  %3096 = vmatmul.f32.gmra.mxu2 %v2740_v42  ;;  %vm3615_vm3 = vmor %vm3613_vm2, %vm3614_vm14 }
 0x2b0   : > { %v3610_v51 = vsub.f32 1.0, %v3609_v13  ;;  %v3259_v21 = vmul.f32 %v6603_v41, %v3184_v18  ;;  %2410 = vst.msk [vmem:[#allocation3 + $0x218] sm:$0xff] %vm1745_vm7, %v2337_v57 }
 0x2b1   : > { %2602 = vst.msk [vmem:[#allocation3 + $0x218] sm:$0xff] %vm1938_vm4, %v2529_v49  ;;  %v2963_v9 = vpop.f32.mrf.mxu1 }
 0x2b2   : > { %v3611_v28 = vmul.f32 %v4463_v14, %v3610_v51  ;;  %v6800_v6 = vadd.f32 %v6611_v44, %v3259_v21  ;;  %2219 = vst.msk [vmem:[#allocation3 + $0x248] sm:$0xff] %vm1552_vm15, %v2148_v5 }
 0x2b3   : > { %v3073_v62 = vpop.f32.mrf.mxu2  ;;  %1709 = vrot.lane.b32.xlu2 %v6429_v4, %s4652_s8  ;;  %2546 = vrot.lane.b32.xlu0 %v2451_v50, %s4653_s22 }
 0x2b4   : > { %v3612_v31 = vadd.f32 %v4463_v14, %v3611_v28  ;;  %v4212_v15 = vmul.f32 -1.442695, %v6800_v6  ;;  %v3074_v59 = vadd.f32 %v3073_v62, %v2960_v36  ;;  %2544 = vrot.lane.b32.xlu1 %v2450_v39, %s4653_s22  ;;  %v4564_v28 = vld [vmem:[%s4770_s17 + $0x60] sm:$0xff] }
 0x2b5   : > { %v1696_v33 = vpop.permute.xlu0 %1695 }
 0x2b6   : > { %v3616_v27 = vsel %vm3615_vm3, %v4463_v14, %v3612_v31  ;;  %4464 = vpow2.f32 %v4212_v15  ;;  %v3187_v35 = vadd.f32 %v3186_v48, %v3074_v59  ;;  %v1889_v8 = vpop.permute.xlu1 %1888  ;;  %1769 = vst.msk [vmem:[#allocation3 + $0x228] sm:$0xff] %vm1745_vm7, %v1696_v33 }
 0x2b7   : > { %v1515_v4 = vpop.permute.xlu2 %1514  ;;  %v3621_v53 = vsel %vm3618_vm5, %v3620_v58, %v3616_v27  ;;  %1962 = vst.msk [vmem:[#allocation3 + $0x228] sm:$0xff] %vm1938_vm4, %v1889_v8  ;;  %v3192_v58 = vpop.f32.mrf.mxu3 }
 0x2b8   : > { %v3934_v43 = vmul.f32 %v3621_v53, %v6758_v12  ;;  %v3260_v25 = vmul.f32 %v6603_v41, %v3187_v35  ;;  %1582 = vst.msk [vmem:[#allocation3 + $0x2b8] sm:$0xff] %vm1552_vm15, %v1515_v4  ;;  %v2743_v47 = vld [vmem:[#allocation3 + $0x218] sm:$0xff] }
 0x2b9   : > { %3099 = vmatmul.f32.gmra.mxu2 %v2743_v47  ;;  %v2966_v31 = vpop.f32.mrf.mxu1 }
 0x2ba   : > { %v3966_v16 = vadd.f32 %v4563_v45, %v3934_v43  ;;  %v6815_v55 = vadd.f32 %v6611_v44, %v3260_v25 }
 0x2bb   : > { %2354 = vrot.lane.b32.xlu2 %v2259_v10, %s4652_s8 }
 0x2bc   : > { %v4465_v29 = vpop.eup %4464  ;;  %3998 = vst.msk [vmem:[%s6330_s19 + $0x58] sm:$0xff] %vm317_vm0, %v3966_v16  ;;  %v4213_v63 = vmul.f32 -1.442695, %v6815_v55  ;;  %2161 = vrot.lane.b32.xlu1 %v6654_v40, %s4651_s20  ;;  %s4602_s20 = scalar_lea.hbm %s4601_s18, 256 }
 0x2bd   : > { %v3423_v12 = vadd.f32 1.0, %v4465_v29  ;;  %v2341_v34 = vpop.permute.xlu0 %2340  ;;  %v4565_v29 = vld [vmem:[%s4770_s17 + $0x68] sm:$0xff]  ;;  %p4603_p11 = scmp.ne.s32.totalorder %s4601_s18, %s4602_s20  ;;  %p4608_p1 = scmp.lt.s32.totalorder %s4606_s21, %s4602_s20 }
 0x2be   : > { %4466 = vpow2.f32 %v4213_v63  ;;  %v2339_v37 = vpop.permute.xlu1 %2338  ;;  %2412 = vst.msk [vmem:[#allocation3 + $0x248] sm:$0xff] %vm1745_vm7, %v2341_v34  ;;  %v2745_v57 = vld [vmem:[#allocation3 + $0x228] sm:$0xff] }
 0x2bf   : > { %v1698_v60 = vpop.permute.xlu2 %1697  ;;  %4468 = vrcp.f32 %v3423_v12  ;;  %2411 = vst.msk [vmem:[#allocation3 + $0x230] sm:$0xff] %vm1745_vm7, %v2339_v37  ;;  %2989 = vmatmul.f32.gmra.mxu1 %v2745_v57  ;;  %v3632_v61 = vand.u32 2147483647, %v3423_v12  ;;  %vm3628_vm8 = vweird.f32 %v3423_v12  ;;  %p4604_p12 = pnand %p4603_p11, %p4734_p5  ;;  %p4609_p2 = por %p4608_p1, %p4607_p0 }
 0x2c0   : > { %2603 = vst.msk [vmem:[#allocation3 + $0x230] sm:$0xff] %vm1938_vm4, %v6785_v17 }
 0x2c1   : > { %1770 = vst.msk [vmem:[#allocation3 + $0x240] sm:$0xff] %vm1745_vm7, %v1698_v60  ;;  %vm3633_vm10 = vcmp.eq.f32.partialorder %v3632_v61, 8.507059e+37  ;;  %v2969_v34 = vpop.f32.mrf.mxu1  ;;  %p4605_p13 = pneg %p4604_p12 }
 0x2c3   : > { %v3076_v2 = vpop.f32.mrf.mxu2  ;;  %1904 = vrot.lane.b32.xlu2 %v6779_v54, %s4653_s22  ;;  %p4610_p3 = pnand %p4609_p2, %p4605_p13 }
 0x2c4   : > { %v4467_v40 = vpop.eup %4466  ;;  %v3077_v11 = vadd.f32 %v3076_v2, %v2963_v9  ;;  %1711 = vrot.lane.b32.xlu1 %v6442_v1, %s4652_s8  ;;  %v3634_v1 = vand.u32 2147483648, %v3423_v12  ;;  %v3195_v2 = vpop.f32.mrf.mxu3 }
 0x2c5   : > { %v4469_v56 = vpop.eup %4468  ;;  %v3424_v46 = vadd.f32 1.0, %v4467_v40  ;;  %v1517_v26 = vpop.permute.xlu0 %1516 }
 0x2c6   : > { %v3624_v20 = vmul.f32 %v4469_v56, %v3423_v12  ;;  %v3190_v23 = vadd.f32 %v3189_v7, %v3077_v11  ;;  %v1513_v52 = vpop.permute.xlu1 %1512  ;;  %1583 = vst.msk [vmem:[#allocation3 + $0x2d0] sm:$0xff] %vm1552_vm15, %v1517_v26  ;;  %vm3629_vm6 = vweird.f32 %v4469_v56  ;;  %v3635_v13 = vor.u32 1.1754944e-38, %v3634_v1 }
 0x2c7   : > { %v6832_v49 = vpop.permute.xlu2 %2342  ;;  %4470 = vrcp.f32 %v3424_v46  ;;  %1581 = vst.msk [vmem:[#allocation3 + $0x2a0] sm:$0xff] %vm1552_vm15, %v1513_v52  ;;  %v2746_v54 = vld [vmem:[#allocation3 + $0x230] sm:$0xff]  ;;  %vm3630_vm9 = vmor %vm3628_vm8, %vm3629_vm6  ;;  %v3649_v39 = vand.u32 2147483648, %v3424_v46  ;;  %v3647_v62 = vand.u32 2147483647, %v3424_v46  ;;  %vm3643_vm12 = vweird.f32 %v3424_v46 }
 0x2c8   : > { %v3625_v38 = vsub.f32 1.0, %v3624_v20  ;;  %v3261_v17 = vmul.f32 %v6603_v41, %v3190_v23  ;;  %3102 = vmatmul.f32.gmra.mxu2 %v2746_v54 }
 0x2c9   : > { %v3650_v27 = vor.u32 1.1754944e-38, %v3649_v39  ;;  %vm3648_vm14 = vcmp.eq.f32.partialorder %v3647_v62, 8.507059e+37 }
 0x2ca   : > { %v3626_v24 = vmul.f32 %v4469_v56, %v3625_v38  ;;  %v6838_v19 = vadd.f32 %v6611_v44, %v3261_v17 }
 0x2cc   : > { %v3627_v14 = vadd.f32 %v4469_v56, %v3626_v24  ;;  %v4214_v22 = vmul.f32 -1.442695, %v6838_v19 }
 0x2cd   : > { %v4471_v3 = vpop.eup %4470  ;;  %v1891_v18 = vpop.permute.xlu0 %1890 }
 0x2ce   : > { %v3631_v0 = vsel %vm3630_vm9, %v4469_v56, %v3627_v14  ;;  %v3639_v5 = vmul.f32 %v4471_v3, %v3424_v46  ;;  %4472 = vpow2.f32 %v4214_v22  ;;  %v2533_v42 = vpop.permute.xlu1 %2532  ;;  %1963 = vst.msk [vmem:[#allocation3 + $0x240] sm:$0xff] %vm1938_vm4, %v1891_v18  ;;  %vm3644_vm11 = vweird.f32 %v4471_v3  ;;  %v4566_v18 = vld [vmem:[%s4770_s17 + $0x70] sm:$0xff] }
 0x2cf   : > { %v6841_v51 = vpop.permute.xlu2 %1892  ;;  %v3636_v21 = vsel %vm3633_vm10, %v3635_v13, %v3631_v0  ;;  %2604 = vst.msk [vmem:[#allocation3 + $0x248] sm:$0xff] %vm1938_vm4, %v2533_v42  ;;  %vm3645_vm13 = vmor %vm3643_vm12, %vm3644_vm11 }
 0x2d0   : > { %v3935_v50 = vmul.f32 %v3636_v21, %v6800_v6  ;;  %v3640_v32 = vsub.f32 1.0, %v3639_v5 }
 0x2d2   : > { %v3967_v30 = vadd.f32 %v4564_v28, %v3935_v50  ;;  %v3641_v36 = vmul.f32 %v4471_v3, %v3640_v32  ;;  %v3079_v15 = vpop.f32.mrf.mxu2 }
 0x2d3   : > { %v3080_v59 = vadd.f32 %v3079_v15, %v2966_v31 }
 0x2d4   : > { %v4473_v48 = vpop.eup %4472  ;;  %3999 = vst.msk [vmem:[%s6330_s19 + $0x60] sm:$0xff] %vm317_vm0, %v3967_v30  ;;  %v3642_v33 = vadd.f32 %v4471_v3, %v3641_v36 }
 0x2d5   : > { %v3425_v35 = vadd.f32 1.0, %v4473_v48  ;;  %v3193_v6 = vadd.f32 %v3192_v58, %v3080_v59  ;;  %v2535_v8 = vpop.permute.xlu0 %2534  ;;  %v2748_v4 = vld [vmem:[#allocation3 + $0x240] sm:$0xff]  ;;  %v3198_v58 = vpop.f32.mrf.mxu3 }
 0x2d6   : > { %v3646_v53 = vsel %vm3645_vm13, %v4471_v3, %v3642_v33  ;;  %v2150_v43 = vpop.permute.xlu1 %2149  ;;  %2992 = vmatmul.f32.gmra.mxu1 %v2748_v4  ;;  %v2749_v47 = vld [vmem:[#allocation3 + $0x248] sm:$0xff] }
 0x2d7   : > { %v6849_v25 = vpop.permute.xlu2 %2536  ;;  %v3651_v10 = vsel %vm3648_vm14, %v3650_v27, %v3646_v53  ;;  %4474 = vrcp.f32 %v3425_v35  ;;  %2220 = vst.msk [vmem:[#allocation3 + $0x260] sm:$0xff] %vm1552_vm15, %v2150_v43  ;;  %3105 = vmatmul.f32.gmra.mxu2 %v2749_v47  ;;  %v3262_v16 = vmul.f32 %v6603_v41, %v3193_v6  ;;  %v3664_v20 = vand.u32 2147483648, %v3425_v35 }
 0x2d8   : > { %v3936_v45 = vmul.f32 %v3651_v10, %v6815_v55  ;;  %2413 = vst.msk [vmem:[#allocation3 + $0x260] sm:$0xff] %vm1745_vm7, %v6832_v49  ;;  %v3662_v49 = vand.u32 2147483647, %v3425_v35  ;;  %vm3658_vm3 = vweird.f32 %v3425_v35  ;;  %v6894_v10 = vld [vmem:[%s7093_s5] ss:$0 sm:$0xff] }
 0x2d9   : > { %2605 = vst.msk [vmem:[#allocation3 + $0x260] sm:$0xff] %vm1938_vm4, %v2535_v8  ;;  %v6859_v12 = vadd.f32 %v6611_v44, %v3262_v16  ;;  %v3665_v1 = vor.u32 1.1754944e-38, %v3664_v20 }
 0x2da   : > { %v3968_v63 = vadd.f32 %v4565_v29, %v3936_v45  ;;  %vm3663_vm6 = vcmp.eq.f32.partialorder %v3662_v49, 8.507059e+37  ;;  %v4568_v29 = vld [vmem:[%s4770_s17 + $0x78] sm:$0xff]  ;;  %v4570_v49 = vld [vmem:[%s4770_s17 + $0x80] sm:$0xff] }
 0x2db   : > { %v4215_v37 = vmul.f32 -1.442695, %v6859_v12 }
 0x2dc   : > { %4000 = vst.msk [vmem:[%s6330_s19 + $0x68] sm:$0xff] %vm317_vm0, %v3968_v63  ;;  %v3082_v60 = vpop.f32.mrf.mxu2 }
 0x2dd   : > { %v4475_v57 = vpop.eup %4474  ;;  %v3083_v55 = vadd.f32 %v3082_v60, %v2969_v34  ;;  %v2152_v9 = vpop.permute.xlu0 %2151  ;;  %4476 = vpow2.f32 %v4215_v37  ;;  %v6902_v37 = vld [vmem:[%s7094_s6] ss:$0 sm:$0xff] }
 0x2de   : > { %v3654_v40 = vmul.f32 %v4475_v57, %v3425_v35  ;;  %2221 = vst.msk [vmem:[#allocation3 + $0x278] sm:$0xff] %vm1552_vm15, %v2152_v9  ;;  %v1519_v7 = vpop.permute.xlu1 %1518  ;;  %vm3659_vm2 = vweird.f32 %v4475_v57  ;;  %v2972_v31 = vpop.f32.mrf.mxu1 }
 0x2df   : > { %v2154_v11 = vpop.permute.xlu2 %2153  ;;  %v3196_v56 = vadd.f32 %v3195_v2, %v3083_v55  ;;  %1584 = vst.msk [vmem:[#allocation3 + $0x2e8] sm:$0xff] %vm1552_vm15, %v1519_v7  ;;  %vm3660_vm5 = vmor %vm3658_vm3, %vm3659_vm2 }
 0x2e0   : > { %2222 = vst.msk [vmem:[#allocation3 + $0x290] sm:$0xff] %vm1552_vm15, %v2154_v11  ;;  %v3655_v46 = vsub.f32 1.0, %v3654_v40  ;;  %v2752_v26 = vld [vmem:[#allocation3 + $0x260] sm:$0xff] }
 0x2e1   : > { %v3263_v23 = vmul.f32 %v6603_v41, %v3196_v56  ;;  %3108 = vmatmul.f32.gmra.mxu2 %v2752_v26 }
 0x2e2   : > { %v3656_v52 = vmul.f32 %v4475_v57, %v3655_v46 }
 0x2e3   : > { %v6869_v54 = vadd.f32 %v6611_v44, %v3263_v23  ;;  %v4477_v38 = vpop.eup %4476 }
 0x2e4   : > { %v3657_v17 = vadd.f32 %v4475_v57, %v3656_v52  ;;  %v3426_v24 = vadd.f32 1.0, %v4477_v38 }
 0x2e5   : > { %v4216_v61 = vmul.f32 -1.442695, %v6869_v54  ;;  %v1702_v14 = vpop.permute.xlu0 %1701 }
 0x2e6   : > { %v3661_v22 = vsel %vm3660_vm5, %v4475_v57, %v3657_v17  ;;  %1772 = vst.msk [vmem:[#allocation3 + $0x270] sm:$0xff] %vm1745_vm7, %v1702_v14  ;;  %4478 = vrcp.f32 %v3426_v24  ;;  %v1700_v44 = vpop.permute.xlu1 %1699  ;;  %v3679_v36 = vand.u32 2147483648, %v3426_v24  ;;  %v3677_v62 = vand.u32 2147483647, %v3426_v24 }
 0x2e7   : > { %v1704_v41 = vpop.permute.xlu2 %1703  ;;  %v3666_v3 = vsel %vm3663_vm6, %v3665_v1, %v3661_v22  ;;  %4480 = vpow2.f32 %v4216_v61  ;;  %1771 = vst.msk [vmem:[#allocation3 + $0x258] sm:$0xff] %vm1745_vm7, %v1700_v44  ;;  %vm3673_vm9 = vweird.f32 %v3426_v24  ;;  %v3201_v44 = vpop.f32.mrf.mxu3 }
 0x2e8   : > { %1773 = vst.msk [vmem:[#allocation3 + $0x288] sm:$0xff] %vm1745_vm7, %v1704_v41  ;;  %v3937_v13 = vmul.f32 %v3666_v3, %v6838_v19  ;;  %v3680_v33 = vor.u32 1.1754944e-38, %v3679_v36  ;;  %vm3678_vm11 = vcmp.eq.f32.partialorder %v3677_v62, 8.507059e+37  ;;  %v2975_v41 = vpop.f32.mrf.mxu1 }
 0x2e9   : > { %1964 = vst.msk [vmem:[#allocation3 + $0x258] sm:$0xff] %vm1938_vm4, %v6841_v51 }
 0x2ea   : > { %v3969_v0 = vadd.f32 %v4566_v18, %v3937_v13  ;;  %v2642_v13 = vld [vmem:[#allocation2 + $0x19a] sm:$0xff] }
 0x2eb   : > { %2674 = vst.msk [vmem:[#allocation3 + $0x2e0] sm:$0xff] %vm1239_vm1, %v2642_v13 }
 0x2ec   : > { %4001 = vst.msk [vmem:[%s6330_s19 + $0x70] sm:$0xff] %vm317_vm0, %v3969_v0  ;;  %v4479_v5 = vpop.eup %4478 }
 0x2ed   : > { %v2347_v42 = vpop.permute.xlu0 %2346  ;;  %v4481_v21 = vpop.eup %4480  ;;  %v3669_v50 = vmul.f32 %v4479_v5, %v3426_v24  ;;  %vm3674_vm8 = vweird.f32 %v4479_v5 }
 0x2ee   : > { %2415 = vst.msk [vmem:[#allocation3 + $0x290] sm:$0xff] %vm1745_vm7, %v2347_v42  ;;  %v3427_v39 = vadd.f32 1.0, %v4481_v21  ;;  %v2345_v19 = vpop.permute.xlu1 %2344  ;;  %vm3675_vm10 = vmor %vm3673_vm9, %vm3674_vm8 }
 0x2ef   : > { %v6882_v32 = vpop.permute.xlu2 %2348  ;;  %v3670_v28 = vsub.f32 1.0, %v3669_v50  ;;  %2414 = vst.msk [vmem:[#allocation3 + $0x278] sm:$0xff] %vm1745_vm7, %v2345_v19 }
 0x2f0   : > { %v2751_v30 = vld [vmem:[#allocation3 + $0x258] sm:$0xff]  ;;  %4482 = vrcp.f32 %v3427_v39  ;;  %2606 = vst.msk [vmem:[#allocation3 + $0x278] sm:$0xff] %vm1938_vm4, %v6849_v25  ;;  %v3694_v60 = vand.u32 2147483648, %v3427_v39  ;;  %v3692_v55 = vand.u32 2147483647, %v3427_v39  ;;  %vm3688_vm13 = vweird.f32 %v3427_v39  ;;  %v2978_v36 = vpop.f32.mrf.mxu1 }
 0x2f1   : > { %2995 = vmatmul.f32.gmra.mxu1 %v2751_v30  ;;  %v3671_v51 = vmul.f32 %v4479_v5, %v3670_v28 }
 0x2f2   : > { %v3695_v56 = vor.u32 1.1754944e-38, %v3694_v60  ;;  %vm3693_vm2 = vcmp.eq.f32.partialorder %v3692_v55, 8.507059e+37 }
 0x2f3   : > { %v3085_v15 = vpop.f32.mrf.mxu2  ;;  %v3672_v59 = vadd.f32 %v4479_v5, %v3671_v51 }
 0x2f4   : > { %v3086_v48 = vadd.f32 %v3085_v15, %v2972_v31 }
 0x2f5   : > { %v1897_v27 = vpop.permute.xlu0 %1896  ;;  %v3676_v35 = vsel %vm3675_vm10, %v4479_v5, %v3672_v59 }
 0x2f6   : > { %v3199_v6 = vadd.f32 %v3198_v58, %v3086_v48  ;;  %1966 = vst.msk [vmem:[#allocation3 + $0x288] sm:$0xff] %vm1938_vm4, %v1897_v27  ;;  %v4483_v4 = vpop.eup %4482  ;;  %v3681_v53 = vsel %vm3678_vm11, %v3680_v33, %v3676_v35  ;;  %v1895_v43 = vpop.permute.xlu1 %1894  ;;  %v2768_v33 = vld [vmem:[#allocation3 + $0x2e0] sm:$0xff] }
 0x2f7   : > { %v6888_v8 = vpop.permute.xlu2 %1898  ;;  %v3938_v25 = vmul.f32 %v3681_v53, %v6859_v12  ;;  %v3684_v47 = vmul.f32 %v4483_v4, %v3427_v39  ;;  %1965 = vst.msk [vmem:[#allocation3 + $0x270] sm:$0xff] %vm1938_vm4, %v1895_v43  ;;  %v2755_v16 = vld [vmem:[#allocation3 + $0x278] sm:$0xff]  ;;  %vm3689_vm12 = vweird.f32 %v4483_v4  ;;  %v3204_v48 = vpop.f32.mrf.mxu3  ;;  %4198 = vmatmul.msk.f32.gmra.mxu3 %vm1239_vm1, %v2768_v33 }
 0x2f8   : > { %v3264_v45 = vmul.f32 %v6894_v10, %v3199_v6  ;;  %3111 = vmatmul.f32.gmra.mxu2 %v2755_v16  ;;  %vm3690_vm14 = vmor %vm3688_vm13, %vm3689_vm12 }
 0x2f9   : > { %v3970_v63 = vadd.f32 %v4568_v29, %v3938_v25  ;;  %v3685_v34 = vsub.f32 1.0, %v3684_v47  ;;  %v2643_v25 = vld [vmem:[#allocation2 + $0x1a2] sm:$0xff] }
 0x2fa   : > { %v6905_v12 = vadd.f32 %v6902_v37, %v3264_v45  ;;  %v4571_v29 = vld [vmem:[%s4770_s17 + $0x88] sm:$0xff]  ;;  %2675 = vst.msk [vmem:[#allocation3 + $0x2f8] sm:$0xff] %vm1239_vm1, %v2643_v25 }
 0x2fb   : > { %4002 = vst.msk [vmem:[%s6330_s19 + $0x78] sm:$0xff] %vm317_vm0, %v3970_v63  ;;  %v3686_v57 = vmul.f32 %v4483_v4, %v3685_v34 }
 0x2fc   : > { %v4217_v9 = vmul.f32 -1.442695, %v6905_v12 }
 0x2fd   : > { %v2541_v2 = vpop.permute.xlu0 %2540  ;;  %v3687_v40 = vadd.f32 %v4483_v4, %v3686_v57  ;;  %v2757_v14 = vld [vmem:[#allocation3 + $0x288] sm:$0xff] }
 0x2fe   : > { %4484 = vpow2.f32 %v4217_v9  ;;  %v2539_v7 = vpop.permute.xlu1 %2538  ;;  %v2754_v46 = vld [vmem:[#allocation3 + $0x270] sm:$0xff] }
 0x2ff   : > { %v6910_v11 = vpop.permute.xlu2 %2542  ;;  %v3691_v26 = vsel %vm3690_vm14, %v4483_v4, %v3687_v40  ;;  %2607 = vst.msk [vmem:[#allocation3 + $0x290] sm:$0xff] %vm1938_vm4, %v2539_v7  ;;  %2998 = vmatmul.f32.gmra.mxu1 %v2754_v46 }
 0x300   : > { %v3696_v20 = vsel %vm3693_vm2, %v3695_v56, %v3691_v26 }
 0x301   : > { %v3939_v23 = vmul.f32 %v3696_v20, %v6869_v54 }
 0x303   : > { %v3971_v38 = vadd.f32 %v4570_v49, %v3939_v23  ;;  %v3207_v23 = vpop.f32.mrf.mxu3 }
 0x304   : > { %v4485_v52 = vpop.eup %4484 }
 0x305   : > { %v3428_v17 = vadd.f32 1.0, %v4485_v52  ;;  %v2158_v1 = vpop.permute.xlu0 %2157  ;;  %4003 = vst.msk [vmem:[%s6330_s19 + $0x80] sm:$0xff] %vm317_vm0, %v3971_v38 }
 0x306   : > { %v2156_v61 = vpop.permute.xlu1 %2155  ;;  %2224 = vst.msk [vmem:[#allocation3 + $0x2c0] sm:$0xff] %vm1552_vm15, %v2158_v1  ;;  %v2758_v22 = vld [vmem:[#allocation3 + $0x290] sm:$0xff] }
 0x307   : > { %v2160_v24 = vpop.permute.xlu2 %2159  ;;  %4486 = vrcp.f32 %v3428_v17  ;;  %2223 = vst.msk [vmem:[#allocation3 + $0x2a8] sm:$0xff] %vm1552_vm15, %v2156_v61  ;;  %3001 = vmatmul.f32.gmra.mxu1 %v2757_v14  ;;  %3114 = vmatmul.f32.gmra.mxu2 %v2758_v22  ;;  %v3709_v19 = vand.u32 2147483648, %v3428_v17  ;;  %v3707_v62 = vand.u32 2147483647, %v3428_v17  ;;  %vm3703_vm5 = vweird.f32 %v3428_v17 }
 0x308   : > { %2416 = vst.msk [vmem:[#allocation3 + $0x2a8] sm:$0xff] %vm1745_vm7, %v6882_v32 }
 0x309   : > { %2608 = vst.msk [vmem:[#allocation3 + $0x2a8] sm:$0xff] %vm1938_vm4, %v2541_v2  ;;  %v3710_v27 = vor.u32 1.1754944e-38, %v3709_v19  ;;  %vm3708_vm8 = vcmp.eq.f32.partialorder %v3707_v62, 8.507059e+37  ;;  %v2771_v2 = vld [vmem:[#allocation3 + $0x2f8] sm:$0xff] }
 0x30a   : > { %v3088_v54 = vpop.f32.mrf.mxu2  ;;  %2225 = vst.msk [vmem:[#allocation3 + $0x2d8] sm:$0xff] %vm1552_vm15, %v2160_v24  ;;  %4199 = vmatmul.msk.f32.gmra.mxu3 %vm1239_vm1, %v2771_v2 }
 0x30b   : > { %v3089_v3 = vadd.f32 %v3088_v54, %v2975_v41 }
 0x30d   : > { %v4487_v18 = vpop.eup %4486  ;;  %v3202_v0 = vadd.f32 %v3201_v44, %v3089_v3  ;;  %v1708_v5 = vpop.permute.xlu0 %1707 }
 0x30e   : > { %v3699_v42 = vmul.f32 %v4487_v18, %v3428_v17  ;;  %1775 = vst.msk [vmem:[#allocation3 + $0x2b8] sm:$0xff] %vm1745_vm7, %v1708_v5  ;;  %v1706_v32 = vpop.permute.xlu1 %1705  ;;  %vm3704_vm3 = vweird.f32 %v4487_v18 }
 0x30f   : > { %v1710_v21 = vpop.permute.xlu2 %1709  ;;  %v3265_v50 = vmul.f32 %v6894_v10, %v3202_v0  ;;  %1774 = vst.msk [vmem:[#allocation3 + $0x2a0] sm:$0xff] %vm1745_vm7, %v1706_v32  ;;  %vm3705_vm6 = vmor %vm3703_vm5, %vm3704_vm3 }
 0x310   : > { %1776 = vst.msk [vmem:[#allocation3 + $0x2d0] sm:$0xff] %vm1745_vm7, %v1710_v21  ;;  %v3700_v39 = vsub.f32 1.0, %v3699_v42  ;;  %v2761_v30 = vld [vmem:[#allocation3 + $0x2a8] sm:$0xff] }
 0x311   : > { %v6929_v28 = vadd.f32 %v6902_v37, %v3265_v50  ;;  %1967 = vst.msk [vmem:[#allocation3 + $0x2a0] sm:$0xff] %vm1938_vm4, %v6888_v8  ;;  %3117 = vmatmul.f32.gmra.mxu2 %v2761_v30 }
 0x312   : > { %v3701_v51 = vmul.f32 %v4487_v18, %v3700_v39  ;;  %v3091_v31 = vpop.f32.mrf.mxu2 }
 0x313   : > { %v4218_v15 = vmul.f32 -1.442695, %v6929_v28  ;;  %v3092_v59 = vadd.f32 %v3091_v31, %v2978_v36  ;;  %v4572_v36 = vld [vmem:[%s4770_s17 + $0x90] sm:$0xff] }
 0x314   : > { %v3702_v58 = vadd.f32 %v4487_v18, %v3701_v51 }
 0x315   : > { %4488 = vpow2.f32 %v4218_v15  ;;  %v3205_v35 = vadd.f32 %v3204_v48, %v3092_v59  ;;  %v2353_v6 = vpop.permute.xlu0 %2352 }
 0x316   : > { %v3706_v8 = vsel %vm3705_vm6, %v4487_v18, %v3702_v58  ;;  %2418 = vst.msk [vmem:[#allocation3 + $0x2d8] sm:$0xff] %vm1745_vm7, %v2353_v6  ;;  %v2351_v43 = vpop.permute.xlu1 %2350  ;;  %v3210_v58 = vpop.f32.mrf.mxu3 }
 0x317   : > { %v3711_v4 = vsel %vm3708_vm8, %v3710_v27, %v3706_v8  ;;  %v3266_v53 = vmul.f32 %v6894_v10, %v3205_v35  ;;  %2417 = vst.msk [vmem:[#allocation3 + $0x2c0] sm:$0xff] %vm1745_vm7, %v2351_v43  ;;  %v2355_v5 = vpop.permute.xlu2 %2354 }
 0x318   : > { %v3940_v47 = vmul.f32 %v3711_v4, %v6905_v12  ;;  %v2760_v45 = vld [vmem:[#allocation3 + $0x2a0] sm:$0xff]  ;;  %2609 = vst.msk [vmem:[#allocation3 + $0x2c0] sm:$0xff] %vm1938_vm4, %v6910_v11  ;;  %v2981_v11 = vpop.f32.mrf.mxu1 }
 0x319   : > { %v6940_v16 = vadd.f32 %v6902_v37, %v3266_v53  ;;  %3004 = vmatmul.f32.gmra.mxu1 %v2760_v45  ;;  %v4573_v45 = vld [vmem:[%s4770_s17 + $0x98] sm:$0xff] }
 0x31a   : > { %v3972_v63 = vadd.f32 %v4571_v29, %v3940_v47 }
 0x31b   : > { %v4489_v34 = vpop.eup %4488  ;;  %v4219_v60 = vmul.f32 -1.442695, %v6940_v16 }
 0x31c   : > { %4004 = vst.msk [vmem:[%s6330_s19 + $0x88] sm:$0xff] %vm317_vm0, %v3972_v63  ;;  %v3429_v12 = vadd.f32 1.0, %v4489_v34 }
 0x31d   : > { %4490 = vpow2.f32 %v4219_v60  ;;  %v1903_v57 = vpop.permute.xlu0 %1902 }
 0x31e   : > { %4492 = vrcp.f32 %v3429_v12  ;;  %1969 = vst.msk [vmem:[#allocation3 + $0x2d0] sm:$0xff] %vm1938_vm4, %v1903_v57  ;;  %v1901_v55 = vpop.permute.xlu1 %1900  ;;  %v3724_v1 = vand.u32 2147483648, %v3429_v12  ;;  %v3722_v61 = vand.u32 2147483647, %v3429_v12  ;;  %vm3718_vm1 = vweird.f32 %v3429_v12 }
 0x31f   : > { %1968 = vst.msk [vmem:[#allocation3 + $0x2b8] sm:$0xff] %vm1938_vm4, %v1901_v55  ;;  %v2764_v9 = vld [vmem:[#allocation3 + $0x2c0] sm:$0xff]  ;;  %v1905_v47 = vpop.permute.xlu2 %1904 }
 0x320   : > { %3120 = vmatmul.f32.gmra.mxu2 %v2764_v9  ;;  %v3725_v3 = vor.u32 1.1754944e-38, %v3724_v1  ;;  %vm3723_vm11 = vcmp.eq.f32.partialorder %v3722_v61, 8.507059e+37  ;;  %v3213_v9 = vpop.f32.mrf.mxu3 }
 0x323   : > { %v4491_v40 = vpop.eup %4490  ;;  %v3094_v56 = vpop.f32.mrf.mxu2 }
 0x324   : > { %v4493_v7 = vpop.eup %4492  ;;  %v3430_v46 = vadd.f32 1.0, %v4491_v40  ;;  %v3095_v26 = vadd.f32 %v3094_v56, %v2981_v11 }
 0x325   : > { %v3714_v20 = vmul.f32 %v4493_v7, %v3429_v12  ;;  %vm3719_vm9 = vweird.f32 %v4493_v7  ;;  %v2766_v32 = vld [vmem:[#allocation3 + $0x2d0] sm:$0xff]  ;;  %v2547_v19 = vpop.permute.xlu0 %2546 }
 0x326   : > { %4494 = vrcp.f32 %v3430_v46  ;;  %v3208_v49 = vadd.f32 %v3207_v23, %v3095_v26  ;;  %v2545_v38 = vpop.permute.xlu1 %2544  ;;  %v2763_v17 = vld [vmem:[#allocation3 + $0x2b8] sm:$0xff]  ;;  %vm3720_vm10 = vmor %vm3718_vm1, %vm3719_vm9  ;;  %v3739_v30 = vand.u32 2147483648, %v3430_v46  ;;  %v3737_v31 = vand.u32 2147483647, %v3430_v46 }
 0x327   : > { %v3715_v52 = vsub.f32 1.0, %v3714_v20  ;;  %2610 = vst.msk [vmem:[#allocation3 + $0x2d8] sm:$0xff] %vm1938_vm4, %v2545_v38  ;;  %3007 = vmatmul.f32.gmra.mxu1 %v2763_v17  ;;  %vm3733_vm13 = vweird.f32 %v3430_v46 }
 0x328   : > { %v3267_v14 = vmul.f32 %v6894_v10, %v3208_v49  ;;  %v3740_v33 = vor.u32 1.1754944e-38, %v3739_v30  ;;  %vm3738_vm14 = vcmp.eq.f32.partialorder %v3737_v31, 8.507059e+37 }
 0x329   : > { %v3716_v24 = vmul.f32 %v4493_v7, %v3715_v52 }
 0x32a   : > { %v6955_v41 = vadd.f32 %v6902_v37, %v3267_v14 }
 0x32b   : > { %v3717_v22 = vadd.f32 %v4493_v7, %v3716_v24 }
 0x32c   : > { %v4495_v54 = vpop.eup %4494  ;;  %v4220_v18 = vmul.f32 -1.442695, %v6955_v41 }
 0x32d   : > { %v3721_v44 = vsel %vm3720_vm10, %v4493_v7, %v3717_v22  ;;  %v3729_v13 = vmul.f32 %v4495_v54, %v3430_v46  ;;  %vm3734_vm12 = vweird.f32 %v4495_v54  ;;  %v4574_v22 = vld [vmem:[%s4770_s17 + $0xa0] sm:$0xff] }
 0x32e   : > { %v3726_v0 = vsel %vm3723_vm11, %v3725_v3, %v3721_v44  ;;  %4496 = vpow2.f32 %v4220_v18  ;;  %v2162_v50 = vpop.permute.xlu1 %2161  ;;  %v2767_v39 = vld [vmem:[#allocation3 + $0x2d8] sm:$0xff] }
 0x32f   : > { %v3941_v42 = vmul.f32 %v3726_v0, %v6929_v28  ;;  %v3730_v21 = vsub.f32 1.0, %v3729_v13  ;;  %2226 = vst.msk [vmem:[#allocation3 + $0x2f0] sm:$0xff] %vm1552_vm15, %v2162_v50  ;;  %3010 = vmatmul.f32.gmra.mxu1 %v2766_v32  ;;  %3123 = vmatmul.f32.gmra.mxu2 %v2767_v39  ;;  %v2984_v28 = vpop.f32.mrf.mxu1  ;;  %vm3735_vm15 = vmor %vm3733_vm13, %vm3734_vm12 }
 0x330   : > { %2419 = vst.msk [vmem:[#allocation3 + $0x2f0] sm:$0xff] %vm1745_vm7, %v2355_v5  ;;  %v3216_v5 = vpop.f32.mrf.mxu3 }
 0x331   : > { %v3973_v51 = vadd.f32 %v4572_v36, %v3941_v42  ;;  %v3731_v62 = vmul.f32 %v4495_v54, %v3730_v21  ;;  %2611 = vst.msk [vmem:[#allocation3 + $0x2f0] sm:$0xff] %vm1938_vm4, %v2547_v19 }
 0x332   : > { %v3097_v15 = vpop.f32.mrf.mxu2 }
 0x333   : > { %4005 = vst.msk [vmem:[%s6330_s19 + $0x90] sm:$0xff] %vm317_vm0, %v3973_v51  ;;  %v3732_v59 = vadd.f32 %v4495_v54, %v3731_v62  ;;  %v3098_v48 = vadd.f32 %v3097_v15, %v2984_v28 }
 0x334   : > { %v4497_v27 = vpop.eup %4496 }
 0x335   : > { %v3736_v35 = vsel %vm3735_vm15, %v4495_v54, %v3732_v59  ;;  %v3211_v6 = vadd.f32 %v3210_v58, %v3098_v48  ;;  %v3431_v4 = vadd.f32 1.0, %v4497_v27 }
 0x336   : > { %v3741_v8 = vsel %vm3738_vm14, %v3740_v33, %v3736_v35  ;;  %v1712_v25 = vpop.permute.xlu1 %1711  ;;  %v4575_v33 = vld [vmem:[%s4770_s17 + $0xa8] sm:$0xff] }
 0x337   : > { %v3942_v53 = vmul.f32 %v3741_v8, %v6940_v16  ;;  %v3268_v43 = vmul.f32 %v6894_v10, %v3211_v6  ;;  %4498 = vrcp.f32 %v3431_v4  ;;  %1777 = vst.msk [vmem:[#allocation3 + $0x2e8] sm:$0xff] %vm1745_vm7, %v1712_v25  ;;  %v2987_v60 = vpop.f32.mrf.mxu1  ;;  %v3754_v46 = vand.u32 2147483648, %v3431_v4 }
 0x338   : > { %1970 = vst.msk [vmem:[#allocation3 + $0x2e8] sm:$0xff] %vm1938_vm4, %v1905_v47  ;;  %v2770_v34 = vld [vmem:[#allocation3 + $0x2f0] sm:$0xff]  ;;  %v3752_v23 = vand.u32 2147483647, %v3431_v4  ;;  %vm3748_vm4 = vweird.f32 %v3431_v4  ;;  %v3219_v47 = vpop.f32.mrf.mxu3 }
 0x339   : > { %v3974_v29 = vadd.f32 %v4573_v45, %v3942_v53  ;;  %v6970_v63 = vadd.f32 %v6902_v37, %v3268_v43  ;;  %3126 = vmatmul.f32.gmra.mxu2 %v2770_v34  ;;  %v3755_v1 = vor.u32 1.1754944e-38, %v3754_v46 }
 0x33a   : > { %vm3753_vm3 = vcmp.eq.f32.partialorder %v3752_v23, 8.507059e+37 }
 0x33b   : > { %4006 = vst.msk [vmem:[%s6330_s19 + $0x98] sm:$0xff] %vm317_vm0, %v3974_v29  ;;  %v4221_v16 = vmul.f32 -1.442695, %v6970_v63 }
 0x33c   : > { %v3100_v12 = vpop.f32.mrf.mxu2 }
 0x33d   : > { %4500 = vpow2.f32 %v4221_v16  ;;  %v3101_v57 = vadd.f32 %v3100_v12, %v2987_v60  ;;  %v4499_v55 = vpop.eup %4498 }
 0x33e   : > { %v3744_v2 = vmul.f32 %v4499_v55, %v3431_v4  ;;  %vm3749_vm7 = vweird.f32 %v4499_v55 }
 0x33f   : > { %v3214_v40 = vadd.f32 %v3213_v9, %v3101_v57  ;;  %v2769_v11 = vld [vmem:[#allocation3 + $0x2e8] sm:$0xff]  ;;  %vm3750_vm2 = vmor %vm3748_vm4, %vm3749_vm7  ;;  %v2990_v3 = vpop.f32.mrf.mxu1 }
 0x340   : > { %v3745_v56 = vsub.f32 1.0, %v3744_v2  ;;  %3013 = vmatmul.f32.gmra.mxu1 %v2769_v11  ;;  %v4576_v2 = vld [vmem:[%s4770_s17 + $0xb0] sm:$0xff] }
 0x341   : > { %v3269_v7 = vmul.f32 %v6894_v10, %v3214_v40 }
 0x342   : > { %v3746_v20 = vmul.f32 %v4499_v55, %v3745_v56 }
 0x343   : > { %v4501_v26 = vpop.eup %4500  ;;  %v6978_v52 = vadd.f32 %v6902_v37, %v3269_v7 }
 0x344   : > { %v3432_v49 = vadd.f32 1.0, %v4501_v26  ;;  %v3747_v38 = vadd.f32 %v4499_v55, %v3746_v20 }
 0x345   : > { %v4222_v17 = vmul.f32 -1.442695, %v6978_v52 }
 0x346   : > { %4502 = vrcp.f32 %v3432_v49  ;;  %v3751_v24 = vsel %vm3750_vm2, %v4499_v55, %v3747_v38  ;;  %v3769_v39 = vand.u32 2147483648, %v3432_v49  ;;  %vm3763_vm6 = vweird.f32 %v3432_v49 }
 0x347   : > { %4504 = vpow2.f32 %v4222_v17  ;;  %v3756_v61 = vsel %vm3753_vm3, %v3755_v1, %v3751_v24 }
 0x348   : > { %v3943_v14 = vmul.f32 %v3756_v61, %v6955_v41  ;;  %v3767_v41 = vand.u32 2147483647, %v3432_v49  ;;  %v3770_v62 = vor.u32 1.1754944e-38, %v3769_v39 }
 0x34a   : > { %v3975_v54 = vadd.f32 %v4574_v22, %v3943_v14  ;;  %vm3768_vm9 = vcmp.eq.f32.partialorder %v3767_v41, 8.507059e+37  ;;  %v3222_v22 = vpop.f32.mrf.mxu3 }
 0x34b   : > { %v3103_v44 = vpop.f32.mrf.mxu2 }
 0x34c   : > { %v4503_v13 = vpop.eup %4502  ;;  %v3104_v18 = vadd.f32 %v3103_v44, %v2990_v3  ;;  %4007 = vst.msk [vmem:[%s6330_s19 + $0xa0] sm:$0xff] %vm317_vm0, %v3975_v54 }
 0x34d   : > { %v4505_v0 = vpop.eup %4504  ;;  %v3759_v42 = vmul.f32 %v4503_v13, %v3432_v49  ;;  %vm3764_vm5 = vweird.f32 %v4503_v13 }
 0x34e   : > { %v3433_v21 = vadd.f32 1.0, %v4505_v0  ;;  %v3217_v50 = vadd.f32 %v3216_v5, %v3104_v18  ;;  %vm3765_vm8 = vmor %vm3763_vm6, %vm3764_vm5 }
 0x34f   : > { %v3760_v32 = vsub.f32 1.0, %v3759_v42 }
 0x350   : > { %4506 = vrcp.f32 %v3433_v21  ;;  %v3270_v30 = vmul.f32 %v6894_v10, %v3217_v50  ;;  %v3784_v6 = vand.u32 2147483648, %v3433_v21  ;;  %v3782_v43 = vand.u32 2147483647, %v3433_v21 }
 0x351   : > { %v3761_v19 = vmul.f32 %v4503_v13, %v3760_v32  ;;  %vm3778_vm10 = vweird.f32 %v3433_v21 }
 0x352   : > { %v6987_v51 = vadd.f32 %v6902_v37, %v3270_v30  ;;  %v3785_v34 = vor.u32 1.1754944e-38, %v3784_v6  ;;  %vm3783_vm12 = vcmp.eq.f32.partialorder %v3782_v43, 8.507059e+37 }
 0x353   : > { %v3762_v36 = vadd.f32 %v4503_v13, %v3761_v19  ;;  %v2993_v8 = vpop.f32.mrf.mxu1 }
 0x354   : > { %v4223_v28 = vmul.f32 -1.442695, %v6987_v51 }
 0x355   : > { %v3766_v31 = vsel %vm3765_vm8, %v4503_v13, %v3762_v36  ;;  %v4577_v13 = vld [vmem:[%s4770_s17 + $0xb8] sm:$0xff] }
 0x356   : > { %v4507_v15 = vpop.eup %4506  ;;  %v3771_v59 = vsel %vm3768_vm9, %v3770_v62, %v3766_v31  ;;  %4508 = vpow2.f32 %v4223_v28 }
 0x357   : > { %v3944_v48 = vmul.f32 %v3771_v59, %v6970_v63  ;;  %v3774_v58 = vmul.f32 %v4507_v15, %v3433_v21  ;;  %vm3779_vm1 = vweird.f32 %v4507_v15 }
 0x358   : > { %vm3780_vm11 = vmor %vm3778_vm10, %vm3779_vm1 }
 0x359   : > { %v3976_v27 = vadd.f32 %v4575_v33, %v3944_v48  ;;  %v3775_v35 = vsub.f32 1.0, %v3774_v58  ;;  %v3225_v48 = vpop.f32.mrf.mxu3 }
 0x35a   : > { %v3106_v4 = vpop.f32.mrf.mxu2 }
 0x35b   : > { %4008 = vst.msk [vmem:[%s6330_s19 + $0xa8] sm:$0xff] %vm317_vm0, %v3976_v27  ;;  %v3776_v53 = vmul.f32 %v4507_v15, %v3775_v35  ;;  %v3107_v25 = vadd.f32 %v3106_v4, %v2993_v8  ;;  %v4578_v35 = vld [vmem:[%s4770_s17 + $0xc0] sm:$0xff] }
 0x35c   : > { %v4509_v45 = vpop.eup %4508 }
 0x35d   : > { %v3777_v29 = vadd.f32 %v4507_v15, %v3776_v53  ;;  %v3220_v63 = vadd.f32 %v3219_v47, %v3107_v25  ;;  %v3434_v16 = vadd.f32 1.0, %v4509_v45 }
 0x35f   : > { %v3781_v60 = vsel %vm3780_vm11, %v4507_v15, %v3777_v29  ;;  %v3271_v12 = vmul.f32 %v6894_v10, %v3220_v63  ;;  %4510 = vrcp.f32 %v3434_v16  ;;  %v3799_v26 = vand.u32 2147483648, %v3434_v16 }
 0x360   : > { %v3786_v57 = vsel %vm3783_vm12, %v3785_v34, %v3781_v60  ;;  %v3797_v49 = vand.u32 2147483647, %v3434_v16  ;;  %vm3793_vm15 = vweird.f32 %v3434_v16 }
 0x361   : > { %v3945_v55 = vmul.f32 %v3786_v57, %v6978_v52  ;;  %v3307_v9 = vadd.f32 %v6902_v37, %v3271_v12  ;;  %v3800_v52 = vor.u32 1.1754944e-38, %v3799_v26 }
 0x362   : > { %vm3798_vm7 = vcmp.eq.f32.partialorder %v3797_v49, 8.507059e+37 }
 0x363   : > { %v3977_v40 = vadd.f32 %v4576_v2, %v3945_v55  ;;  %v4224_v11 = vmul.f32 -1.442695, %v3307_v9 }
 0x364   : > { %v3109_v1 = vpop.f32.mrf.mxu2 }
 0x365   : > { %4009 = vst.msk [vmem:[%s6330_s19 + $0xb0] sm:$0xff] %vm317_vm0, %v3977_v40  ;;  %4512 = vpow2.f32 %v4224_v11  ;;  %v4511_v56 = vpop.eup %4510 }
 0x366   : > { %v3789_v7 = vmul.f32 %v4511_v56, %v3434_v16  ;;  %vm3794_vm13 = vweird.f32 %v4511_v56  ;;  %v3228_v16 = vpop.f32.mrf.mxu3 }
 0x367   : > { %vm3795_vm14 = vmor %vm3793_vm15, %vm3794_vm13 }
 0x368   : > { %v3790_v46 = vsub.f32 1.0, %v3789_v7 }
 0x36a   : > { %v3791_v23 = vmul.f32 %v4511_v56, %v3790_v46 }
 0x36b   : > { %v4513_v20 = vpop.eup %4512 }
 0x36c   : > { %v3435_v38 = vadd.f32 1.0, %v4513_v20  ;;  %v3792_v17 = vadd.f32 %v4511_v56, %v3791_v23  ;;  %v4579_v20 = vld [vmem:[%s4770_s17 + $0xc8] sm:$0xff] }
 0x36e   : > { %4514 = vrcp.f32 %v3435_v38  ;;  %v2996_v24 = vpop.f32.mrf.mxu1  ;;  %v3796_v61 = vsel %vm3795_vm14, %v4511_v56, %v3792_v17  ;;  %v3814_v39 = vand.u32 2147483648, %v3435_v38  ;;  %v3812_v41 = vand.u32 2147483647, %v3435_v38 }
 0x36f   : > { %v3110_v14 = vadd.f32 %v3109_v1, %v2996_v24  ;;  %v3801_v54 = vsel %vm3798_vm7, %v3800_v52, %v3796_v61  ;;  %vm3808_vm2 = vweird.f32 %v3435_v38  ;;  %v3231_v24 = vpop.f32.mrf.mxu3 }
 0x370   : > { %v3946_v3 = vmul.f32 %v3801_v54, %v6987_v51  ;;  %v3815_v36 = vor.u32 1.1754944e-38, %v3814_v39  ;;  %vm3813_vm5 = vcmp.eq.f32.partialorder %v3812_v41, 8.507059e+37 }
 0x371   : > { %v3223_v44 = vadd.f32 %v3222_v22, %v3110_v14 }
 0x372   : > { %v3978_v18 = vadd.f32 %v4577_v13, %v3946_v3 }
 0x373   : > { %v3272_v0 = vmul.f32 %v6894_v10, %v3223_v44 }
 0x374   : > { %v4515_v5 = vpop.eup %4514  ;;  %4010 = vst.msk [vmem:[%s6330_s19 + $0xb8] sm:$0xff] %vm317_vm0, %v3978_v18 }
 0x375   : > { %v3804_v42 = vmul.f32 %v4515_v5, %v3435_v38  ;;  %v3308_v21 = vadd.f32 %v6902_v37, %v3272_v0  ;;  %vm3809_vm4 = vweird.f32 %v4515_v5 }
 0x376   : > { %vm3810_vm3 = vmor %vm3808_vm2, %vm3809_vm4 }
 0x377   : > { %v3805_v50 = vsub.f32 1.0, %v3804_v42  ;;  %v4225_v32 = vmul.f32 -1.442695, %v3308_v21 }
 0x379   : > { %v3806_v19 = vmul.f32 %v4515_v5, %v3805_v50  ;;  %4516 = vpow2.f32 %v4225_v32 }
 0x37b   : > { %v3807_v30 = vadd.f32 %v4515_v5, %v3806_v19  ;;  %v3112_v51 = vpop.f32.mrf.mxu2 }
 0x37c   : > { %v2999_v31 = vpop.f32.mrf.mxu1 }
 0x37d   : > { %v3811_v62 = vsel %vm3810_vm3, %v4515_v5, %v3807_v30  ;;  %v3113_v15 = vadd.f32 %v3112_v51, %v2999_v31  ;;  %v4580_v30 = vld [vmem:[%s4770_s17 + $0xd0] sm:$0xff] }
 0x37e   : > { %v3816_v28 = vsel %vm3813_vm5, %v3815_v36, %v3811_v62 }
 0x37f   : > { %v4517_v59 = vpop.eup %4516  ;;  %v3947_v58 = vmul.f32 %v3816_v28, %v3307_v9  ;;  %v3226_v27 = vadd.f32 %v3225_v48, %v3113_v15  ;;  %v3234_v15 = vpop.f32.mrf.mxu3 }
 0x380   : > { %v3436_v33 = vadd.f32 1.0, %v4517_v59 }
 0x381   : > { %v3979_v6 = vadd.f32 %v4578_v35, %v3947_v58  ;;  %v3273_v8 = vmul.f32 %v6894_v10, %v3226_v27 }
 0x382   : > { %4518 = vrcp.f32 %v3436_v33  ;;  %v3829_v63 = vand.u32 2147483648, %v3436_v33  ;;  %v3827_v12 = vand.u32 2147483647, %v3436_v33  ;;  %vm3823_vm8 = vweird.f32 %v3436_v33 }
 0x383   : > { %4011 = vst.msk [vmem:[%s6330_s19 + $0xc0] sm:$0xff] %vm317_vm0, %v3979_v6  ;;  %v3309_v4 = vadd.f32 %v6902_v37, %v3273_v8 }
 0x384   : > { %v3002_v45 = vpop.f32.mrf.mxu1  ;;  %v3830_v2 = vor.u32 1.1754944e-38, %v3829_v63  ;;  %vm3828_vm1 = vcmp.eq.f32.partialorder %v3827_v12, 8.507059e+37 }
 0x385   : > { %v4226_v53 = vmul.f32 -1.442695, %v3309_v4 }
 0x387   : > { %4520 = vpow2.f32 %v4226_v53 }
 0x388   : > { %v4519_v43 = vpop.eup %4518 }
 0x389   : > { %v3819_v25 = vmul.f32 %v4519_v43, %v3436_v33  ;;  %vm3824_vm6 = vweird.f32 %v4519_v43 }
 0x38a   : > { %v3115_v29 = vpop.f32.mrf.mxu2  ;;  %vm3825_vm9 = vmor %vm3823_vm8, %vm3824_vm6 }
 0x38b   : > { %v3820_v47 = vsub.f32 1.0, %v3819_v25  ;;  %v3116_v34 = vadd.f32 %v3115_v29, %v3002_v45 }
 0x38d   : > { %v3821_v60 = vmul.f32 %v4519_v43, %v3820_v47  ;;  %v3229_v57 = vadd.f32 %v3228_v16, %v3116_v34  ;;  %v4521_v55 = vpop.eup %4520  ;;  %v3237_v16 = vpop.f32.mrf.mxu3 }
 0x38e   : > { %v3437_v40 = vadd.f32 1.0, %v4521_v55 }
 0x38f   : > { %v3822_v9 = vadd.f32 %v4519_v43, %v3821_v60  ;;  %v3274_v11 = vmul.f32 %v6894_v10, %v3229_v57  ;;  %v4581_v60 = vld [vmem:[%s4770_s17 + $0xd8] sm:$0xff] }
 0x390   : > { %4522 = vrcp.f32 %v3437_v40  ;;  %v3844_v3 = vand.u32 2147483648, %v3437_v40  ;;  %v3842_v18 = vand.u32 2147483647, %v3437_v40  ;;  %vm3838_vm11 = vweird.f32 %v3437_v40 }
 0x391   : > { %v3826_v56 = vsel %vm3825_vm9, %v4519_v43, %v3822_v9  ;;  %v7013_v26 = vadd.f32 %v6902_v37, %v3274_v11 }
 0x392   : > { %v3831_v7 = vsel %vm3828_vm1, %v3830_v2, %v3826_v56  ;;  %v3845_v50 = vor.u32 1.1754944e-38, %v3844_v3  ;;  %vm3843_vm13 = vcmp.eq.f32.partialorder %v3842_v18, 8.507059e+37 }
 0x393   : > { %v3948_v46 = vmul.f32 %v3831_v7, %v3308_v21  ;;  %v4227_v49 = vmul.f32 -1.442695, %v7013_v26 }
 0x394   : > { %v3118_v38 = vpop.f32.mrf.mxu2 }
 0x395   : > { %v3980_v23 = vadd.f32 %v4579_v20, %v3948_v46  ;;  %4524 = vpow2.f32 %v4227_v49  ;;  %v3240_v3 = vpop.f32.mrf.mxu3 }
 0x396   : > { %v3005_v17 = vpop.f32.mrf.mxu1  ;;  %v4523_v1 = vpop.eup %4522 }
 0x397   : > { %4012 = vst.msk [vmem:[%s6330_s19 + $0xc8] sm:$0xff] %vm317_vm0, %v3980_v23  ;;  %v3119_v52 = vadd.f32 %v3118_v38, %v3005_v17  ;;  %v3834_v61 = vmul.f32 %v4523_v1, %v3437_v40  ;;  %vm3839_vm10 = vweird.f32 %v4523_v1 }
 0x398   : > { %vm3840_vm12 = vmor %vm3838_vm11, %vm3839_vm10 }
 0x399   : > { %v3232_v14 = vadd.f32 %v3231_v24, %v3119_v52  ;;  %v3835_v22 = vsub.f32 1.0, %v3834_v61  ;;  %v4582_v24 = vld [vmem:[%s4770_s17 + $0xe0] sm:$0xff] }
 0x39b   : > { %v3275_v54 = vmul.f32 %v6894_v10, %v3232_v14  ;;  %v4525_v44 = vpop.eup %4524  ;;  %v3836_v13 = vmul.f32 %v4523_v1, %v3835_v22 }
 0x39c   : > { %v3438_v5 = vadd.f32 1.0, %v4525_v44 }
 0x39d   : > { %v7021_v0 = vadd.f32 %v6902_v37, %v3275_v54  ;;  %v3837_v42 = vadd.f32 %v4523_v1, %v3836_v13 }
 0x39e   : > { %4526 = vrcp.f32 %v3438_v5  ;;  %v3859_v27 = vand.u32 2147483648, %v3438_v5  ;;  %v3857_v6 = vand.u32 2147483647, %v3438_v5  ;;  %vm3853_vm14 = vweird.f32 %v3438_v5 }
 0x39f   : > { %v4228_v21 = vmul.f32 -1.442695, %v7021_v0  ;;  %v3841_v32 = vsel %vm3840_vm12, %v4523_v1, %v3837_v42 }
 0x3a0   : > { %v3846_v39 = vsel %vm3843_vm13, %v3845_v50, %v3841_v32  ;;  %v3860_v43 = vor.u32 1.1754944e-38, %v3859_v27  ;;  %vm3858_vm4 = vcmp.eq.f32.partialorder %v3857_v6, 8.507059e+37 }
 0x3a1   : > { %4528 = vpow2.f32 %v4228_v21  ;;  %v3949_v19 = vmul.f32 %v3846_v39, %v3309_v4 }
 0x3a3   : > { %v3121_v41 = vpop.f32.mrf.mxu2  ;;  %v3981_v36 = vadd.f32 %v4580_v30, %v3949_v19 }
 0x3a4   : > { %v3008_v51 = vpop.f32.mrf.mxu1  ;;  %v4527_v62 = vpop.eup %4526 }
 0x3a5   : > { %v3122_v31 = vadd.f32 %v3121_v41, %v3008_v51  ;;  %4013 = vst.msk [vmem:[%s6330_s19 + $0xd0] sm:$0xff] %vm317_vm0, %v3981_v36  ;;  %v3849_v59 = vmul.f32 %v4527_v62, %v3438_v5  ;;  %vm3854_vm15 = vweird.f32 %v4527_v62 }
 0x3a6   : > { %vm3855_vm7 = vmor %vm3853_vm14, %vm3854_vm15 }
 0x3a7   : > { %v4529_v28 = vpop.eup %4528  ;;  %v3235_v58 = vadd.f32 %v3234_v15, %v3122_v31  ;;  %v3850_v33 = vsub.f32 1.0, %v3849_v59 }
 0x3a8   : > { %v3439_v48 = vadd.f32 1.0, %v4529_v28  ;;  %v4583_v28 = vld [vmem:[%s4770_s17 + $0xe8] sm:$0xff] }
 0x3a9   : > { %v3851_v35 = vmul.f32 %v4527_v62, %v3850_v33  ;;  %v3276_v8 = vmul.f32 %v6894_v10, %v3235_v58 }
 0x3aa   : > { %4530 = vrcp.f32 %v3439_v48  ;;  %v3874_v2 = vand.u32 2147483648, %v3439_v48  ;;  %v3872_v56 = vand.u32 2147483647, %v3439_v48  ;;  %vm3868_vm3 = vweird.f32 %v3439_v48 }
 0x3ab   : > { %v3852_v4 = vadd.f32 %v4527_v62, %v3851_v35  ;;  %v7029_v53 = vadd.f32 %v6902_v37, %v3276_v8 }
 0x3ac   : > { %v3011_v55 = vpop.f32.mrf.mxu1  ;;  %vm3873_vm6 = vcmp.eq.f32.partialorder %v3872_v56, 8.507059e+37 }
 0x3ad   : > { %v3856_v25 = vsel %vm3855_vm7, %v4527_v62, %v3852_v4  ;;  %v4229_v47 = vmul.f32 -1.442695, %v7029_v53 }
 0x3ae   : > { %v3861_v29 = vsel %vm3858_vm4, %v3860_v43, %v3856_v25 }
 0x3af   : > { %v3950_v63 = vmul.f32 %v3861_v29, %v7013_v26  ;;  %4532 = vpow2.f32 %v4229_v47  ;;  %v3875_v26 = vor.u32 1.1754944e-38, %v3874_v2  ;;  %v4584_v29 = vld [vmem:[%s4770_s17 + $0xf0] sm:$0xff] }
 0x3b0   : > { %v4531_v45 = vpop.eup %4530 }
 0x3b1   : > { %v3864_v34 = vmul.f32 %v4531_v45, %v3439_v48  ;;  %v3982_v12 = vadd.f32 %v4581_v60, %v3950_v63  ;;  %vm3869_vm2 = vweird.f32 %v4531_v45 }
 0x3b2   : > { %v3124_v9 = vpop.f32.mrf.mxu2  ;;  %vm3870_vm5 = vmor %vm3868_vm3, %vm3869_vm2 }
 0x3b3   : > { %v3865_v57 = vsub.f32 1.0, %v3864_v34  ;;  %v3125_v40 = vadd.f32 %v3124_v9, %v3011_v55  ;;  %4014 = vst.msk [vmem:[%s6330_s19 + $0xd8] sm:$0xff] %vm317_vm0, %v3982_v12 }
 0x3b5   : > { %v3866_v11 = vmul.f32 %v4531_v45, %v3865_v57  ;;  %v3238_v7 = vadd.f32 %v3237_v16, %v3125_v40  ;;  %v4533_v46 = vpop.eup %4532 }
 0x3b6   : > { %v3440_v23 = vadd.f32 1.0, %v4533_v46 }
 0x3b7   : > { %v3867_v20 = vadd.f32 %v4531_v45, %v3866_v11  ;;  %v3277_v49 = vmul.f32 %v6894_v10, %v3238_v7  ;;  %v4585_v11 = vld [vmem:[%s4770_s17 + $0xf8] sm:$0xff] }
 0x3b8   : > { %4534 = vrcp.f32 %v3440_v23  ;;  %v3889_v50 = vand.u32 2147483648, %v3440_v23  ;;  %v3887_v39 = vand.u32 2147483647, %v3440_v23  ;;  %vm3883_vm9 = vweird.f32 %v3440_v23 }
 0x3b9   : > { %v3871_v38 = vsel %vm3870_vm5, %v4531_v45, %v3867_v20  ;;  %v3313_v1 = vadd.f32 %v6902_v37, %v3277_v49 }
 0x3ba   : > { %v3876_v17 = vsel %vm3873_vm6, %v3875_v26, %v3871_v38  ;;  %v3890_v51 = vor.u32 1.1754944e-38, %v3889_v50  ;;  %vm3888_vm10 = vcmp.eq.f32.partialorder %v3887_v39, 8.507059e+37 }
 0x3bb   : > { %v3951_v52 = vmul.f32 %v3876_v17, %v7021_v0  ;;  %v4230_v14 = vmul.f32 -1.442695, %v3313_v1 }
 0x3bc   : > { %v3127_v22 = vpop.f32.mrf.mxu2 }
 0x3bd   : > { %v3983_v61 = vadd.f32 %v4582_v24, %v3951_v52  ;;  %v3014_v54 = vpop.f32.mrf.mxu1  ;;  %4536 = vpow2.f32 %v4230_v14 }
 0x3be   : > { %v3128_v44 = vadd.f32 %v3127_v22, %v3014_v54  ;;  %v4535_v13 = vpop.eup %4534 }
 0x3bf   : > { %4015 = vst.msk [vmem:[%s6330_s19 + $0xe0] sm:$0xff] %vm317_vm0, %v3983_v61  ;;  %v3879_v18 = vmul.f32 %v4535_v13, %v3440_v23  ;;  %vm3884_vm8 = vweird.f32 %v4535_v13 }
 0x3c0   : > { %v3241_v5 = vadd.f32 %v3240_v3, %v3128_v44  ;;  %vm3885_vm1 = vmor %vm3883_vm9, %vm3884_vm8 }
 0x3c1   : > { %v3880_v42 = vsub.f32 1.0, %v3879_v18 }
 0x3c2   : > { %v3278_v21 = vmul.f32 %v6894_v10, %v3241_v5 }
 0x3c3   : > { %v4537_v0 = vpop.eup %4536  ;;  %v3881_v32 = vmul.f32 %v4535_v13, %v3880_v42 }
 0x3c4   : > { %v3314_v19 = vadd.f32 %v6902_v37, %v3278_v21  ;;  %v3441_v41 = vadd.f32 1.0, %v4537_v0 }
 0x3c5   : > { %v3882_v30 = vadd.f32 %v4535_v13, %v3881_v32 }
 0x3c6   : > { %v4231_v36 = vmul.f32 -1.442695, %v3314_v19  ;;  %4538 = vrcp.f32 %v3441_v41  ;;  %v3904_v27 = vand.u32 2147483648, %v3441_v41  ;;  %v3902_v6 = vand.u32 2147483647, %v3441_v41 }
 0x3c7   : > { %v3886_v62 = vsel %vm3885_vm1, %v4535_v13, %v3882_v30  ;;  %vm3898_vm12 = vweird.f32 %v3441_v41 }
 0x3c8   : > { %4540 = vpow2.f32 %v4231_v36  ;;  %v3891_v10 = vsel %vm3888_vm10, %v3890_v51, %v3886_v62  ;;  %v3905_v4 = vor.u32 1.1754944e-38, %v3904_v27  ;;  %vm3903_vm15 = vcmp.eq.f32.partialorder %v3902_v6, 8.507059e+37 }
 0x3c9   : > { %v3952_v31 = vmul.f32 %v3891_v10, %v7029_v53 }
 0x3cb   : > { %v3984_v15 = vadd.f32 %v4583_v28, %v3952_v31 }
 0x3cc   : > { %v4539_v59 = vpop.eup %4538 }
 0x3cd   : > { %4016 = vst.msk [vmem:[%s6330_s19 + $0xe8] sm:$0xff] %vm317_vm0, %v3984_v15  ;;  %v3894_v37 = vmul.f32 %v4539_v59, %v3441_v41  ;;  %vm3899_vm11 = vweird.f32 %v4539_v59 }
 0x3ce   : > { %v4541_v48 = vpop.eup %4540  ;;  %vm3900_vm13 = vmor %vm3898_vm12, %vm3899_vm11 }
 0x3cf   : > { %v3442_v58 = vadd.f32 1.0, %v4541_v48  ;;  %v3895_v33 = vsub.f32 1.0, %v3894_v37 }
 0x3d1   : > { %4542 = vrcp.f32 %v3442_v58  ;;  %v3896_v35 = vmul.f32 %v4539_v59, %v3895_v33  ;;  %v3919_v16 = vand.u32 2147483648, %v3442_v58  ;;  %v3917_v12 = vand.u32 2147483647, %v3442_v58 }
 0x3d2   : > { %vm3913_vm7 = vweird.f32 %v3442_v58 }
 0x3d3   : > { %v3897_v8 = vadd.f32 %v4539_v59, %v3896_v35  ;;  %v3920_v55 = vor.u32 1.1754944e-38, %v3919_v16  ;;  %vm3918_vm2 = vcmp.eq.f32.partialorder %v3917_v12, 8.507059e+37 }
 0x3d5   : > { %v3901_v53 = vsel %vm3900_vm13, %v4539_v59, %v3897_v8 }
 0x3d6   : > { %v3906_v25 = vsel %vm3903_vm15, %v3905_v4, %v3901_v53 }
 0x3d7   : > { %v4543_v43 = vpop.eup %4542  ;;  %v3953_v47 = vmul.f32 %v3906_v25, %v3313_v1 }
 0x3d8   : > { %v3909_v45 = vmul.f32 %v4543_v43, %v3442_v58  ;;  %vm3914_vm14 = vweird.f32 %v4543_v43 }
 0x3d9   : > { %v3985_v63 = vadd.f32 %v4584_v29, %v3953_v47  ;;  %vm3915_vm4 = vmor %vm3913_vm7, %vm3914_vm14 }
 0x3da   : > { %v3910_v34 = vsub.f32 1.0, %v3909_v45 }
 0x3db   : > { %4017 = vst.msk [vmem:[%s6330_s19 + $0xf0] sm:$0xff] %vm317_vm0, %v3985_v63 }
 0x3dc   : > { %v3911_v60 = vmul.f32 %v4543_v43, %v3910_v34 }
 0x3de   : > { %v3912_v57 = vadd.f32 %v4543_v43, %v3911_v60 }
 0x3e0   : > { %v3916_v9 = vsel %vm3915_vm4, %v4543_v43, %v3912_v57 }
 0x3e1   : > { %v3921_v2 = vsel %vm3918_vm2, %v3920_v55, %v3916_v9 }
 0x3e2   : > { %v3954_v40 = vmul.f32 %v3921_v2, %v3314_v19 }
 0x3e4   : > { %v3986_v56 = vadd.f32 %v4585_v11, %v3954_v40 }
 0x3e6   : > { %4018 = vst.msk [vmem:[%s6330_s19 + $0xf8] sm:$0xff] %vm317_vm0, %v3986_v56 }
 0x3e7   : > { %4613 = shalt.err (!%p4610_p3)
}
 0x3e8   : > { %s4654_s17 = smov 128   ;;  %s4655_s16 = smov 8  }
 0x3e9   : > { %4239 = dma.vmem_to_hbm [thread:$0]  (%p4734_p5), %s4033_s28, 4096, %s4035_s14, %s4020_s15, %s4654_s17, %s4654_s17, %s4655_s16  }
 0x3ea PF: > { %p4245_p4 = scmp.ge.s32.totalorder %s4648_s27, 2  ;;  %s4049_s19 = sand.u32 1, %s4636_s24  }
 0x3eb   : > { %s4050_s9 = scalar_lea.sflag [#allocation5], %s4049_s19 }
 0x3ec   : > { %p4242_p7 = pnand %p4245_p4, %p4738_p6 }
 0x3ee   : > { %p4243_p8 = pneg %p4242_p7 }
 0x3f0   : > { %4631 = dma.done.wait (%p4243_p8), %s4050_s9, 4096  }
 0x3f1   : > { %4633 = vsyncadd (%p4243_p8), %s4050_s9, 4294963200  ;;  %p17_p9 = scmp.ge.s32.totalorder %s4721_s30, 4   ;;  %s7162_s24 = smov %s4640_s25 }
 0x3f2   : > { %s7163_s25 = smov %s4644_s26  ;;  %s7164_s26 = smov %s4732_s10 }
 0x3f3   : > { %s7165_s27 = smov %s4721_s30  ;;  %19 = sbr.rel (!%p17_p9) target bundleno = 3 (0x3), region = 85 }
 0x3f8   :  { %4056 = vsyncpa [#allocation5], 1 }
 0x3f9   :  { %4058 = vsyncpa [#allocation5 + $0x1], 1 }

</bundles_post_ra>
